<compile_context>
chip_gen: v5e
topology: v5e:2x2
jax: 0.10.0
libtpu: 0.0.40
codegen_flags: <defaults>
</compile_context>

<pallas_src>
import functools

import jax
import jax.numpy as jnp
from jax.experimental import pallas as pl
from jax.experimental.pallas import tpu as pltpu

_LANE = 128
_VMEM_LIMIT = 48 * 1024 * 1024      # explicit scoped-VMEM budget, safe on v5e/v6e/v7x


def _round_up(x, m):
    return ((x + m - 1) // m) * m


def _cdiv(a, b):
    return (a + b - 1) // b


# ----------------------------------------------------------------------------
# Conv3x3 (+ folded BN) kernel: in-VMEM tap accumulation, no HBM im2col
# ----------------------------------------------------------------------------

def _conv3x3_kernel(a0_ref, a1_ref, w_ref, b_ref, o_ref, *, offs, cin):
    """3x3 'same' conv on a flattened padded input via 9 shifted-row matmuls.

    a0/a1: two consecutive (tm, Cin) row-blocks of the flat padded input
           (rows [i*tm,(i+1)*tm) and [(i+1)*tm,(i+2)*tm)); together they cover
           every tap-shifted window of this output block (tap halo < tm).
    w_ref: (9, Cin, Cout) taps with BN scale folded; b_ref: (1, Cout) f32 (BN beta).
    o_ref: (tm, Cout) bf16 conv currents.
    """
    tm, cout = o_ref.shape
    a = jnp.concatenate([a0_ref[...], a1_ref[...]], axis=0)       # (2*tm, Cin)
    acc = jnp.zeros((tm, cout), jnp.float32) + b_ref[...]
    for t, off in enumerate(offs):                                 # 9 static taps
        a_tap = a[off:off + tm, :]
        if cin == 1:                                               # conv1: K=1 -> VPU
            acc = acc + a_tap.astype(jnp.float32) * w_ref[t].astype(jnp.float32)
        else:                                                      # conv2: MXU matmul
            acc = acc + jnp.dot(a_tap, w_ref[t],
                                preferred_element_type=jnp.float32)
    o_ref[...] = acc.astype(o_ref.dtype)


def conv3x3_bn(h, w_taps, bias, tm=256):
    """h: [B, H, W, Cin]; w_taps: [9, Cin, Cout]; bias: [1, Cout] f32.
    Returns conv+BN currents [B, H, W, Cout] in bf16.

    Flat-shift trick: with the input zero-padded to [B, H+2, W+2, Cin] and
    flattened over (B, H+2, W+2), output flat row p only needs input flat rows
    p + dy*(W+2) + dx, so each grid block needs just two consecutive row-blocks
    of the flat input.  The wrap/garbage rows+cols (pad margins) are computed
    and discarded by the final slice."""
    B, H, W, Cin = h.shape
    Cout = w_taps.shape[-1]
    Hp, Wp = H + 2, W + 2
    h = h.astype(w_taps.dtype)
    hpad = jnp.pad(h, ((0, 0), (1, 1), (1, 1), (0, 0)))
    M = B * Hp * Wp
    x_flat = hpad.reshape(M, Cin)
    nblk = _cdiv(M, tm)
    # one extra zero block so the "i+1" halo block is always in bounds
    x_flat = jnp.pad(x_flat, ((0, (nblk + 1) * tm - M), (0, 0)))
    offs = tuple(dy * Wp + dx for dy in range(3) for dx in range(3))

    out = pl.pallas_call(
        functools.partial(_conv3x3_kernel, offs=offs, cin=Cin),
        out_shape=jax.ShapeDtypeStruct((nblk * tm, Cout), jnp.bfloat16),
        grid=(nblk,),
        in_specs=[
            pl.BlockSpec((tm, Cin), lambda i: (i, 0)),
            pl.BlockSpec((tm, Cin), lambda i: (i + 1, 0)),
            pl.BlockSpec((9, Cin, Cout), lambda i: (0, 0, 0)),
            pl.BlockSpec((1, Cout), lambda i: (0, 0)),
        ],
        out_specs=pl.BlockSpec((tm, Cout), lambda i: (i, 0)),
        compiler_params=pltpu.CompilerParams(
            dimension_semantics=("parallel",),
            vmem_limit_bytes=_VMEM_LIMIT),
    )(x_flat, x_flat, w_taps, bias)

    return out[:M].reshape(B, Hp, Wp, Cout)[:, :H, :W, :]


# ----------------------------------------------------------------------------
# Tiled matmul kernel (M/N parallel, K arbitrary with f32 accumulator)
# ----------------------------------------------------------------------------

def _matmul_kernel(a_ref, b_ref, o_ref, acc_ref):
    k = pl.program_id(2)

    @pl.when(k == 0)
    def _():
        acc_ref[...] = jnp.zeros_like(acc_ref)

    acc_ref[...] += jnp.dot(a_ref[...], b_ref[...],
                            preferred_element_type=jnp.float32)

    @pl.when(k == pl.num_programs(2) - 1)
    def _():
        o_ref[...] = acc_ref[...].astype(o_ref.dtype)


def _pick_tile(dim, unit, max_tile, prefer_split=False):
    """Largest multiple of `unit` <= max_tile that divides round_up(dim, unit)."""
    d = _round_up(dim, unit)
    best = unit
    for t in range(unit, min(max_tile, d) + 1, unit):
        if d % t == 0:
            best = t
    if prefer_split and best == d and (d // 2) >= unit and (d // 2) % unit == 0:
        best = d // 2            # >=2 blocks on the parallel axes (v7x megacore)
    return best


def pallas_matmul(a, b, out_dtype=jnp.bfloat16):
    """a: [M, K], b: [K, N] (same dtype).  Returns [M, N] in out_dtype."""
    M, K = a.shape
    K2, N = b.shape
    assert K == K2 and a.dtype == b.dtype
    tm = _pick_tile(M, 8, 256, prefer_split=True)
    tk = _pick_tile(K, _LANE, 1024)
    tn = _pick_tile(N, _LANE, 512, prefer_split=True)
    Mp, Kp, Np = _round_up(M, tm), _round_up(K, tk), _round_up(N, tn)
    if (Mp, Kp) != (M, K):
        a = jnp.pad(a, ((0, Mp - M), (0, Kp - K)))
    if (Kp, Np) != (K, N):
        b = jnp.pad(b, ((0, Kp - K), (0, Np - N)))

    out = pl.pallas_call(
        _matmul_kernel,
        out_shape=jax.ShapeDtypeStruct((Mp, Np), out_dtype),
        grid=(Mp // tm, Np // tn, Kp // tk),
        in_specs=[
            pl.BlockSpec((tm, tk), lambda i, j, k: (i, k)),
            pl.BlockSpec((tk, tn), lambda i, j, k: (k, j)),
        ],
        out_specs=pl.BlockSpec((tm, tn), lambda i, j, k: (i, j)),
        scratch_shapes=[pltpu.VMEM((tm, tn), jnp.float32)],
        compiler_params=pltpu.CompilerParams(
            dimension_semantics=("parallel", "parallel", "arbitrary"),
            vmem_limit_bytes=_VMEM_LIMIT),
    )(a, b)
    return out[:M, :N]


# ----------------------------------------------------------------------------
# IF neuron kernels (lane-dense).  v_threshold=1, hard reset to 0.
# Currents arrive in bf16, membrane state is f32, spikes leave as bf16 (0/1).
# ----------------------------------------------------------------------------

def _if_kernel(x_ref, spk_ref, v_ref):
    t = pl.program_id(1)

    @pl.when(t == 0)
    def _():
        v_ref[...] = jnp.zeros_like(v_ref)

    v = v_ref[...] + x_ref[0].astype(jnp.float32)            # charge
    fire = v >= 1.0                                           # fire
    v_ref[...] = jnp.where(fire, 0.0, v)                      # hard reset
    spk_ref[0] = fire.astype(spk_ref.dtype)


def _if_pool_kernel(x_ref, pooled_ref, v_ref):
    # Currents in 2x2-window parity-major layout: block (4, 1, rt, 128).
    # Spikes are 0/1, so MaxPool2d(2,2) == max over the 4 parity planes.
    t = pl.program_id(1)

    @pl.when(t == 0)
    def _():
        v_ref[...] = jnp.zeros_like(v_ref)

    v = v_ref[...] + x_ref[...][:, 0].astype(jnp.float32)     # (4, rt, 128)
    fire = v >= 1.0
    v_ref[...] = jnp.where(fire, 0.0, v)
    pooled_ref[0] = jnp.max(fire.astype(jnp.float32), axis=0).astype(pooled_ref.dtype)


def _if_mean_kernel(x_ref, fr_ref, v_ref, *, inv_t):
    # Head IF with the mean over T fused in (output block revisited across T).
    t = pl.program_id(1)

    @pl.when(t == 0)
    def _():
        v_ref[...] = jnp.zeros_like(v_ref)
        fr_ref[...] = jnp.zeros_like(fr_ref)

    v = v_ref[...] + x_ref[0].astype(jnp.float32)
    fire = v >= 1.0
    v_ref[...] = jnp.where(fire, 0.0, v)
    fr_ref[...] = fr_ref[...] + fire.astype(jnp.float32) * inv_t


def _pick_row_tile(R):
    """Row tile for the lane-dense IF kernels.  Prefers >=2 blocks (megacore);
    rows are padded up to a multiple of the tile (no whole-extent fallback)."""
    for rt in (512, 256, 128, 64, 32, 16, 8):
        if R >= 2 * rt:
            return rt
    return 8


def if_node(cur, T):
    """cur: [Tx, L] currents, Tx in {1, T}.  Returns spikes [T, L] (0/1 bf16)."""
    Tx, L = cur.shape
    R = _cdiv(L, _LANE)
    rt = _pick_row_tile(R)
    Rp = _round_up(R, rt)
    Lp = Rp * _LANE
    if Lp != L:
        cur = jnp.pad(cur, ((0, 0), (0, Lp - L)))
    x = cur.reshape(Tx, Rp, _LANE)
    xmap = (lambda r, t: (0, r, 0)) if Tx == 1 else (lambda r, t: (t, r, 0))

    spk = pl.pallas_call(
        _if_kernel,
        out_shape=jax.ShapeDtypeStruct((T, Rp, _LANE), jnp.bfloat16),
        grid=(Rp // rt, T),
        in_specs=[pl.BlockSpec((1, rt, _LANE), xmap)],
        out_specs=pl.BlockSpec((1, rt, _LANE), lambda r, t: (t, r, 0)),
        scratch_shapes=[pltpu.VMEM((rt, _LANE), jnp.float32)],
        compiler_params=pltpu.CompilerParams(
            dimension_semantics=("parallel", "arbitrary"),
            vmem_limit_bytes=_VMEM_LIMIT),
    )(x)
    return spk.reshape(T, Lp)[:, :L]


def if_pool_node(cur4, T):
    """cur4: [4, Tx, L] parity-major currents, Tx in {1, T}.
    Returns 2x2-max-pooled spikes [T, L] (0/1 bf16)."""
    P, Tx, L = cur4.shape
    R = _cdiv(L, _LANE)
    rt = _pick_row_tile(R)
    Rp = _round_up(R, rt)
    Lp = Rp * _LANE
    if Lp != L:
        cur4 = jnp.pad(cur4, ((0, 0), (0, 0), (0, Lp - L)))
    x = cur4.reshape(P, Tx, Rp, _LANE)
    xmap = (lambda r, t: (0, 0, r, 0)) if Tx == 1 else (lambda r, t: (0, t, r, 0))

    pooled = pl.pallas_call(
        _if_pool_kernel,
        out_shape=jax.ShapeDtypeStruct((T, Rp, _LANE), jnp.bfloat16),
        grid=(Rp // rt, T),
        in_specs=[pl.BlockSpec((P, 1, rt, _LANE), xmap)],
        out_specs=pl.BlockSpec((1, rt, _LANE), lambda r, t: (t, r, 0)),
        scratch_shapes=[pltpu.VMEM((P, rt, _LANE), jnp.float32)],
        compiler_params=pltpu.CompilerParams(
            dimension_semantics=("parallel", "arbitrary"),
            vmem_limit_bytes=_VMEM_LIMIT),
    )(x)
    return pooled.reshape(T, Lp)[:, :L]


def if_mean_node(cur, T):
    """cur: [T, L] currents -> firing rate (mean spikes over T) [L] f32."""
    Tx, L = cur.shape
    R = _cdiv(L, _LANE)
    rt = _pick_row_tile(R)
    Rp = _round_up(R, rt)
    Lp = Rp * _LANE
    if Lp != L:
        cur = jnp.pad(cur, ((0, 0), (0, Lp - L)))
    x = cur.reshape(Tx, Rp, _LANE)

    fr = pl.pallas_call(
        functools.partial(_if_mean_kernel, inv_t=1.0 / T),
        out_shape=jax.ShapeDtypeStruct((Rp, _LANE), jnp.float32),
        grid=(Rp // rt, T),
        in_specs=[pl.BlockSpec((1, rt, _LANE), lambda r, t: (t, r, 0))],
        out_specs=pl.BlockSpec((rt, _LANE), lambda r, t: (r, 0)),
        scratch_shapes=[pltpu.VMEM((rt, _LANE), jnp.float32)],
        compiler_params=pltpu.CompilerParams(
            dimension_semantics=("parallel", "arbitrary"),
            vmem_limit_bytes=_VMEM_LIMIT),
    )(x)
    return fr.reshape(Lp)[:L]


# ----------------------------------------------------------------------------
# Glue: parity-major layout, parameters, full forward
# ----------------------------------------------------------------------------

def to_parity_major(y):
    """y: [Tx, B, H, W, C] -> [4, Tx, B*(H//2)*(W//2)*C] (2x2-window parity major).
    # TODO(synk): emit parity-major directly from the conv kernel's output
    # index_map so this XLA transpose pass (one read+write of the currents)
    # disappears entirely."""
    Tx, B, H, W, C = y.shape
    y6 = y.reshape(Tx, B, H // 2, 2, W // 2, 2, C)
    y6 = jnp.transpose(y6, (3, 5, 0, 1, 2, 4, 6))   # [2, 2, Tx, B, H/2, W/2, C]
    return y6.reshape(4, Tx, B * (H // 2) * (W // 2) * C)


def init_params(key, C):
    ks = jax.random.split(key, 8)
    eps = 1e-5
    # torch-layout inits (Conv2d / Linear, bias=False everywhere)
    w1 = jax.random.normal(ks[0], (C, 1, 3, 3), jnp.float32) * (2.0 / 9) ** 0.5
    w2 = jax.random.normal(ks[1], (C, C, 3, 3), jnp.float32) * (2.0 / (9 * C)) ** 0.5
    fin1, fout1 = C * 7 * 7, C * 4 * 4
    wfc1 = jax.random.normal(ks[2], (fout1, fin1), jnp.float32) * (1.0 / fin1) ** 0.5
    wfc2 = jax.random.normal(ks[3], (10, fout1), jnp.float32) * (1.0 / fout1) ** 0.5
    gamma1 = 1.0 + 0.1 * jax.random.normal(ks[4], (C,), jnp.float32)
    beta1 = 0.1 * jax.random.normal(ks[5], (C,), jnp.float32)
    gamma2 = 1.0 + 0.1 * jax.random.normal(ks[6], (C,), jnp.float32)
    beta2 = 0.1 * jax.random.normal(ks[7], (C,), jnp.float32)

    # Eval-mode BN (running_mean=0, running_var=1) folded into conv weight + bias.
    inv_std = 1.0 / jnp.sqrt(1.0 + eps)
    scale1, scale2 = gamma1 * inv_std, gamma2 * inv_std
    w1_taps = (jnp.transpose(w1, (2, 3, 1, 0)) * scale1).reshape(9, 1, C)
    w2_taps = (jnp.transpose(w2, (2, 3, 1, 0)) * scale2).reshape(9, C, C)

    # FC1 rows permuted from torch (c,h,w) flatten order to our (h,w,c) layout.
    wfc1_hwc = jnp.transpose(wfc1.reshape(fout1, C, 7, 7),
                             (0, 2, 3, 1)).reshape(fout1, fin1)
    # FC2 padded to 128 output lanes (lane-dense stores); logits sliced at the end.
    wfc2_pad = jnp.pad(wfc2.T, ((0, 0), (0, _LANE - 10)))

    return {
        "w1": w1_taps.astype(jnp.float32),            # conv1: raw pixels -> f32
        "b1": beta1.reshape(1, C).astype(jnp.float32),
        "w2": w2_taps.astype(jnp.bfloat16),           # spike matmuls -> bf16
        "b2": beta2.reshape(1, C).astype(jnp.float32),
        "wfc1": wfc1_hwc.T.astype(jnp.bfloat16),      # [49C, 16C]
        "wfc2": wfc2_pad.astype(jnp.bfloat16),        # [16C, 128]
    }


@functools.partial(jax.jit, static_argnames=("T", "C"))
def csnn_forward(x, params, T, C):
    """x: [N, 1, 28, 28] (NCHW, like PyTorch) -> firing rates [N, 10] f32."""
    N = x.shape[0]
    x = jnp.transpose(x, (0, 2, 3, 1)).astype(jnp.float32)       # NHWC [N,28,28,1]

    # --- Conv1+BN (input identical across T -> computed once) -> IF1 + MaxPool ---
    y1 = conv3x3_bn(x, params["w1"], params["b1"])               # [N,28,28,C] bf16
    cur1 = to_parity_major(y1[None])                             # [4,1,N*14*14*C]
    p1 = if_pool_node(cur1, T).reshape(T * N, 14, 14, C)         # pooled spikes

    # --- Conv2+BN -> IF2 + MaxPool ---
    y2 = conv3x3_bn(p1, params["w2"], params["b2"])              # [TN,14,14,C]
    cur2 = to_parity_major(y2.reshape(T, N, 14, 14, C))          # [4,T,N*7*7*C]
    p2 = if_pool_node(cur2, T).reshape(T * N, 7 * 7 * C)         # [TN, 49C]

    # --- FC1 -> IF3 ---
    z1 = pallas_matmul(p2, params["wfc1"])                       # [TN, 16C] bf16
    s3 = if_node(z1.reshape(T, N * 4 * 4 * C), T)                # [T, N*16C]

    # --- FC2 (padded to 128 lanes) -> IF4 fused with mean over T ---
    z2 = pallas_matmul(s3.reshape(T * N, 4 * 4 * C), params["wfc2"])   # [TN, 128]
    fr = if_mean_node(z2.reshape(T, N * _LANE), T)               # [N*128] f32
    return fr.reshape(N, _LANE)[:, :10]


if __name__ == "__main__":
    T = 4          # time steps
    C = 4          # channels
    N = 2          # batch
    key = jax.random.PRNGKey(0)
    k_x, k_p = jax.random.split(key)
    # Fashion-MNIST-like input: NCHW; spatial fixed at 28 by the Linear layer.
    x = jax.random.uniform(k_x, (N, 1, 28, 28), jnp.float32)
    params = init_params(k_p, C)

    fr = csnn_forward(x, params, T=T, C=C)
    fr = jax.block_until_ready(fr)
    assert fr.shape == (N, 10) and fr.dtype == jnp.float32
    assert bool(jnp.all(jnp.isfinite(fr)))
    print("KERNEL_OK")
</pallas_src>

<mosaic_0001>
module attributes {stable_mosaic.version = 11 : i64} {
  func.func @_conv3x3_kernel(%arg0: i32, %arg1: memref<256x1xf32, #tpu.memory_space<vmem>>, %arg2: memref<256x1xf32, #tpu.memory_space<vmem>>, %arg3: memref<9x1x4xf32, #tpu.memory_space<vmem>>, %arg4: memref<1x4xf32, #tpu.memory_space<vmem>>, %arg5: memref<256x4xbf16, #tpu.memory_space<vmem>>) attributes {dimension_semantics = [#tpu.dimension_semantics<parallel>], iteration_bounds = array<i64: 8>, scalar_prefetch = 0 : i64, scratch_operands = 0 : i64, tpu.core_type = #tpu.core_type<tc>, window_params = [{transform_indices = @transform_0, window_bounds = array<i64: 256, 1>}, {transform_indices = @transform_1, window_bounds = array<i64: 256, 1>}, {pipeline_mode = #tpu.pipeline_mode<synchronous>, transform_indices = @transform_2, window_bounds = array<i64: 9, 1, 4>}, {pipeline_mode = #tpu.pipeline_mode<synchronous>, transform_indices = @transform_3, window_bounds = array<i64: 1, 4>}, {transform_indices = @transform_4, window_bounds = array<i64: 256, 4>}]} {
    %c0 = arith.constant 0 : index
    %c0_0 = arith.constant 0 : index
    %0 = vector.load %arg1[%c0, %c0_0] : memref<256x1xf32, #tpu.memory_space<vmem>>, vector<256x1xf32>
    %c0_1 = arith.constant 0 : index
    %c0_2 = arith.constant 0 : index
    %1 = vector.load %arg2[%c0_1, %c0_2] : memref<256x1xf32, #tpu.memory_space<vmem>>, vector<256x1xf32>
    %2 = tpu.concatenate %0, %1 in 0 : vector<256x1xf32>, vector<256x1xf32> -> vector<512x1xf32>
    %cst = arith.constant 0.000000e+00 : f32
    %3 = vector.broadcast %cst : f32 to vector<256x4xf32>
    %c0_3 = arith.constant 0 : index
    %c0_4 = arith.constant 0 : index
    %4 = vector.load %arg4[%c0_3, %c0_4] : memref<1x4xf32, #tpu.memory_space<vmem>>, vector<1x4xf32>
    %5 = vector.broadcast %4 : vector<1x4xf32> to vector<256x4xf32>
    %6 = arith.addf %3, %5 : vector<256x4xf32>
    %7 = vector.extract_strided_slice %2 {offsets = [0, 0], sizes = [256, 1], strides = [1, 1]} : vector<512x1xf32> to vector<256x1xf32>
    %c0_5 = arith.constant 0 : index
    %c0_6 = arith.constant 0 : index
    %c0_7 = arith.constant 0 : index
    %8 = vector.load %arg3[%c0_5, %c0_6, %c0_7] : memref<9x1x4xf32, #tpu.memory_space<vmem>>, vector<1x1x4xf32>
    %9 = vector.shape_cast %8 : vector<1x1x4xf32> to vector<1x4xf32>
    %10 = vector.broadcast %7 : vector<256x1xf32> to vector<256x4xf32>
    %11 = vector.broadcast %9 : vector<1x4xf32> to vector<256x4xf32>
    %12 = arith.mulf %10, %11 : vector<256x4xf32>
    %13 = arith.addf %6, %12 : vector<256x4xf32>
    %14 = vector.extract_strided_slice %2 {offsets = [1, 0], sizes = [256, 1], strides = [1, 1]} : vector<512x1xf32> to vector<256x1xf32>
    %c1 = arith.constant 1 : index
    %c0_8 = arith.constant 0 : index
    %c0_9 = arith.constant 0 : index
    %15 = vector.load %arg3[%c1, %c0_8, %c0_9] : memref<9x1x4xf32, #tpu.memory_space<vmem>>, vector<1x1x4xf32>
    %16 = vector.shape_cast %15 : vector<1x1x4xf32> to vector<1x4xf32>
    %17 = vector.broadcast %14 : vector<256x1xf32> to vector<256x4xf32>
    %18 = vector.broadcast %16 : vector<1x4xf32> to vector<256x4xf32>
    %19 = arith.mulf %17, %18 : vector<256x4xf32>
    %20 = arith.addf %13, %19 : vector<256x4xf32>
    %21 = vector.extract_strided_slice %2 {offsets = [2, 0], sizes = [256, 1], strides = [1, 1]} : vector<512x1xf32> to vector<256x1xf32>
    %c2 = arith.constant 2 : index
    %c0_10 = arith.constant 0 : index
    %c0_11 = arith.constant 0 : index
    %22 = vector.load %arg3[%c2, %c0_10, %c0_11] : memref<9x1x4xf32, #tpu.memory_space<vmem>>, vector<1x1x4xf32>
    %23 = vector.shape_cast %22 : vector<1x1x4xf32> to vector<1x4xf32>
    %24 = vector.broadcast %21 : vector<256x1xf32> to vector<256x4xf32>
    %25 = vector.broadcast %23 : vector<1x4xf32> to vector<256x4xf32>
    %26 = arith.mulf %24, %25 : vector<256x4xf32>
    %27 = arith.addf %20, %26 : vector<256x4xf32>
    %28 = vector.extract_strided_slice %2 {offsets = [30, 0], sizes = [256, 1], strides = [1, 1]} : vector<512x1xf32> to vector<256x1xf32>
    %c3 = arith.constant 3 : index
    %c0_12 = arith.constant 0 : index
    %c0_13 = arith.constant 0 : index
    %29 = vector.load %arg3[%c3, %c0_12, %c0_13] : memref<9x1x4xf32, #tpu.memory_space<vmem>>, vector<1x1x4xf32>
    %30 = vector.shape_cast %29 : vector<1x1x4xf32> to vector<1x4xf32>
    %31 = vector.broadcast %28 : vector<256x1xf32> to vector<256x4xf32>
    %32 = vector.broadcast %30 : vector<1x4xf32> to vector<256x4xf32>
    %33 = arith.mulf %31, %32 : vector<256x4xf32>
    %34 = arith.addf %27, %33 : vector<256x4xf32>
    %35 = vector.extract_strided_slice %2 {offsets = [31, 0], sizes = [256, 1], strides = [1, 1]} : vector<512x1xf32> to vector<256x1xf32>
    %c4 = arith.constant 4 : index
    %c0_14 = arith.constant 0 : index
    %c0_15 = arith.constant 0 : index
    %36 = vector.load %arg3[%c4, %c0_14, %c0_15] : memref<9x1x4xf32, #tpu.memory_space<vmem>>, vector<1x1x4xf32>
    %37 = vector.shape_cast %36 : vector<1x1x4xf32> to vector<1x4xf32>
    %38 = vector.broadcast %35 : vector<256x1xf32> to vector<256x4xf32>
    %39 = vector.broadcast %37 : vector<1x4xf32> to vector<256x4xf32>
    %40 = arith.mulf %38, %39 : vector<256x4xf32>
    %41 = arith.addf %34, %40 : vector<256x4xf32>
    %42 = vector.extract_strided_slice %2 {offsets = [32, 0], sizes = [256, 1], strides = [1, 1]} : vector<512x1xf32> to vector<256x1xf32>
    %c5 = arith.constant 5 : index
    %c0_16 = arith.constant 0 : index
    %c0_17 = arith.constant 0 : index
    %43 = vector.load %arg3[%c5, %c0_16, %c0_17] : memref<9x1x4xf32, #tpu.memory_space<vmem>>, vector<1x1x4xf32>
    %44 = vector.shape_cast %43 : vector<1x1x4xf32> to vector<1x4xf32>
    %45 = vector.broadcast %42 : vector<256x1xf32> to vector<256x4xf32>
    %46 = vector.broadcast %44 : vector<1x4xf32> to vector<256x4xf32>
    %47 = arith.mulf %45, %46 : vector<256x4xf32>
    %48 = arith.addf %41, %47 : vector<256x4xf32>
    %49 = vector.extract_strided_slice %2 {offsets = [60, 0], sizes = [256, 1], strides = [1, 1]} : vector<512x1xf32> to vector<256x1xf32>
    %c6 = arith.constant 6 : index
    %c0_18 = arith.constant 0 : index
    %c0_19 = arith.constant 0 : index
    %50 = vector.load %arg3[%c6, %c0_18, %c0_19] : memref<9x1x4xf32, #tpu.memory_space<vmem>>, vector<1x1x4xf32>
    %51 = vector.shape_cast %50 : vector<1x1x4xf32> to vector<1x4xf32>
    %52 = vector.broadcast %49 : vector<256x1xf32> to vector<256x4xf32>
    %53 = vector.broadcast %51 : vector<1x4xf32> to vector<256x4xf32>
    %54 = arith.mulf %52, %53 : vector<256x4xf32>
    %55 = arith.addf %48, %54 : vector<256x4xf32>
    %56 = vector.extract_strided_slice %2 {offsets = [61, 0], sizes = [256, 1], strides = [1, 1]} : vector<512x1xf32> to vector<256x1xf32>
    %c7 = arith.constant 7 : index
    %c0_20 = arith.constant 0 : index
    %c0_21 = arith.constant 0 : index
    %57 = vector.load %arg3[%c7, %c0_20, %c0_21] : memref<9x1x4xf32, #tpu.memory_space<vmem>>, vector<1x1x4xf32>
    %58 = vector.shape_cast %57 : vector<1x1x4xf32> to vector<1x4xf32>
    %59 = vector.broadcast %56 : vector<256x1xf32> to vector<256x4xf32>
    %60 = vector.broadcast %58 : vector<1x4xf32> to vector<256x4xf32>
    %61 = arith.mulf %59, %60 : vector<256x4xf32>
    %62 = arith.addf %55, %61 : vector<256x4xf32>
    %63 = vector.extract_strided_slice %2 {offsets = [62, 0], sizes = [256, 1], strides = [1, 1]} : vector<512x1xf32> to vector<256x1xf32>
    %c8 = arith.constant 8 : index
    %c0_22 = arith.constant 0 : index
    %c0_23 = arith.constant 0 : index
    %64 = vector.load %arg3[%c8, %c0_22, %c0_23] : memref<9x1x4xf32, #tpu.memory_space<vmem>>, vector<1x1x4xf32>
    %65 = vector.shape_cast %64 : vector<1x1x4xf32> to vector<1x4xf32>
    %66 = vector.broadcast %63 : vector<256x1xf32> to vector<256x4xf32>
    %67 = vector.broadcast %65 : vector<1x4xf32> to vector<256x4xf32>
    %68 = arith.mulf %66, %67 : vector<256x4xf32>
    %69 = arith.addf %62, %68 : vector<256x4xf32>
    %70 = arith.truncf %69 : vector<256x4xf32> to vector<256x4xbf16>
    %c0_24 = arith.constant 0 : index
    %c0_25 = arith.constant 0 : index
    %71 = vector.load %arg5[%c0_24, %c0_25] : memref<256x4xbf16, #tpu.memory_space<vmem>>, vector<256x4xbf16>
    tpu.vector_store %arg5[%c0_24, %c0_25], %70 {strides = array<i32>} : memref<256x4xbf16, #tpu.memory_space<vmem>>, vector<256x4xbf16>,
    return
  }
  func.func @transform_0(%arg0: i32) -> (i32, i32) {
    %c0_i32 = arith.constant 0 : i32
    %c0_i32_0 = arith.constant 0 : i32
    return %arg0, %c0_i32 : i32, i32
  }
  func.func @transform_1(%arg0: i32) -> (i32, i32) {
    %c1_i32 = arith.constant 1 : i32
    %0 = arith.addi %arg0, %c1_i32 : i32
    %c0_i32 = arith.constant 0 : i32
    %c0_i32_0 = arith.constant 0 : i32
    return %0, %c0_i32 : i32, i32
  }
  func.func @transform_2(%arg0: i32) -> (i32, i32, i32) {
    %c0_i32 = arith.constant 0 : i32
    %c0_i32_0 = arith.constant 0 : i32
    %c0_i32_1 = arith.constant 0 : i32
    %c0_i32_2 = arith.constant 0 : i32
    return %c0_i32, %c0_i32_0, %c0_i32_1 : i32, i32, i32
  }
  func.func @transform_3(%arg0: i32) -> (i32, i32) {
    %c0_i32 = arith.constant 0 : i32
    %c0_i32_0 = arith.constant 0 : i32
    %c0_i32_1 = arith.constant 0 : i32
    return %c0_i32, %c0_i32_0 : i32, i32
  }
  func.func @transform_4(%arg0: i32) -> (i32, i32) {
    %c0_i32 = arith.constant 0 : i32
    %c0_i32_0 = arith.constant 0 : i32
    return %arg0, %c0_i32 : i32, i32
  }
}

module attributes {stable_mosaic.version = 11 : i64} {
  func.func @_if_pool_kernel(%arg0: i32, %arg1: i32, %arg2: memref<4x1x8x128xbf16, #tpu.memory_space<vmem>>, %arg3: memref<1x8x128xbf16, #tpu.memory_space<vmem>>, %arg4: memref<4x8x128xf32, #tpu.memory_space<vmem>>) attributes {dimension_semantics = [#tpu.dimension_semantics<parallel>, #tpu.dimension_semantics<arbitrary>], iteration_bounds = array<i64: 2, 4>, scalar_prefetch = 0 : i64, scratch_operands = 1 : i64, tpu.core_type = #tpu.core_type<tc>, window_params = [{transform_indices = @transform_0, window_bounds = array<i64: 4, 1, 8, 128>}, {transform_indices = @transform_1, window_bounds = array<i64: 1, 8, 128>}]} {
    %c0_i32 = arith.constant 0 : i32
    %0 = arith.cmpi eq, %arg1, %c0_i32 : i32
    %1 = arith.extui %0 : i1 to i32
    %c0_i32_0 = arith.constant 0 : i32
    %2 = arith.cmpi ne, %1, %c0_i32_0 : i32
    scf.if %2 {
      %cst_15 = arith.constant 0.000000e+00 : f32
      %20 = vector.broadcast %cst_15 : f32 to vector<4x8x128xf32>
      %c0_16 = arith.constant 0 : index
      %c0_17 = arith.constant 0 : index
      %c0_18 = arith.constant 0 : index
      %21 = vector.load %arg4[%c0_16, %c0_17, %c0_18] : memref<4x8x128xf32, #tpu.memory_space<vmem>>, vector<4x8x128xf32>
      tpu.vector_store %arg4[%c0_16, %c0_17, %c0_18], %20 {strides = array<i32>} : memref<4x8x128xf32, #tpu.memory_space<vmem>>, vector<4x8x128xf32>,
    } else {
    }
    %c0 = arith.constant 0 : index
    %c0_1 = arith.constant 0 : index
    %c0_2 = arith.constant 0 : index
    %3 = vector.load %arg4[%c0, %c0_1, %c0_2] : memref<4x8x128xf32, #tpu.memory_space<vmem>>, vector<4x8x128xf32>
    %c0_3 = arith.constant 0 : index
    %c0_4 = arith.constant 0 : index
    %c0_5 = arith.constant 0 : index
    %c0_6 = arith.constant 0 : index
    %4 = vector.load %arg2[%c0_3, %c0_4, %c0_5, %c0_6] : memref<4x1x8x128xbf16, #tpu.memory_space<vmem>>, vector<4x1x8x128xbf16>
    %5 = vector.shape_cast %4 : vector<4x1x8x128xbf16> to vector<4x8x128xbf16>
    %6 = arith.extf %5 : vector<4x8x128xbf16> to vector<4x8x128xf32>
    %7 = arith.addf %3, %6 : vector<4x8x128xf32>
    %cst = arith.constant 1.000000e+00 : f32
    %8 = vector.broadcast %cst : f32 to vector<4x8x128xf32>
    %9 = arith.cmpf oge, %7, %8 : vector<4x8x128xf32>
    %cst_7 = arith.constant 0.000000e+00 : f32
    %10 = vector.broadcast %cst_7 : f32 to vector<4x8x128xf32>
    %11 = arith.select %9, %10, %7 : vector<4x8x128xi1>, vector<4x8x128xf32>
    %c0_8 = arith.constant 0 : index
    %c0_9 = arith.constant 0 : index
    %c0_10 = arith.constant 0 : index
    %12 = vector.load %arg4[%c0_8, %c0_9, %c0_10] : memref<4x8x128xf32, #tpu.memory_space<vmem>>, vector<4x8x128xf32>
    tpu.vector_store %arg4[%c0_8, %c0_9, %c0_10], %11 {strides = array<i32>} : memref<4x8x128xf32, #tpu.memory_space<vmem>>, vector<4x8x128xf32>,
    %13 = arith.extui %9 : vector<4x8x128xi1> to vector<4x8x128xi32>
    %14 = arith.sitofp %13 : vector<4x8x128xi32> to vector<4x8x128xf32>
    %cst_11 = arith.constant dense<0xFF800000> : vector<8x128xf32>
    %15 = vector.multi_reduction <maximumf>, %14, %cst_11 [0] : vector<4x8x128xf32> to vector<8x128xf32>
    %16 = arith.truncf %15 : vector<8x128xf32> to vector<8x128xbf16>
    %c0_12 = arith.constant 0 : index
    %c0_13 = arith.constant 0 : index
    %c0_14 = arith.constant 0 : index
    %17 = vector.load %arg3[%c0_12, %c0_13, %c0_14] : memref<1x8x128xbf16, #tpu.memory_space<vmem>>, vector<1x8x128xbf16>
    %18 = vector.shape_cast %17 : vector<1x8x128xbf16> to vector<8x128xbf16>
    %19 = vector.shape_cast %16 : vector<8x128xbf16> to vector<1x8x128xbf16>
    tpu.vector_store %arg3[%c0_12, %c0_13, %c0_14], %19 {strides = array<i32>} : memref<1x8x128xbf16, #tpu.memory_space<vmem>>, vector<1x8x128xbf16>,
    return
  }
  func.func @transform_0(%arg0: i32, %arg1: i32) -> (i32, i32, i32, i32) {
    %c0_i32 = arith.constant 0 : i32
    %c0_i32_0 = arith.constant 0 : i32
    %c0_i32_1 = arith.constant 0 : i32
    %c0_i32_2 = arith.constant 0 : i32
    return %c0_i32, %c0_i32_0, %arg0, %c0_i32_1 : i32, i32, i32, i32
  }
  func.func @transform_1(%arg0: i32, %arg1: i32) -> (i32, i32, i32) {
    %c0_i32 = arith.constant 0 : i32
    %c0_i32_0 = arith.constant 0 : i32
    return %arg1, %arg0, %c0_i32 : i32, i32, i32
  }
}

module attributes {stable_mosaic.version = 11 : i64} {
  func.func @_conv3x3_kernel(%arg0: i32, %arg1: memref<256x4xbf16, #tpu.memory_space<vmem>>, %arg2: memref<256x4xbf16, #tpu.memory_space<vmem>>, %arg3: memref<9x4x4xbf16, #tpu.memory_space<vmem>>, %arg4: memref<1x4xf32, #tpu.memory_space<vmem>>, %arg5: memref<256x4xbf16, #tpu.memory_space<vmem>>) attributes {dimension_semantics = [#tpu.dimension_semantics<parallel>], iteration_bounds = array<i64: 8>, scalar_prefetch = 0 : i64, scratch_operands = 0 : i64, tpu.core_type = #tpu.core_type<tc>, window_params = [{transform_indices = @transform_0, window_bounds = array<i64: 256, 4>}, {transform_indices = @transform_1, window_bounds = array<i64: 256, 4>}, {pipeline_mode = #tpu.pipeline_mode<synchronous>, transform_indices = @transform_2, window_bounds = array<i64: 9, 4, 4>}, {pipeline_mode = #tpu.pipeline_mode<synchronous>, transform_indices = @transform_3, window_bounds = array<i64: 1, 4>}, {transform_indices = @transform_4, window_bounds = array<i64: 256, 4>}]} {
    %c0 = arith.constant 0 : index
    %c0_0 = arith.constant 0 : index
    %0 = vector.load %arg1[%c0, %c0_0] : memref<256x4xbf16, #tpu.memory_space<vmem>>, vector<256x4xbf16>
    %c0_1 = arith.constant 0 : index
    %c0_2 = arith.constant 0 : index
    %1 = vector.load %arg2[%c0_1, %c0_2] : memref<256x4xbf16, #tpu.memory_space<vmem>>, vector<256x4xbf16>
    %2 = tpu.concatenate %0, %1 in 0 : vector<256x4xbf16>, vector<256x4xbf16> -> vector<512x4xbf16>
    %cst = arith.constant 0.000000e+00 : f32
    %3 = vector.broadcast %cst : f32 to vector<256x4xf32>
    %c0_3 = arith.constant 0 : index
    %c0_4 = arith.constant 0 : index
    %4 = vector.load %arg4[%c0_3, %c0_4] : memref<1x4xf32, #tpu.memory_space<vmem>>, vector<1x4xf32>
    %5 = vector.broadcast %4 : vector<1x4xf32> to vector<256x4xf32>
    %6 = arith.addf %3, %5 : vector<256x4xf32>
    %7 = vector.extract_strided_slice %2 {offsets = [0, 0], sizes = [256, 4], strides = [1, 1]} : vector<512x4xbf16> to vector<256x4xbf16>
    %c0_5 = arith.constant 0 : index
    %c0_6 = arith.constant 0 : index
    %c0_7 = arith.constant 0 : index
    %8 = vector.load %arg3[%c0_5, %c0_6, %c0_7] : memref<9x4x4xbf16, #tpu.memory_space<vmem>>, vector<1x4x4xbf16>
    %9 = vector.shape_cast %8 : vector<1x4x4xbf16> to vector<4x4xbf16>
    %cst_8 = arith.constant dense<0.000000e+00> : vector<256x4xf32>
    %10 = tpu.matmul %7, %9, %cst_8 {dimension_numbers = #tpu.dot_dimension_numbers<[1], [0], [0], [1], [0, 0, 1, 1], [], []>} : vector<256x4xbf16>, vector<4x4xbf16>, vector<256x4xf32> -> vector<256x4xf32>
    %11 = arith.addf %6, %10 : vector<256x4xf32>
    %12 = vector.extract_strided_slice %2 {offsets = [1, 0], sizes = [256, 4], strides = [1, 1]} : vector<512x4xbf16> to vector<256x4xbf16>
    %c1 = arith.constant 1 : index
    %c0_9 = arith.constant 0 : index
    %c0_10 = arith.constant 0 : index
    %13 = vector.load %arg3[%c1, %c0_9, %c0_10] : memref<9x4x4xbf16, #tpu.memory_space<vmem>>, vector<1x4x4xbf16>
    %14 = vector.shape_cast %13 : vector<1x4x4xbf16> to vector<4x4xbf16>
    %cst_11 = arith.constant dense<0.000000e+00> : vector<256x4xf32>
    %15 = tpu.matmul %12, %14, %cst_11 {dimension_numbers = #tpu.dot_dimension_numbers<[1], [0], [0], [1], [0, 0, 1, 1], [], []>} : vector<256x4xbf16>, vector<4x4xbf16>, vector<256x4xf32> -> vector<256x4xf32>
    %16 = arith.addf %11, %15 : vector<256x4xf32>
    %17 = vector.extract_strided_slice %2 {offsets = [2, 0], sizes = [256, 4], strides = [1, 1]} : vector<512x4xbf16> to vector<256x4xbf16>
    %c2 = arith.constant 2 : index
    %c0_12 = arith.constant 0 : index
    %c0_13 = arith.constant 0 : index
    %18 = vector.load %arg3[%c2, %c0_12, %c0_13] : memref<9x4x4xbf16, #tpu.memory_space<vmem>>, vector<1x4x4xbf16>
    %19 = vector.shape_cast %18 : vector<1x4x4xbf16> to vector<4x4xbf16>
    %cst_14 = arith.constant dense<0.000000e+00> : vector<256x4xf32>
    %20 = tpu.matmul %17, %19, %cst_14 {dimension_numbers = #tpu.dot_dimension_numbers<[1], [0], [0], [1], [0, 0, 1, 1], [], []>} : vector<256x4xbf16>, vector<4x4xbf16>, vector<256x4xf32> -> vector<256x4xf32>
    %21 = arith.addf %16, %20 : vector<256x4xf32>
    %22 = vector.extract_strided_slice %2 {offsets = [16, 0], sizes = [256, 4], strides = [1, 1]} : vector<512x4xbf16> to vector<256x4xbf16>
    %c3 = arith.constant 3 : index
    %c0_15 = arith.constant 0 : index
    %c0_16 = arith.constant 0 : index
    %23 = vector.load %arg3[%c3, %c0_15, %c0_16] : memref<9x4x4xbf16, #tpu.memory_space<vmem>>, vector<1x4x4xbf16>
    %24 = vector.shape_cast %23 : vector<1x4x4xbf16> to vector<4x4xbf16>
    %cst_17 = arith.constant dense<0.000000e+00> : vector<256x4xf32>
    %25 = tpu.matmul %22, %24, %cst_17 {dimension_numbers = #tpu.dot_dimension_numbers<[1], [0], [0], [1], [0, 0, 1, 1], [], []>} : vector<256x4xbf16>, vector<4x4xbf16>, vector<256x4xf32> -> vector<256x4xf32>
    %26 = arith.addf %21, %25 : vector<256x4xf32>
    %27 = vector.extract_strided_slice %2 {offsets = [17, 0], sizes = [256, 4], strides = [1, 1]} : vector<512x4xbf16> to vector<256x4xbf16>
    %c4 = arith.constant 4 : index
    %c0_18 = arith.constant 0 : index
    %c0_19 = arith.constant 0 : index
    %28 = vector.load %arg3[%c4, %c0_18, %c0_19] : memref<9x4x4xbf16, #tpu.memory_space<vmem>>, vector<1x4x4xbf16>
    %29 = vector.shape_cast %28 : vector<1x4x4xbf16> to vector<4x4xbf16>
    %cst_20 = arith.constant dense<0.000000e+00> : vector<256x4xf32>
    %30 = tpu.matmul %27, %29, %cst_20 {dimension_numbers = #tpu.dot_dimension_numbers<[1], [0], [0], [1], [0, 0, 1, 1], [], []>} : vector<256x4xbf16>, vector<4x4xbf16>, vector<256x4xf32> -> vector<256x4xf32>
    %31 = arith.addf %26, %30 : vector<256x4xf32>
    %32 = vector.extract_strided_slice %2 {offsets = [18, 0], sizes = [256, 4], strides = [1, 1]} : vector<512x4xbf16> to vector<256x4xbf16>
    %c5 = arith.constant 5 : index
    %c0_21 = arith.constant 0 : index
    %c0_22 = arith.constant 0 : index
    %33 = vector.load %arg3[%c5, %c0_21, %c0_22] : memref<9x4x4xbf16, #tpu.memory_space<vmem>>, vector<1x4x4xbf16>
    %34 = vector.shape_cast %33 : vector<1x4x4xbf16> to vector<4x4xbf16>
    %cst_23 = arith.constant dense<0.000000e+00> : vector<256x4xf32>
    %35 = tpu.matmul %32, %34, %cst_23 {dimension_numbers = #tpu.dot_dimension_numbers<[1], [0], [0], [1], [0, 0, 1, 1], [], []>} : vector<256x4xbf16>, vector<4x4xbf16>, vector<256x4xf32> -> vector<256x4xf32>
    %36 = arith.addf %31, %35 : vector<256x4xf32>
    %37 = vector.extract_strided_slice %2 {offsets = [32, 0], sizes = [256, 4], strides = [1, 1]} : vector<512x4xbf16> to vector<256x4xbf16>
    %c6 = arith.constant 6 : index
    %c0_24 = arith.constant 0 : index
    %c0_25 = arith.constant 0 : index
    %38 = vector.load %arg3[%c6, %c0_24, %c0_25] : memref<9x4x4xbf16, #tpu.memory_space<vmem>>, vector<1x4x4xbf16>
    %39 = vector.shape_cast %38 : vector<1x4x4xbf16> to vector<4x4xbf16>
    %cst_26 = arith.constant dense<0.000000e+00> : vector<256x4xf32>
    %40 = tpu.matmul %37, %39, %cst_26 {dimension_numbers = #tpu.dot_dimension_numbers<[1], [0], [0], [1], [0, 0, 1, 1], [], []>} : vector<256x4xbf16>, vector<4x4xbf16>, vector<256x4xf32> -> vector<256x4xf32>
    %41 = arith.addf %36, %40 : vector<256x4xf32>
    %42 = vector.extract_strided_slice %2 {offsets = [33, 0], sizes = [256, 4], strides = [1, 1]} : vector<512x4xbf16> to vector<256x4xbf16>
    %c7 = arith.constant 7 : index
    %c0_27 = arith.constant 0 : index
    %c0_28 = arith.constant 0 : index
    %43 = vector.load %arg3[%c7, %c0_27, %c0_28] : memref<9x4x4xbf16, #tpu.memory_space<vmem>>, vector<1x4x4xbf16>
    %44 = vector.shape_cast %43 : vector<1x4x4xbf16> to vector<4x4xbf16>
    %cst_29 = arith.constant dense<0.000000e+00> : vector<256x4xf32>
    %45 = tpu.matmul %42, %44, %cst_29 {dimension_numbers = #tpu.dot_dimension_numbers<[1], [0], [0], [1], [0, 0, 1, 1], [], []>} : vector<256x4xbf16>, vector<4x4xbf16>, vector<256x4xf32> -> vector<256x4xf32>
    %46 = arith.addf %41, %45 : vector<256x4xf32>
    %47 = vector.extract_strided_slice %2 {offsets = [34, 0], sizes = [256, 4], strides = [1, 1]} : vector<512x4xbf16> to vector<256x4xbf16>
    %c8 = arith.constant 8 : index
    %c0_30 = arith.constant 0 : index
    %c0_31 = arith.constant 0 : index
    %48 = vector.load %arg3[%c8, %c0_30, %c0_31] : memref<9x4x4xbf16, #tpu.memory_space<vmem>>, vector<1x4x4xbf16>
    %49 = vector.shape_cast %48 : vector<1x4x4xbf16> to vector<4x4xbf16>
    %cst_32 = arith.constant dense<0.000000e+00> : vector<256x4xf32>
    %50 = tpu.matmul %47, %49, %cst_32 {dimension_numbers = #tpu.dot_dimension_numbers<[1], [0], [0], [1], [0, 0, 1, 1], [], []>} : vector<256x4xbf16>, vector<4x4xbf16>, vector<256x4xf32> -> vector<256x4xf32>
    %51 = arith.addf %46, %50 : vector<256x4xf32>
    %52 = arith.truncf %51 : vector<256x4xf32> to vector<256x4xbf16>
    %c0_33 = arith.constant 0 : index
    %c0_34 = arith.constant 0 : index
    %53 = vector.load %arg5[%c0_33, %c0_34] : memref<256x4xbf16, #tpu.memory_space<vmem>>, vector<256x4xbf16>
    tpu.vector_store %arg5[%c0_33, %c0_34], %52 {strides = array<i32>} : memref<256x4xbf16, #tpu.memory_space<vmem>>, vector<256x4xbf16>,
    return
  }
  func.func @transform_0(%arg0: i32) -> (i32, i32) {
    %c0_i32 = arith.constant 0 : i32
    %c0_i32_0 = arith.constant 0 : i32
    return %arg0, %c0_i32 : i32, i32
  }
  func.func @transform_1(%arg0: i32) -> (i32, i32) {
    %c1_i32 = arith.constant 1 : i32
    %0 = arith.addi %arg0, %c1_i32 : i32
    %c0_i32 = arith.constant 0 : i32
    %c0_i32_0 = arith.constant 0 : i32
    return %0, %c0_i32 : i32, i32
  }
  func.func @transform_2(%arg0: i32) -> (i32, i32, i32) {
    %c0_i32 = arith.constant 0 : i32
    %c0_i32_0 = arith.constant 0 : i32
    %c0_i32_1 = arith.constant 0 : i32
    %c0_i32_2 = arith.constant 0 : i32
    return %c0_i32, %c0_i32_0, %c0_i32_1 : i32, i32, i32
  }
  func.func @transform_3(%arg0: i32) -> (i32, i32) {
    %c0_i32 = arith.constant 0 : i32
    %c0_i32_0 = arith.constant 0 : i32
    %c0_i32_1 = arith.constant 0 : i32
    return %c0_i32, %c0_i32_0 : i32, i32
  }
  func.func @transform_4(%arg0: i32) -> (i32, i32) {
    %c0_i32 = arith.constant 0 : i32
    %c0_i32_0 = arith.constant 0 : i32
    return %arg0, %c0_i32 : i32, i32
  }
}

module attributes {stable_mosaic.version = 11 : i64} {
  func.func @_if_pool_kernel(%arg0: i32, %arg1: i32, %arg2: memref<4x1x8x128xbf16, #tpu.memory_space<vmem>>, %arg3: memref<1x8x128xbf16, #tpu.memory_space<vmem>>, %arg4: memref<4x8x128xf32, #tpu.memory_space<vmem>>) attributes {dimension_semantics = [#tpu.dimension_semantics<parallel>, #tpu.dimension_semantics<arbitrary>], iteration_bounds = array<i64: 1, 4>, scalar_prefetch = 0 : i64, scratch_operands = 1 : i64, tpu.core_type = #tpu.core_type<tc>, window_params = [{transform_indices = @transform_0, window_bounds = array<i64: 4, 1, 8, 128>}, {transform_indices = @transform_1, window_bounds = array<i64: 1, 8, 128>}]} {
    %c0_i32 = arith.constant 0 : i32
    %0 = arith.cmpi eq, %arg1, %c0_i32 : i32
    %1 = arith.extui %0 : i1 to i32
    %c0_i32_0 = arith.constant 0 : i32
    %2 = arith.cmpi ne, %1, %c0_i32_0 : i32
    scf.if %2 {
      %cst_15 = arith.constant 0.000000e+00 : f32
      %20 = vector.broadcast %cst_15 : f32 to vector<4x8x128xf32>
      %c0_16 = arith.constant 0 : index
      %c0_17 = arith.constant 0 : index
      %c0_18 = arith.constant 0 : index
      %21 = vector.load %arg4[%c0_16, %c0_17, %c0_18] : memref<4x8x128xf32, #tpu.memory_space<vmem>>, vector<4x8x128xf32>
      tpu.vector_store %arg4[%c0_16, %c0_17, %c0_18], %20 {strides = array<i32>} : memref<4x8x128xf32, #tpu.memory_space<vmem>>, vector<4x8x128xf32>,
    } else {
    }
    %c0 = arith.constant 0 : index
    %c0_1 = arith.constant 0 : index
    %c0_2 = arith.constant 0 : index
    %3 = vector.load %arg4[%c0, %c0_1, %c0_2] : memref<4x8x128xf32, #tpu.memory_space<vmem>>, vector<4x8x128xf32>
    %c0_3 = arith.constant 0 : index
    %c0_4 = arith.constant 0 : index
    %c0_5 = arith.constant 0 : index
    %c0_6 = arith.constant 0 : index
    %4 = vector.load %arg2[%c0_3, %c0_4, %c0_5, %c0_6] : memref<4x1x8x128xbf16, #tpu.memory_space<vmem>>, vector<4x1x8x128xbf16>
    %5 = vector.shape_cast %4 : vector<4x1x8x128xbf16> to vector<4x8x128xbf16>
    %6 = arith.extf %5 : vector<4x8x128xbf16> to vector<4x8x128xf32>
    %7 = arith.addf %3, %6 : vector<4x8x128xf32>
    %cst = arith.constant 1.000000e+00 : f32
    %8 = vector.broadcast %cst : f32 to vector<4x8x128xf32>
    %9 = arith.cmpf oge, %7, %8 : vector<4x8x128xf32>
    %cst_7 = arith.constant 0.000000e+00 : f32
    %10 = vector.broadcast %cst_7 : f32 to vector<4x8x128xf32>
    %11 = arith.select %9, %10, %7 : vector<4x8x128xi1>, vector<4x8x128xf32>
    %c0_8 = arith.constant 0 : index
    %c0_9 = arith.constant 0 : index
    %c0_10 = arith.constant 0 : index
    %12 = vector.load %arg4[%c0_8, %c0_9, %c0_10] : memref<4x8x128xf32, #tpu.memory_space<vmem>>, vector<4x8x128xf32>
    tpu.vector_store %arg4[%c0_8, %c0_9, %c0_10], %11 {strides = array<i32>} : memref<4x8x128xf32, #tpu.memory_space<vmem>>, vector<4x8x128xf32>,
    %13 = arith.extui %9 : vector<4x8x128xi1> to vector<4x8x128xi32>
    %14 = arith.sitofp %13 : vector<4x8x128xi32> to vector<4x8x128xf32>
    %cst_11 = arith.constant dense<0xFF800000> : vector<8x128xf32>
    %15 = vector.multi_reduction <maximumf>, %14, %cst_11 [0] : vector<4x8x128xf32> to vector<8x128xf32>
    %16 = arith.truncf %15 : vector<8x128xf32> to vector<8x128xbf16>
    %c0_12 = arith.constant 0 : index
    %c0_13 = arith.constant 0 : index
    %c0_14 = arith.constant 0 : index
    %17 = vector.load %arg3[%c0_12, %c0_13, %c0_14] : memref<1x8x128xbf16, #tpu.memory_space<vmem>>, vector<1x8x128xbf16>
    %18 = vector.shape_cast %17 : vector<1x8x128xbf16> to vector<8x128xbf16>
    %19 = vector.shape_cast %16 : vector<8x128xbf16> to vector<1x8x128xbf16>
    tpu.vector_store %arg3[%c0_12, %c0_13, %c0_14], %19 {strides = array<i32>} : memref<1x8x128xbf16, #tpu.memory_space<vmem>>, vector<1x8x128xbf16>,
    return
  }
  func.func @transform_0(%arg0: i32, %arg1: i32) -> (i32, i32, i32, i32) {
    %c0_i32 = arith.constant 0 : i32
    %c0_i32_0 = arith.constant 0 : i32
    %c0_i32_1 = arith.constant 0 : i32
    return %c0_i32, %arg1, %arg0, %c0_i32_0 : i32, i32, i32, i32
  }
  func.func @transform_1(%arg0: i32, %arg1: i32) -> (i32, i32, i32) {
    %c0_i32 = arith.constant 0 : i32
    %c0_i32_0 = arith.constant 0 : i32
    return %arg1, %arg0, %c0_i32 : i32, i32, i32
  }
}

module attributes {stable_mosaic.version = 11 : i64} {
  func.func @_matmul_kernel(%arg0: i32, %arg1: i32, %arg2: i32, %arg3: memref<8x256xbf16, #tpu.memory_space<vmem>>, %arg4: memref<256x128xbf16, #tpu.memory_space<vmem>>, %arg5: memref<8x128xbf16, #tpu.memory_space<vmem>>, %arg6: memref<8x128xf32, #tpu.memory_space<vmem>>) attributes {dimension_semantics = [#tpu.dimension_semantics<parallel>, #tpu.dimension_semantics<parallel>, #tpu.dimension_semantics<arbitrary>], iteration_bounds = array<i64: 1, 1, 1>, scalar_prefetch = 0 : i64, scratch_operands = 1 : i64, tpu.core_type = #tpu.core_type<tc>, window_params = [{transform_indices = @transform_0, window_bounds = array<i64: 8, 256>}, {transform_indices = @transform_1, window_bounds = array<i64: 256, 128>}, {transform_indices = @transform_2, window_bounds = array<i64: 8, 128>}]} {
    %c0_i32 = arith.constant 0 : i32
    %0 = arith.cmpi eq, %arg2, %c0_i32 : i32
    %1 = arith.extui %0 : i1 to i32
    %c0_i32_0 = arith.constant 0 : i32
    %2 = arith.cmpi ne, %1, %c0_i32_0 : i32
    scf.if %2 {
      %cst_10 = arith.constant 0.000000e+00 : f32
      %12 = vector.broadcast %cst_10 : f32 to vector<8x128xf32>
      %c0_11 = arith.constant 0 : index
      %c0_12 = arith.constant 0 : index
      %13 = vector.load %arg6[%c0_11, %c0_12] : memref<8x128xf32, #tpu.memory_space<vmem>>, vector<8x128xf32>
      tpu.vector_store %arg6[%c0_11, %c0_12], %12 {strides = array<i32>} : memref<8x128xf32, #tpu.memory_space<vmem>>, vector<8x128xf32>,
    } else {
    }
    %c0 = arith.constant 0 : index
    %c0_1 = arith.constant 0 : index
    %3 = vector.load %arg6[%c0, %c0_1] : memref<8x128xf32, #tpu.memory_space<vmem>>, vector<8x128xf32>
    %c0_2 = arith.constant 0 : index
    %c0_3 = arith.constant 0 : index
    %4 = vector.load %arg3[%c0_2, %c0_3] : memref<8x256xbf16, #tpu.memory_space<vmem>>, vector<8x256xbf16>
    %c0_4 = arith.constant 0 : index
    %c0_5 = arith.constant 0 : index
    %5 = vector.load %arg4[%c0_4, %c0_5] : memref<256x128xbf16, #tpu.memory_space<vmem>>, vector<256x128xbf16>
    %cst = arith.constant dense<0.000000e+00> : vector<8x128xf32>
    %6 = tpu.matmul %4, %5, %cst {dimension_numbers = #tpu.dot_dimension_numbers<[1], [0], [0], [1], [0, 0, 1, 1], [], []>} : vector<8x256xbf16>, vector<256x128xbf16>, vector<8x128xf32> -> vector<8x128xf32>
    %7 = arith.addf %3, %6 : vector<8x128xf32>
    %c0_6 = arith.constant 0 : index
    %c0_7 = arith.constant 0 : index
    %8 = vector.load %arg6[%c0_6, %c0_7] : memref<8x128xf32, #tpu.memory_space<vmem>>, vector<8x128xf32>
    tpu.vector_store %arg6[%c0_6, %c0_7], %7 {strides = array<i32>} : memref<8x128xf32, #tpu.memory_space<vmem>>, vector<8x128xf32>,
    %c0_i32_8 = arith.constant 0 : i32
    %9 = arith.cmpi eq, %arg2, %c0_i32_8 : i32
    %10 = arith.extui %9 : i1 to i32
    %c0_i32_9 = arith.constant 0 : i32
    %11 = arith.cmpi ne, %10, %c0_i32_9 : i32
    scf.if %11 {
      %c0_10 = arith.constant 0 : index
      %c0_11 = arith.constant 0 : index
      %12 = vector.load %arg6[%c0_10, %c0_11] : memref<8x128xf32, #tpu.memory_space<vmem>>, vector<8x128xf32>
      %13 = arith.truncf %12 : vector<8x128xf32> to vector<8x128xbf16>
      %c0_12 = arith.constant 0 : index
      %c0_13 = arith.constant 0 : index
      %14 = vector.load %arg5[%c0_12, %c0_13] : memref<8x128xbf16, #tpu.memory_space<vmem>>, vector<8x128xbf16>
      tpu.vector_store %arg5[%c0_12, %c0_13], %13 {strides = array<i32>} : memref<8x128xbf16, #tpu.memory_space<vmem>>, vector<8x128xbf16>,
    } else {
    }
    return
  }
  func.func @transform_0(%arg0: i32, %arg1: i32, %arg2: i32) -> (i32, i32) {
    %c0_i32 = arith.constant 0 : i32
    return %arg0, %arg2 : i32, i32
  }
  func.func @transform_1(%arg0: i32, %arg1: i32, %arg2: i32) -> (i32, i32) {
    %c0_i32 = arith.constant 0 : i32
    return %arg2, %arg1 : i32, i32
  }
  func.func @transform_2(%arg0: i32, %arg1: i32, %arg2: i32) -> (i32, i32) {
    %c0_i32 = arith.constant 0 : i32
    return %arg0, %arg1 : i32, i32
  }
}

module attributes {stable_mosaic.version = 11 : i64} {
  func.func @_if_kernel(%arg0: i32, %arg1: i32, %arg2: memref<1x8x128xbf16, #tpu.memory_space<vmem>>, %arg3: memref<1x8x128xbf16, #tpu.memory_space<vmem>>, %arg4: memref<8x128xf32, #tpu.memory_space<vmem>>) attributes {dimension_semantics = [#tpu.dimension_semantics<parallel>, #tpu.dimension_semantics<arbitrary>], iteration_bounds = array<i64: 1, 4>, scalar_prefetch = 0 : i64, scratch_operands = 1 : i64, tpu.core_type = #tpu.core_type<tc>, window_params = [{transform_indices = @transform_0, window_bounds = array<i64: 1, 8, 128>}, {transform_indices = @transform_1, window_bounds = array<i64: 1, 8, 128>}]} {
    %c0_i32 = arith.constant 0 : i32
    %0 = arith.cmpi eq, %arg1, %c0_i32 : i32
    %1 = arith.extui %0 : i1 to i32
    %c0_i32_0 = arith.constant 0 : i32
    %2 = arith.cmpi ne, %1, %c0_i32_0 : i32
    scf.if %2 {
      %cst_11 = arith.constant 0.000000e+00 : f32
      %19 = vector.broadcast %cst_11 : f32 to vector<8x128xf32>
      %c0_12 = arith.constant 0 : index
      %c0_13 = arith.constant 0 : index
      %20 = vector.load %arg4[%c0_12, %c0_13] : memref<8x128xf32, #tpu.memory_space<vmem>>, vector<8x128xf32>
      tpu.vector_store %arg4[%c0_12, %c0_13], %19 {strides = array<i32>} : memref<8x128xf32, #tpu.memory_space<vmem>>, vector<8x128xf32>,
    } else {
    }
    %c0 = arith.constant 0 : index
    %c0_1 = arith.constant 0 : index
    %3 = vector.load %arg4[%c0, %c0_1] : memref<8x128xf32, #tpu.memory_space<vmem>>, vector<8x128xf32>
    %c0_2 = arith.constant 0 : index
    %c0_3 = arith.constant 0 : index
    %c0_4 = arith.constant 0 : index
    %4 = vector.load %arg2[%c0_2, %c0_3, %c0_4] : memref<1x8x128xbf16, #tpu.memory_space<vmem>>, vector<1x8x128xbf16>
    %5 = vector.shape_cast %4 : vector<1x8x128xbf16> to vector<8x128xbf16>
    %6 = arith.extf %5 : vector<8x128xbf16> to vector<8x128xf32>
    %7 = arith.addf %3, %6 : vector<8x128xf32>
    %cst = arith.constant 1.000000e+00 : f32
    %8 = vector.broadcast %cst : f32 to vector<8x128xf32>
    %9 = arith.cmpf oge, %7, %8 : vector<8x128xf32>
    %cst_5 = arith.constant 0.000000e+00 : f32
    %10 = vector.broadcast %cst_5 : f32 to vector<8x128xf32>
    %11 = arith.select %9, %10, %7 : vector<8x128xi1>, vector<8x128xf32>
    %c0_6 = arith.constant 0 : index
    %c0_7 = arith.constant 0 : index
    %12 = vector.load %arg4[%c0_6, %c0_7] : memref<8x128xf32, #tpu.memory_space<vmem>>, vector<8x128xf32>
    tpu.vector_store %arg4[%c0_6, %c0_7], %11 {strides = array<i32>} : memref<8x128xf32, #tpu.memory_space<vmem>>, vector<8x128xf32>,
    %13 = arith.extui %9 : vector<8x128xi1> to vector<8x128xi32>
    %14 = arith.sitofp %13 : vector<8x128xi32> to vector<8x128xf32>
    %15 = arith.truncf %14 : vector<8x128xf32> to vector<8x128xbf16>
    %c0_8 = arith.constant 0 : index
    %c0_9 = arith.constant 0 : index
    %c0_10 = arith.constant 0 : index
    %16 = vector.load %arg3[%c0_8, %c0_9, %c0_10] : memref<1x8x128xbf16, #tpu.memory_space<vmem>>, vector<1x8x128xbf16>
    %17 = vector.shape_cast %16 : vector<1x8x128xbf16> to vector<8x128xbf16>
    %18 = vector.shape_cast %15 : vector<8x128xbf16> to vector<1x8x128xbf16>
    tpu.vector_store %arg3[%c0_8, %c0_9, %c0_10], %18 {strides = array<i32>} : memref<1x8x128xbf16, #tpu.memory_space<vmem>>, vector<1x8x128xbf16>,
    return
  }
  func.func @transform_0(%arg0: i32, %arg1: i32) -> (i32, i32, i32) {
    %c0_i32 = arith.constant 0 : i32
    %c0_i32_0 = arith.constant 0 : i32
    return %arg1, %arg0, %c0_i32 : i32, i32, i32
  }
  func.func @transform_1(%arg0: i32, %arg1: i32) -> (i32, i32, i32) {
    %c0_i32 = arith.constant 0 : i32
    %c0_i32_0 = arith.constant 0 : i32
    return %arg1, %arg0, %c0_i32 : i32, i32, i32
  }
}

module attributes {stable_mosaic.version = 11 : i64} {
  func.func @_matmul_kernel(%arg0: i32, %arg1: i32, %arg2: i32, %arg3: memref<8x128xbf16, #tpu.memory_space<vmem>>, %arg4: memref<128x128xbf16, #tpu.memory_space<vmem>>, %arg5: memref<8x128xbf16, #tpu.memory_space<vmem>>, %arg6: memref<8x128xf32, #tpu.memory_space<vmem>>) attributes {dimension_semantics = [#tpu.dimension_semantics<parallel>, #tpu.dimension_semantics<parallel>, #tpu.dimension_semantics<arbitrary>], iteration_bounds = array<i64: 1, 1, 1>, scalar_prefetch = 0 : i64, scratch_operands = 1 : i64, tpu.core_type = #tpu.core_type<tc>, window_params = [{transform_indices = @transform_0, window_bounds = array<i64: 8, 128>}, {transform_indices = @transform_1, window_bounds = array<i64: 128, 128>}, {transform_indices = @transform_2, window_bounds = array<i64: 8, 128>}]} {
    %c0_i32 = arith.constant 0 : i32
    %0 = arith.cmpi eq, %arg2, %c0_i32 : i32
    %1 = arith.extui %0 : i1 to i32
    %c0_i32_0 = arith.constant 0 : i32
    %2 = arith.cmpi ne, %1, %c0_i32_0 : i32
    scf.if %2 {
      %cst_10 = arith.constant 0.000000e+00 : f32
      %12 = vector.broadcast %cst_10 : f32 to vector<8x128xf32>
      %c0_11 = arith.constant 0 : index
      %c0_12 = arith.constant 0 : index
      %13 = vector.load %arg6[%c0_11, %c0_12] : memref<8x128xf32, #tpu.memory_space<vmem>>, vector<8x128xf32>
      tpu.vector_store %arg6[%c0_11, %c0_12], %12 {strides = array<i32>} : memref<8x128xf32, #tpu.memory_space<vmem>>, vector<8x128xf32>,
    } else {
    }
    %c0 = arith.constant 0 : index
    %c0_1 = arith.constant 0 : index
    %3 = vector.load %arg6[%c0, %c0_1] : memref<8x128xf32, #tpu.memory_space<vmem>>, vector<8x128xf32>
    %c0_2 = arith.constant 0 : index
    %c0_3 = arith.constant 0 : index
    %4 = vector.load %arg3[%c0_2, %c0_3] : memref<8x128xbf16, #tpu.memory_space<vmem>>, vector<8x128xbf16>
    %c0_4 = arith.constant 0 : index
    %c0_5 = arith.constant 0 : index
    %5 = vector.load %arg4[%c0_4, %c0_5] : memref<128x128xbf16, #tpu.memory_space<vmem>>, vector<128x128xbf16>
    %cst = arith.constant dense<0.000000e+00> : vector<8x128xf32>
    %6 = tpu.matmul %4, %5, %cst {dimension_numbers = #tpu.dot_dimension_numbers<[1], [0], [0], [1], [0, 0, 1, 1], [], []>} : vector<8x128xbf16>, vector<128x128xbf16>, vector<8x128xf32> -> vector<8x128xf32>
    %7 = arith.addf %3, %6 : vector<8x128xf32>
    %c0_6 = arith.constant 0 : index
    %c0_7 = arith.constant 0 : index
    %8 = vector.load %arg6[%c0_6, %c0_7] : memref<8x128xf32, #tpu.memory_space<vmem>>, vector<8x128xf32>
    tpu.vector_store %arg6[%c0_6, %c0_7], %7 {strides = array<i32>} : memref<8x128xf32, #tpu.memory_space<vmem>>, vector<8x128xf32>,
    %c0_i32_8 = arith.constant 0 : i32
    %9 = arith.cmpi eq, %arg2, %c0_i32_8 : i32
    %10 = arith.extui %9 : i1 to i32
    %c0_i32_9 = arith.constant 0 : i32
    %11 = arith.cmpi ne, %10, %c0_i32_9 : i32
    scf.if %11 {
      %c0_10 = arith.constant 0 : index
      %c0_11 = arith.constant 0 : index
      %12 = vector.load %arg6[%c0_10, %c0_11] : memref<8x128xf32, #tpu.memory_space<vmem>>, vector<8x128xf32>
      %13 = arith.truncf %12 : vector<8x128xf32> to vector<8x128xbf16>
      %c0_12 = arith.constant 0 : index
      %c0_13 = arith.constant 0 : index
      %14 = vector.load %arg5[%c0_12, %c0_13] : memref<8x128xbf16, #tpu.memory_space<vmem>>, vector<8x128xbf16>
      tpu.vector_store %arg5[%c0_12, %c0_13], %13 {strides = array<i32>} : memref<8x128xbf16, #tpu.memory_space<vmem>>, vector<8x128xbf16>,
    } else {
    }
    return
  }
  func.func @transform_0(%arg0: i32, %arg1: i32, %arg2: i32) -> (i32, i32) {
    %c0_i32 = arith.constant 0 : i32
    return %arg0, %arg2 : i32, i32
  }
  func.func @transform_1(%arg0: i32, %arg1: i32, %arg2: i32) -> (i32, i32) {
    %c0_i32 = arith.constant 0 : i32
    return %arg2, %arg1 : i32, i32
  }
  func.func @transform_2(%arg0: i32, %arg1: i32, %arg2: i32) -> (i32, i32) {
    %c0_i32 = arith.constant 0 : i32
    return %arg0, %arg1 : i32, i32
  }
}

module attributes {stable_mosaic.version = 11 : i64} {
  func.func @_if_mean_kernel(%arg0: i32, %arg1: i32, %arg2: memref<1x8x128xbf16, #tpu.memory_space<vmem>>, %arg3: memref<8x128xf32, #tpu.memory_space<vmem>>, %arg4: memref<8x128xf32, #tpu.memory_space<vmem>>) attributes {dimension_semantics = [#tpu.dimension_semantics<parallel>, #tpu.dimension_semantics<arbitrary>], iteration_bounds = array<i64: 1, 4>, scalar_prefetch = 0 : i64, scratch_operands = 1 : i64, tpu.core_type = #tpu.core_type<tc>, window_params = [{transform_indices = @transform_0, window_bounds = array<i64: 1, 8, 128>}, {transform_indices = @transform_1, window_bounds = array<i64: 8, 128>}]} {
    %c0_i32 = arith.constant 0 : i32
    %0 = arith.cmpi eq, %arg1, %c0_i32 : i32
    %1 = arith.extui %0 : i1 to i32
    %c0_i32_0 = arith.constant 0 : i32
    %2 = arith.cmpi ne, %1, %c0_i32_0 : i32
    scf.if %2 {
      %cst_13 = arith.constant 0.000000e+00 : f32
      %20 = vector.broadcast %cst_13 : f32 to vector<8x128xf32>
      %c0_14 = arith.constant 0 : index
      %c0_15 = arith.constant 0 : index
      %21 = vector.load %arg4[%c0_14, %c0_15] : memref<8x128xf32, #tpu.memory_space<vmem>>, vector<8x128xf32>
      tpu.vector_store %arg4[%c0_14, %c0_15], %20 {strides = array<i32>} : memref<8x128xf32, #tpu.memory_space<vmem>>, vector<8x128xf32>,
      %cst_16 = arith.constant 0.000000e+00 : f32
      %22 = vector.broadcast %cst_16 : f32 to vector<8x128xf32>
      %c0_17 = arith.constant 0 : index
      %c0_18 = arith.constant 0 : index
      %23 = vector.load %arg3[%c0_17, %c0_18] : memref<8x128xf32, #tpu.memory_space<vmem>>, vector<8x128xf32>
      tpu.vector_store %arg3[%c0_17, %c0_18], %22 {strides = array<i32>} : memref<8x128xf32, #tpu.memory_space<vmem>>, vector<8x128xf32>,
    } else {
    }
    %c0 = arith.constant 0 : index
    %c0_1 = arith.constant 0 : index
    %3 = vector.load %arg4[%c0, %c0_1] : memref<8x128xf32, #tpu.memory_space<vmem>>, vector<8x128xf32>
    %c0_2 = arith.constant 0 : index
    %c0_3 = arith.constant 0 : index
    %c0_4 = arith.constant 0 : index
    %4 = vector.load %arg2[%c0_2, %c0_3, %c0_4] : memref<1x8x128xbf16, #tpu.memory_space<vmem>>, vector<1x8x128xbf16>
    %5 = vector.shape_cast %4 : vector<1x8x128xbf16> to vector<8x128xbf16>
    %6 = arith.extf %5 : vector<8x128xbf16> to vector<8x128xf32>
    %7 = arith.addf %3, %6 : vector<8x128xf32>
    %cst = arith.constant 1.000000e+00 : f32
    %8 = vector.broadcast %cst : f32 to vector<8x128xf32>
    %9 = arith.cmpf oge, %7, %8 : vector<8x128xf32>
    %cst_5 = arith.constant 0.000000e+00 : f32
    %10 = vector.broadcast %cst_5 : f32 to vector<8x128xf32>
    %11 = arith.select %9, %10, %7 : vector<8x128xi1>, vector<8x128xf32>
    %c0_6 = arith.constant 0 : index
    %c0_7 = arith.constant 0 : index
    %12 = vector.load %arg4[%c0_6, %c0_7] : memref<8x128xf32, #tpu.memory_space<vmem>>, vector<8x128xf32>
    tpu.vector_store %arg4[%c0_6, %c0_7], %11 {strides = array<i32>} : memref<8x128xf32, #tpu.memory_space<vmem>>, vector<8x128xf32>,
    %c0_8 = arith.constant 0 : index
    %c0_9 = arith.constant 0 : index
    %13 = vector.load %arg3[%c0_8, %c0_9] : memref<8x128xf32, #tpu.memory_space<vmem>>, vector<8x128xf32>
    %14 = arith.extui %9 : vector<8x128xi1> to vector<8x128xi32>
    %15 = arith.sitofp %14 : vector<8x128xi32> to vector<8x128xf32>
    %cst_10 = arith.constant 2.500000e-01 : f32
    %16 = vector.broadcast %cst_10 : f32 to vector<8x128xf32>
    %17 = arith.mulf %15, %16 : vector<8x128xf32>
    %18 = arith.addf %13, %17 : vector<8x128xf32>
    %c0_11 = arith.constant 0 : index
    %c0_12 = arith.constant 0 : index
    %19 = vector.load %arg3[%c0_11, %c0_12] : memref<8x128xf32, #tpu.memory_space<vmem>>, vector<8x128xf32>
    tpu.vector_store %arg3[%c0_11, %c0_12], %18 {strides = array<i32>} : memref<8x128xf32, #tpu.memory_space<vmem>>, vector<8x128xf32>,
    return
  }
  func.func @transform_0(%arg0: i32, %arg1: i32) -> (i32, i32, i32) {
    %c0_i32 = arith.constant 0 : i32
    %c0_i32_0 = arith.constant 0 : i32
    return %arg1, %arg0, %c0_i32 : i32, i32, i32
  }
  func.func @transform_1(%arg0: i32, %arg1: i32) -> (i32, i32) {
    %c0_i32 = arith.constant 0 : i32
    %c0_i32_0 = arith.constant 0 : i32
    return %arg0, %c0_i32 : i32, i32
  }
}

</mosaic_0001>

<bundles_post_ra>
// kernel: csnn_forward.9
= control target key start
LH: loop header
LB: loop body
LE: loop exit
PB: predicated region body
PF: predicated region fallthrough
CT: control target
= control target key end

     0   :  { %s479_s6 = smov 0   ;;  %s481_s7 = smov 0   ;;  %s571_s0 = inlined_call_operand.vmem [shape: bf16[4,1,16,128], index: 0, kind: input, shape index: {}]   ;;  %s572_s1 = inlined_call_operand.vmem [shape: bf16[4,16,128], index: 1, kind: output, shape index: {}]  }
   0x1   :  { %s483_s8 = smov 0   ;;  %s485_s9 = smov 0  }
   0x2   :  { %s487_s10 = smov 0   ;;  %s489_s11 = smov 0  }
   0x3   :  { %s491_s12 = smov 0  }
   0x4 LB: > { %s20_s13 = sadd.s32 1, %s457_s10  ;;  %s23_s14 = sadd.s32 1, %s461_s11  ;;  %s465_s12 = sphi %s491_s12, %s11_s12   ;;  %s461_s11 = sphi %s489_s11, %s578_s11   ;;  %s457_s10 = sphi %s487_s10, %s577_s10   ;;  %s453_s9 = sphi %s485_s9, %s576_s9   ;;  %s449_s8 = sphi %s483_s8, %s575_s8   ;;  %s445_s7 = sphi %s481_s7, %s574_s7   ;;  %s441_s6 = sphi %s479_s6, %s573_s6  }
   0x5   : > { %p21_p0 = scmp.ge.s32.totalorder %s20_s13, 4  ;;  %p37_p1 = scmp.ne.s32.totalorder %s445_s7, %s441_s6 }
   0x6   : > { %p38_p2 = scmp.eq.s32.totalorder %s465_s12, 0  ;;  %s30_s16 = sadd.s32 1, %s445_s7 }
   0x7   : > { %s580_s13 = smov (%p21_p0, %s20_s13), 0  ;;  %s582_s14 = smov (!%p21_p0, %s23_s14), %s461_s11 }
   0x8   : > { %p39_p3 = por %p38_p2, %p37_p1  ;;  %p25_p4 = scmp.ge.s32.totalorder %s582_s14, 2 }
   0x9   : > { %p330_p6 = scmp.ge.s32.totalorder %s465_s12, 8 }
   0xa   : > { %s584_s14 = smov (%p25_p4, %s582_s14), 0 }
   0xb   : > { %s27_s15 = ssub.s32 %s461_s11, %s584_s14  ;;  %91 = sbr.rel (%p330_p6) target bundleno = 24 (0x18), region = 16 }
   0xc   : > { %p28_p5 = scmp.eq.s32.totalorder %s27_s15, 0 }
   0xe   : > { %s528_s17 = scalar_select %p28_p5, %s445_s7, %s30_s16  }
  0x10   : > { %94 = sbr.rel (!%p39_p3) target bundleno = 24 (0x18), region = 20  ;;  %s96_s18 = sand.u32 (%p39_p3), 1, %s445_s7  }
  0x11   : > { %s332_s19 = sshll.u32 (%p39_p3), %s461_s11, 2  ;;  %s331_s20 = sshll.u32 (%p39_p3), %s96_s18, 4 }
  0x12   : > { %s100_s23 = scalar_lea.vmem (%p39_p3), %s571_s0, %s332_s19  ;;  %s98_s24 = scalar_lea.vmem (%p39_p3), [#allocation3], %s331_s20 }
  0x13   : > { %v117_v0 = vld [vmem:[%s100_s23] sm:$0xf] (%p39_p3)  ;;  %v119_v1 = vld [vmem:[%s100_s23 + $0x8] sm:$0xf] (%p39_p3)  ;;  %v121_v2 = vld [vmem:[%s100_s23 + $0x10] sm:$0xf] (%p39_p3) }
  0x14   : > { %118 = vst [vmem:[%s98_s24] sm:$0xf] (%p39_p3), %v117_v0  ;;  %v123_v3 = vld [vmem:[%s100_s23 + $0x18] sm:$0xf] (%p39_p3) }
  0x15   : > { %120 = vst [vmem:[%s98_s24 + $0x4] sm:$0xf] %v119_v1 }
  0x16   : > { %122 = vst [vmem:[%s98_s24 + $0x8] sm:$0xf] %v121_v2 }
  0x17   : > { %124 = vst [vmem:[%s98_s24 + $0xc] sm:$0xf] %v123_v3 }
  0x18 PF: > { %p333_p7 = scmp.ge.s32.totalorder %s465_s12, 1  ;;  %p155_p8 = scmp.lt.s32.totalorder %s465_s12, 9 }
  0x1a   : > { %p156_p9 = pnand %p333_p7, %p155_p8 }
  0x1b   : > { %s162_s25 = sand.u32 (!%p156_p9), 1, %s441_s6   ;;  %p184_p10 = scmp.lt.s32.totalorder (!%p156_p9), %s449_s8, 3 }
  0x1c   : > { %159 = sbr.rel (%p156_p9) target bundleno = 62 (0x3e), region = 61  ;;  %s334_s26 = sshll.u32 (!%p156_p9), %s162_s25, 4 }
  0x1d   : > { %p186_p11 = scmp.lt.s32.totalorder (!%p156_p9), %s453_s9, 1  ;;  %s164_s5 = scalar_lea.vmem (!%p156_p9), [#allocation3], %s334_s26 }
  0x1e   : > { %p337_p12 = scmp.ne.s32.totalorder (!%p156_p9), %s449_s8, 0 }
  0x21   : > { %s185_s27 = scalar_select %p184_p10, %s449_s8, 3 }
  0x22   : > { %s586_s9 = smov (!%p186_p11, %s453_s9), 1  ;;  %195 = sbr.rel (%p337_p12) target bundleno = 44 (0x2c), region = 69 }
  0x23   : > { %s335_s28 = sshll.u32 %s185_s27, 1 }
  0x24   : > { %s189_s29 = sadd.s32 %s335_s28, %s586_s9 }
  0x25   : > { %s336_s30 = sshll.u32 %s189_s29, 2 }
  0x26   : > { %s546_s4 = scalar_lea.vmem %s572_s1, %s336_s30 }
  0x27   : > { %v467_v4 = vmov 0.0  }
  0x28   : > { %196 = vst [vmem:[#allocation2 + $0x10] sm:$0xff] %v467_v4 }
  0x29   : > { %197 = vst [vmem:[#allocation2] sm:$0xff] %v467_v4 }
  0x2a   : > { %198 = vst [vmem:[#allocation2 + $0x18] sm:$0xff] %v467_v4 }
  0x2b   : > { %199 = vst [vmem:[#allocation2 + $0x8] sm:$0xff] %v467_v4 }
  0x2c PF: > { %v345_v6 = vld [vmem:[%s164_s5] sm:$0xff]   ;;  %v352_v11 = vld [vmem:[%s164_s5 + $0x8] sm:$0xff]   ;;  %v468_v20 = vmov 0.0  }
  0x2d   : > { %v346_v8 = vunpack.c.l.bf16 %v345_v6  ;;  %v347_v9 = vunpack.c.h.bf16 %v345_v6  ;;  %v350_v13 = vunpack.c.l.bf16 %v352_v11  ;;  %v351_v14 = vunpack.c.h.bf16 %v352_v11 }
  0x2f   : > { %v200_v5 = vld [vmem:[#allocation2 + $0x10] sm:$0xff] }
  0x30   : > { %v201_v7 = vld [vmem:[#allocation2] sm:$0xff]  ;;  %v212_v15 = vadd.f32 %v346_v8, %v200_v5 }
  0x31   : > { %v202_v10 = vld [vmem:[#allocation2 + $0x18] sm:$0xff]  ;;  %v213_v16 = vadd.f32 %v347_v9, %v201_v7 }
  0x32   : > { %v203_v12 = vld [vmem:[#allocation2 + $0x8] sm:$0xff]  ;;  %v214_v17 = vadd.f32 %v350_v13, %v202_v10  ;;  %vm216_vm0 = vcmp.ge.f32.partialorder %v212_v15, 1.0 }
  0x33   : > { %v215_v18 = vadd.f32 %v351_v14, %v203_v12  ;;  %vm217_vm1 = vcmp.ge.f32.partialorder %v213_v16, 1.0  ;;  %v220_v19 = vsel %vm216_vm0, 0.0, %v212_v15  ;;  %v338_v21 = vsel %vm216_vm0, 1.0, %v468_v20 }
  0x34   : > { %v221_v22 = vsel %vm217_vm1, 0.0, %v213_v16  ;;  %v339_v23 = vsel %vm217_vm1, 1.0, %v468_v20  ;;  %224 = vst [vmem:[#allocation2 + $0x10] sm:$0xff] %v220_v19  ;;  %vm218_vm2 = vcmp.ge.f32.partialorder %v214_v17, 1.0 }
  0x35   : > { %vm219_vm3 = vcmp.ge.f32.partialorder %v215_v18, 1.0  ;;  %v236_v24 = vmax.f32 %v338_v21, %v339_v23  ;;  %225 = vst [vmem:[#allocation2] sm:$0xff] %v221_v22  ;;  %v222_v25 = vsel %vm218_vm2, 0.0, %v214_v17  ;;  %v340_v26 = vsel %vm218_vm2, 1.0, %v468_v20 }
  0x36   : > { %v223_v27 = vsel %vm219_vm3, 0.0, %v215_v18  ;;  %v341_v28 = vsel %vm219_vm3, 1.0, %v468_v20  ;;  %226 = vst [vmem:[#allocation2 + $0x18] sm:$0xff] %v222_v25 }
  0x37   : > { %v237_v29 = vmax.f32 %v340_v26, %v341_v28  ;;  %227 = vst [vmem:[#allocation2 + $0x8] sm:$0xff] %v223_v27 }
  0x39   : > { %v238_v30 = vmax.f32 %v236_v24, %v237_v29 }
  0x3b   : > { %v239_v31 = vpack.c.bf16 %v238_v30, %v238_v30 }
  0x3d   : > { %240 = vst [vmem:[%s546_s4] sm:$0xf] %v239_v31 }
  0x3e PF: > { %s11_s12 = sadd.s32 1, %s465_s12   ;;  %s573_s6 = smov %s445_s7 }
  0x3f   : > { %p8_p13 = scmp.ge.s32.totalorder %s11_s12, 10   ;;  %s574_s7 = smov %s528_s17 }
  0x40   : > { %s575_s8 = smov %s457_s10  ;;  %s576_s9 = smov %s461_s11 }
  0x41   : > { %s577_s10 = smov %s580_s13  ;;  %s578_s11 = smov %s584_s14 }
  0x42   :  { %10 = sbr.rel (!%p8_p13) target bundleno = 4 (0x4), region = 104 }

// kernel: csnn_forward.8
= control target key start
LH: loop header
LB: loop body
LE: loop exit
PB: predicated region body
PF: predicated region fallthrough
CT: control target
= control target key end

     0   :  { %s2248_s15 = smov 0   ;;  %s4073_s0 = inlined_call_operand.vmem [shape: f32[2304,1], index: 0, kind: input, shape index: {}, may-alias: {0,1}]   ;;  %s4074_s1 = inlined_call_operand.vmem [shape: f32[2304,1], index: 1, kind: input, shape index: {}, may-alias: {0,1}]   ;;  %s4075_s2 = inlined_call_operand.vmem [shape: f32[9,1,4], index: 2, kind: input, shape index: {}]   ;;  %s4076_s3 = inlined_call_operand.vmem [shape: f32[1,4], index: 3, kind: input, shape index: {}]   ;;  %s4077_s4 = inlined_call_operand.vmem [shape: bf16[2048,4], index: 4, kind: output, shape index: {}]  }
   0x1 LB: > { %s2151_s16 = sadd.s32 4294967295, %s2220_s15   ;;  %p2155_p0 = scmp.ge.s32.totalorder %s2220_s15, 1  ;;  %s2220_s15 = sphi %s2248_s15, %s14_s15  }
   0x2   : > { %p178_p1 = scmp.lt.s32.totalorder %s2220_s15, 9 }
   0x4   : > { %p179_p2 = pnand %p2155_p0, %p178_p1 }
   0x6   : > { %182 = sbr.rel (%p179_p2) target bundleno = 426 (0x1aa), region = 36 }
   0xb   : > { %s2256_s17 = sshll.u32 %s2151_s16, 5  ;;  %v2222_v0 = vmov 0   ;;  %v2304_v41 = vld [vmem:[%s4075_s2 + $0x1] ss:$0 sm:$0xff]  ;;  %v2315_v45 = vld [vmem:[%s4075_s2] ss:$0 sm:$0xff] }
   0xc   : > { %2185 = vset.pattern.permute.xlu2 %v2222_v0  ;;  %2184 = vset.pattern.permute.xlu1 %v2222_v0  ;;  %p211_p3 = scmp.lt.s32.totalorder %s2256_s17, 287  ;;  %s2173_s23 = sadd.s32 32, %s2256_s17  ;;  %v2320_v46 = vld [vmem:[%s4075_s2 + $0x2] ss:$0 sm:$0xff]  ;;  %v2325_v47 = vld [vmem:[%s4075_s2 + $0x3] ss:$0 sm:$0xff] }
   0xd   : > { %2183 = vset.pattern.permute.xlu0 %v2222_v0  ;;  %p218_p4 = scmp.lt.s32.totalorder %s2173_s23, 287  ;;  %v2330_v48 = vld [vmem:[%s4075_s2 + $0x4] ss:$0 sm:$0xff]  ;;  %v2344_v55 = vld [vmem:[%s4076_s3] ss:$0 sm:$0xff]  ;;  %vm579_vm0 = vcmask 1046528  }
   0xe   : > { %s212_s18 = scalar_select %p211_p3, %s2256_s17, 287  ;;  %vm780_vm1 = vcmask 1045504   ;;  %vm1197_vm2 = vcmask 1040384   ;;  %vm996_vm3 = vcmask 1041408   ;;  %vm1487_vm4 = vcmask 1043456  }
   0xf   : > { %s4485_s23 = smov (!%p218_p4, %s2173_s23), 287  ;;  %vm1688_vm5 = vcmask 1042432   ;;  %p225_p5 = scmp.lt.s32.totalorder %s2256_s17, 255  ;;  %vm2050_vm6 = vcmask 27648  }
  0x10   : > { %s2157_s19 = sshll.u32 %s212_s18, 3  ;;  %s2159_s24 = sshll.u32 %s4485_s23, 3 }
  0x11   : > { %s2263_s22 = scalar_lea.vmem %s4073_s0, %s2157_s19  ;;  %s221_s27 = scalar_lea.vmem %s4074_s1, %s2159_s24 }
  0x12   : > { %v234_v1 = vld [vmem:[%s2263_s22 + $0x20] sm:$0xff]  ;;  %v232_v2 = vld [vmem:[%s2263_s22 + $0x10] sm:$0xff]  ;;  %v235_v4 = vld [vmem:[%s2263_s22 + $0x28] sm:$0xff]  ;;  %s4487_s17 = smov (!%p225_p5, %s2256_s17), 255 }
  0x13   : > { %v230_v3 = vld [vmem:[%s2263_s22] sm:$0xff]  ;;  %298 = vperm.xlu2 %2185, %v234_v1   ;;  %288 = vperm.xlu1 %2184, %v232_v2   ;;  %v233_v5 = vld [vmem:[%s2263_s22 + $0x18] sm:$0xff]  ;;  %v231_v6 = vld [vmem:[%s2263_s22 + $0x8] sm:$0xff]  ;;  %s2161_s24 = sshll.u32 %s4487_s17, 2 }
  0x14   : > { %278 = vperm.xlu0 %2183, %v230_v3   ;;  %v238_v7 = vld [vmem:[%s2263_s22 + $0x40] sm:$0xff]  ;;  %v237_v8 = vld [vmem:[%s2263_s22 + $0x38] sm:$0xff]  ;;  %v236_v9 = vld [vmem:[%s2263_s22 + $0x30] sm:$0xff]  ;;  %s2659_s26 = scalar_lea.vmem %s4077_s4, %s2161_s24 }
  0x15   : > { %v241_v10 = vld [vmem:[%s2263_s22 + $0x58] sm:$0xff]  ;;  %v240_v11 = vld [vmem:[%s2263_s22 + $0x50] sm:$0xff]  ;;  %v239_v12 = vld [vmem:[%s2263_s22 + $0x48] sm:$0xff] }
  0x16   : > { %v244_v13 = vld [vmem:[%s2263_s22 + $0x70] sm:$0xff]  ;;  %v243_v14 = vld [vmem:[%s2263_s22 + $0x68] sm:$0xff]  ;;  %v242_v15 = vld [vmem:[%s2263_s22 + $0x60] sm:$0xff] }
  0x17   : > { %v247_v16 = vld [vmem:[%s2263_s22 + $0x88] sm:$0xff]  ;;  %v246_v17 = vld [vmem:[%s2263_s22 + $0x80] sm:$0xff]  ;;  %v245_v18 = vld [vmem:[%s2263_s22 + $0x78] sm:$0xff] }
  0x18   : > { %v250_v19 = vld [vmem:[%s2263_s22 + $0xa0] sm:$0xff]  ;;  %v249_v20 = vld [vmem:[%s2263_s22 + $0x98] sm:$0xff]  ;;  %v248_v21 = vld [vmem:[%s2263_s22 + $0x90] sm:$0xff] }
  0x19   : > { %v253_v22 = vld [vmem:[%s2263_s22 + $0xb8] sm:$0xff]  ;;  %v252_v23 = vld [vmem:[%s2263_s22 + $0xb0] sm:$0xff]  ;;  %v251_v24 = vld [vmem:[%s2263_s22 + $0xa8] sm:$0xff] }
  0x1a   : > { %v256_v25 = vld [vmem:[%s2263_s22 + $0xd0] sm:$0xff]  ;;  %v255_v26 = vld [vmem:[%s2263_s22 + $0xc8] sm:$0xff]  ;;  %v254_v27 = vld [vmem:[%s2263_s22 + $0xc0] sm:$0xff] }
  0x1b   : > { %303 = vperm.xlu2 %2185, %v235_v4   ;;  %293 = vperm.xlu1 %2184, %v233_v5   ;;  %v259_v28 = vld [vmem:[%s2263_s22 + $0xe8] sm:$0xff]  ;;  %v258_v29 = vld [vmem:[%s2263_s22 + $0xe0] sm:$0xff]  ;;  %v257_v30 = vld [vmem:[%s2263_s22 + $0xd8] sm:$0xff] }
  0x1c   : > { %283 = vperm.xlu0 %2183, %v231_v6   ;;  %v262_v31 = vld [vmem:[%s221_s27] sm:$0xff]  ;;  %v261_v32 = vld [vmem:[%s2263_s22 + $0xf8] sm:$0xff]  ;;  %v260_v33 = vld [vmem:[%s2263_s22 + $0xf0] sm:$0xff] }
  0x1d   : > { %v265_v34 = vld [vmem:[%s221_s27 + $0x18] sm:$0xff]  ;;  %v264_v35 = vld [vmem:[%s221_s27 + $0x10] sm:$0xff]  ;;  %v263_v36 = vld [vmem:[%s221_s27 + $0x8] sm:$0xff] }
  0x1e   : > { %v268_v38 = vld [vmem:[%s221_s27 + $0x30] sm:$0xff]  ;;  %v267_v39 = vld [vmem:[%s221_s27 + $0x28] sm:$0xff]  ;;  %v266_v40 = vld [vmem:[%s221_s27 + $0x20] sm:$0xff] }
  0x1f   : > { %v269_v50 = vld [vmem:[%s221_s27 + $0x38] sm:$0xff]  ;;  %v2369_v1 = vld [vmem:[%s4075_s2 + $0x6] ss:$0 sm:$0xff]  ;;  %v2374_v2 = vld [vmem:[%s4075_s2 + $0x7] ss:$0 sm:$0xff] }
  0x20   : > { %v2379_v3 = vld [vmem:[%s4075_s2 + $0x5] ss:$0 sm:$0xff] }
  0x23   : > { %318 = vperm.xlu2 %2185, %v238_v7   ;;  %313 = vperm.xlu1 %2184, %v237_v8  }
  0x24   : > { %308 = vperm.xlu0 %2183, %v236_v9  }
  0x2b   : > { %333 = vperm.xlu2 %2185, %v241_v10   ;;  %328 = vperm.xlu1 %2184, %v240_v11   ;;  %v2394_v11 = vld [vmem:[%s4075_s2 + $0x8] ss:$0 sm:$0xff] }
  0x2c   : > { %323 = vperm.xlu0 %2183, %v239_v12  }
  0x33   : > { %348 = vperm.xlu2 %2185, %v244_v13   ;;  %343 = vperm.xlu1 %2184, %v243_v14  }
  0x34   : > { %338 = vperm.xlu0 %2183, %v242_v15  }
  0x3b   : > { %363 = vperm.xlu2 %2185, %v247_v16   ;;  %358 = vperm.xlu1 %2184, %v246_v17  }
  0x3c   : > { %353 = vperm.xlu0 %2183, %v245_v18  }
  0x43   : > { %378 = vperm.xlu2 %2185, %v250_v19   ;;  %373 = vperm.xlu1 %2184, %v249_v20  }
  0x44   : > { %368 = vperm.xlu0 %2183, %v248_v21  }
  0x4b   : > { %393 = vperm.xlu2 %2185, %v253_v22   ;;  %388 = vperm.xlu1 %2184, %v252_v23  }
  0x4c   : > { %383 = vperm.xlu0 %2183, %v251_v24  }
  0x53   : > { %408 = vperm.xlu2 %2185, %v256_v25   ;;  %403 = vperm.xlu1 %2184, %v255_v26  }
  0x54   : > { %398 = vperm.xlu0 %2183, %v254_v27  }
  0x5b   : > { %423 = vperm.xlu2 %2185, %v259_v28   ;;  %418 = vperm.xlu1 %2184, %v258_v29  }
  0x5c   : > { %413 = vperm.xlu0 %2183, %v257_v30  }
  0x63   : > { %507 = vperm.xlu2 %2185, %v262_v31   ;;  %433 = vperm.xlu1 %2184, %v261_v32  }
  0x64   : > { %428 = vperm.xlu0 %2183, %v260_v33  }
  0x6b   : > { %924 = vperm.xlu2 %2185, %v265_v34   ;;  %919 = vperm.xlu1 %2184, %v264_v35  }
  0x6c   : > { %914 = vperm.xlu0 %2183, %v263_v36  }
  0x6d   : > { %v299_v37 = vpop.permute.xlu2 %298 }
  0x6e   : > { %v2307_v43 = vmul.f32 %v2304_v41, %v299_v37  ;;  %v443_v49 = vmul.f32 %v2315_v45, %v299_v37  ;;  %v2335_v52 = vmul.f32 %v2320_v46, %v299_v37  ;;  %v2347_v56 = vmul.f32 %v2325_v47, %v299_v37 }
  0x6f   : > { %v2350_v57 = vmul.f32 %v2330_v48, %v299_v37  ;;  %v2416_v19 = vmul.f32 %v2379_v3, %v299_v37 }
  0x70   : > { %v4085_v51 = vrot.slane %v2307_v43, 1  ;;  %v475_v58 = vadd.f32 %v2344_v55, %v443_v49  ;;  %v4084_v62 = vrot.slane %v2335_v52, 2  ;;  %v4082_v4 = vrot.slane %v2347_v56, 6 }
  0x71   : > { %v4083_v5 = vrot.slane %v2350_v57, 7 }
  0x73   : > { %1410 = vperm.xlu2 %2185, %v268_v38   ;;  %1405 = vperm.xlu1 %2184, %v267_v39  }
  0x74   : > { %1400 = vperm.xlu0 %2183, %v266_v40  }
  0x75   : > { %v304_v42 = vpop.permute.xlu2 %303 }
  0x76   : > { %v2310_v44 = vmul.f32 %v2304_v41, %v304_v42  ;;  %v2339_v54 = vmul.f32 %v2320_v46, %v304_v42  ;;  %v2354_v59 = vmul.f32 %v2325_v47, %v304_v42  ;;  %v2357_v60 = vmul.f32 %v2330_v48, %v304_v42 }
  0x77   : > { %v444_v6 = vmul.f32 %v2315_v45, %v304_v42  ;;  %v2422_v21 = vmul.f32 %v2379_v3, %v304_v42 }
  0x78   : > { %v4081_v53 = vrot.slane %v2310_v44, 1  ;;  %v4080_v0 = vrot.slane %v2339_v54, 2  ;;  %v4079_v8 = vrot.slane %v2354_v59, 6  ;;  %v4078_v9 = vrot.slane %v2357_v60, 7 }
  0x79   : > { %v2419_v20 = vadd.f32 %v2344_v55, %v444_v6 }
  0x7a   : > { %v590_v63 = vsel %vm579_vm0, %v4085_v51, %v4081_v53  ;;  %v791_v10 = vsel %vm780_vm1, %v4084_v62, %v4080_v0  ;;  %v2434_v26 = vsel %vm996_vm3, %v4082_v4, %v4079_v8  ;;  %v2441_v27 = vsel %vm1197_vm2, %v4083_v5, %v4078_v9 }
  0x7b   : > { %v681_v7 = vadd.f32 %v590_v63, %v475_v58 }
  0x7c   : > { %1415 = vperm.xlu0 %2183, %v269_v50  }
  0x7d   : > { %v319_v61 = vpop.permute.xlu2 %318  ;;  %v2424_v22 = vadd.f32 %v791_v10, %v681_v7 }
  0x7e   : > { %v447_v12 = vmul.f32 %v2315_v45, %v319_v61  ;;  %v2398_v13 = vmul.f32 %v2304_v41, %v319_v61  ;;  %v2401_v14 = vmul.f32 %v2320_v46, %v319_v61  ;;  %v2404_v15 = vmul.f32 %v2325_v47, %v319_v61 }
  0x7f   : > { %v2407_v16 = vmul.f32 %v2330_v48, %v319_v61  ;;  %v2410_v17 = vmul.f32 %v2369_v1, %v319_v61  ;;  %v2413_v18 = vmul.f32 %v2374_v2, %v319_v61  ;;  %v2427_v23 = vmul.f32 %v2379_v3, %v319_v61 }
  0x80   : > { %v2444_v28 = vadd.f32 %v2344_v55, %v447_v12  ;;  %v2449_v31 = vmul.f32 %v2394_v11, %v319_v61 }
  0x82   : > { %4190 = vst [vmem:[#allocation2_spill] sm:$0xff] %v2444_v28 }
  0x85   : > { %v334_v24 = vpop.permute.xlu2 %333  ;;  %v289_v25 = vpop.permute.xlu1 %288 }
  0x86   : > { %v279_v32 = vpop.permute.xlu0 %278  ;;  %v450_v37 = vmul.f32 %v2315_v45, %v334_v24  ;;  %v2457_v38 = vmul.f32 %v2304_v41, %v334_v24  ;;  %v2460_v39 = vmul.f32 %v2320_v46, %v334_v24  ;;  %v2463_v40 = vmul.f32 %v2325_v47, %v334_v24 }
  0x87   : > { %v2466_v42 = vmul.f32 %v2330_v48, %v334_v24  ;;  %v2469_v49 = vmul.f32 %v2369_v1, %v334_v24  ;;  %v2472_v50 = vmul.f32 %v2374_v2, %v334_v24  ;;  %v2475_v58 = vmul.f32 %v2394_v11, %v334_v24 }
  0x88   : > { %4191 = vst [vmem:[#allocation3_spill] sm:$0xff] %v2460_v39  ;;  %v2479_v63 = vmul.f32 %v2379_v3, %v334_v24  ;;  %v441_v6 = vmul.f32 %v2315_v45, %v289_v25  ;;  %v515_v7 = vmul.f32 %v2304_v41, %v289_v25  ;;  %v2484_v10 = vmul.f32 %v2320_v46, %v289_v25 }
  0x89   : > { %4192 = vst [vmem:[#allocation4_spill] sm:$0xff] %v2463_v40  ;;  %v439_v12 = vmul.f32 %v2315_v45, %v279_v32  ;;  %v513_v9 = vmul.f32 %v2304_v41, %v279_v32  ;;  %v2489_v8 = vmul.f32 %v2320_v46, %v279_v32  ;;  %v2492_v0 = vadd.f32 %v2344_v55, %v450_v37 }
  0x8a   : > { %4193 = vst [vmem:[#allocation5_spill] sm:$0xff] %v2466_v42  ;;  %v473_v32 = vadd.f32 %v2344_v55, %v441_v6  ;;  %v583_v36 = vrot.slane %v515_v7, 1  ;;  %v784_v53 = vrot.slane %v2484_v10, 2  ;;  %v4206_v40 = vrot.slane %v2307_v43, 1 }
  0x8b   : > { %4194 = vst [vmem:[#allocation6_spill] sm:$0xff] %v2469_v49  ;;  %v471_v34 = vadd.f32 %v2344_v55, %v439_v12  ;;  %v580_v33 = vrot.slane %v513_v9, 1  ;;  %v781_v25 = vrot.slane %v2489_v8, 2 }
  0x8c   : > { %4195 = vst [vmem:[#allocation7_spill] sm:$0xff] %v2472_v50 }
  0x8d   : > { %4196 = vst [vmem:[#allocation8_spill] sm:$0xff] %v2475_v58  ;;  %v349_v29 = vpop.permute.xlu2 %348  ;;  %v294_v35 = vpop.permute.xlu1 %293 }
  0x8e   : > { %4197 = vst [vmem:[#allocation9_spill] sm:$0xff] %v2479_v63  ;;  %v453_v37 = vmul.f32 %v2315_v45, %v349_v29  ;;  %v2504_v24 = vmul.f32 %v2304_v41, %v349_v29  ;;  %v2510_v30 = vmul.f32 %v2320_v46, %v349_v29  ;;  %v2513_v61 = vmul.f32 %v2325_v47, %v349_v29  ;;  %v284_v4 = vpop.permute.xlu0 %283 }
  0x8f   : > { %4198 = vst [vmem:[#allocation10_spill] sm:$0xff] %v2492_v0  ;;  %v2516_v6 = vmul.f32 %v2330_v48, %v349_v29  ;;  %v2519_v7 = vmul.f32 %v2379_v3, %v349_v29  ;;  %v2526_v8 = vmul.f32 %v2369_v1, %v349_v29  ;;  %v2529_v12 = vmul.f32 %v2374_v2, %v349_v29 }
  0x90   : > { %4199 = vst [vmem:[#allocation11_spill] sm:$0xff] %v2504_v24  ;;  %v2522_v10 = vadd.f32 %v2344_v55, %v453_v37  ;;  %v2532_v5 = vmul.f32 %v2394_v11, %v349_v29  ;;  %v442_v62 = vmul.f32 %v2315_v45, %v294_v35  ;;  %v516_v51 = vmul.f32 %v2304_v41, %v294_v35 }
  0x91   : > { %4200 = vst [vmem:[#allocation12_spill] sm:$0xff] %v2510_v30  ;;  %v930_v37 = vmul.f32 %v2325_v47, %v294_v35  ;;  %v440_v9 = vmul.f32 %v2315_v45, %v284_v4  ;;  %v514_v63 = vmul.f32 %v2304_v41, %v284_v4  ;;  %v715_v39 = vmul.f32 %v2320_v46, %v284_v4 }
  0x92   : > { %4201 = vst [vmem:[#allocation13_spill] sm:$0xff] %v2513_v61  ;;  %v585_v28 = vrot.slane %v516_v51, 1  ;;  %v474_v42 = vadd.f32 %v2344_v55, %v442_v62 }
  0x93   : > { %4202 = vst [vmem:[#allocation14_spill] sm:$0xff] %v2516_v6  ;;  %v472_v58 = vadd.f32 %v2344_v55, %v440_v9  ;;  %v581_v50 = vrot.slane %v514_v63, 1  ;;  %v997_v62 = vrot.slane %v930_v37, 6 }
  0x94   : > { %4203 = vst [vmem:[#allocation15_spill] sm:$0xff] %v2519_v7  ;;  %v717_v7 = vmul.f32 %v2320_v46, %v294_v35  ;;  %v586_v49 = vsel %vm579_vm0, %v583_v36, %v585_v28  ;;  %v588_v0 = vsel %vm579_vm0, %v585_v28, %v4206_v40 }
  0x95   : > { %4204 = vst [vmem:[#allocation16_spill] sm:$0xff] %v2522_v10  ;;  %v1131_v10 = vmul.f32 %v2330_v48, %v294_v35  ;;  %v364_v24 = vpop.permute.xlu2 %363  ;;  %v679_v9 = vadd.f32 %v586_v49, %v473_v32  ;;  %v582_v63 = vsel %vm579_vm0, %v580_v33, %v581_v50  ;;  %v584_v4 = vsel %vm579_vm0, %v581_v50, %v583_v36 }
  0x96   : > { %4205 = vst [vmem:[#allocation17_spill] sm:$0xff] %v2526_v8  ;;  %v786_v30 = vrot.slane %v717_v7, 2  ;;  %v782_v35 = vrot.slane %v715_v39, 2  ;;  %v680_v8 = vadd.f32 %v588_v0, %v474_v42  ;;  %v677_v61 = vadd.f32 %v582_v63, %v471_v34 }
  0x97   : > { %v1198_v6 = vrot.slane %v1131_v10, 7  ;;  %v678_v43 = vadd.f32 %v584_v4, %v472_v58  ;;  %v456_v28 = vmul.f32 %v2315_v45, %v364_v24  ;;  %v2561_v49 = vmul.f32 %v2304_v41, %v364_v24 }
  0x98   : > { %v787_v40 = vsel %vm780_vm1, %v784_v53, %v786_v30  ;;  %v783_v7 = vsel %vm780_vm1, %v781_v25, %v782_v35  ;;  %v785_v10 = vsel %vm780_vm1, %v782_v35, %v784_v53  ;;  %v4207_v33 = vrot.slane %v2335_v52, 2 }
  0x99   : > { %v878_v0 = vadd.f32 %v783_v7, %v677_v61  ;;  %v879_v34 = vadd.f32 %v785_v10, %v678_v43  ;;  %v2567_v39 = vmul.f32 %v2320_v46, %v364_v24  ;;  %v4209_v42 = vrot.slane %v2350_v57, 7 }
  0x9a   : > { %v789_v36 = vsel %vm780_vm1, %v786_v30, %v4207_v33  ;;  %v4210_v58 = vrot.slane %v2347_v56, 6  ;;  %v2576_v25 = vmul.f32 %v2325_v47, %v364_v24  ;;  %v2579_v52 = vmul.f32 %v2330_v48, %v364_v24  ;;  %v2581_v30 = vpop.permute.xlu1 %313 }
  0x9b   : > { %4208 = vst [vmem:[#allocation18_spill] sm:$0xff] %v2567_v39  ;;  %v1200_v50 = vsel %vm1197_vm2, %v1198_v6, %v4209_v42  ;;  %v2583_v61 = vadd.f32 %v787_v40, %v679_v9  ;;  %v2585_v32 = vadd.f32 %v789_v36, %v680_v8  ;;  %v2588_v57 = vadd.f32 %v2344_v55, %v456_v28 }
  0x9c   : > { %v999_v53 = vsel %vm996_vm3, %v997_v62, %v4210_v58  ;;  %4211 = vst [vmem:[#allocation19_spill] sm:$0xff] %v2576_v25  ;;  %v1095_v56 = vadd.f32 %v2434_v26, %v879_v34  ;;  %v2594_v35 = vmul.f32 %v2379_v3, %v364_v24  ;;  %v2597_v62 = vmul.f32 %v2369_v1, %v364_v24 }
  0x9d   : > { %4212 = vst [vmem:[#allocation20_spill] sm:$0xff] %v2579_v52  ;;  %v1094_v37 = vadd.f32 %v999_v53, %v878_v0  ;;  %v446_v63 = vmul.f32 %v2315_v45, %v2581_v30  ;;  %v1421_v4 = vmul.f32 %v2369_v1, %v2581_v30  ;;  %v1622_v28 = vmul.f32 %v2374_v2, %v2581_v30 }
  0x9e   : > { %4213 = vst [vmem:[#allocation21_spill] sm:$0xff] %v2588_v57  ;;  %v1823_v40 = vmul.f32 %v2394_v11, %v2581_v30  ;;  %v2612_v10 = vmul.f32 %v2374_v2, %v364_v24  ;;  %v2615_v33 = vmul.f32 %v2394_v11, %v364_v24  ;;  %v520_v42 = vmul.f32 %v2304_v41, %v2581_v30  ;;  %v4239_v57 = vld [vmem:[#allocation4_spill] sm:$0xff] }
  0x9f   : > { %4214 = vst [vmem:[#allocation22_spill] sm:$0xff] %v2594_v35  ;;  %v1295_v9 = vadd.f32 %v1200_v50, %v1094_v37  ;;  %v1488_v36 = vrot.slane %v1421_v4, 4  ;;  %v478_v0 = vadd.f32 %v2344_v55, %v446_v63  ;;  %v1689_v34 = vrot.slane %v1622_v28, 5  ;;  %v309_v50 = vpop.permute.xlu0 %308 }
  0xa0   : > { %4215 = vst [vmem:[#allocation23_spill] sm:$0xff] %v2597_v62  ;;  %v4218_v58 = vrot.slane %v2410_v17, 4  ;;  %v1889_v53 = vrot.slane %v1823_v40, 6  ;;  %v934_v37 = vmul.f32 %v2325_v47, %v2581_v30  ;;  %v1296_v63 = vadd.f32 %v2441_v27, %v1095_v56 }
  0xa1   : > { %v1364_v7 = vadd.f32 %v2416_v19, %v1295_v9  ;;  %4216 = vst [vmem:[#allocation24_spill] sm:$0xff] %v2612_v10  ;;  %v721_v19 = vmul.f32 %v2320_v46, %v2581_v30  ;;  %v1135_v9 = vmul.f32 %v2330_v48, %v2581_v30  ;;  %v4219_v28 = vrot.slane %v2413_v18, 5 }
  0xa2   : > { %4217 = vst [vmem:[#allocation25_spill] sm:$0xff] %v2615_v33  ;;  %v1490_v24 = vsel %vm1487_vm4, %v1488_v36, %v4218_v58  ;;  %v593_v26 = vrot.slane %v520_v42, 1  ;;  %v1004_v6 = vrot.slane %v934_v37, 6  ;;  %v445_v36 = vmul.f32 %v2315_v45, %v309_v50 }
  0xa3   : > { %v1585_v4 = vadd.f32 %v1490_v24, %v1364_v7  ;;  %v1691_v43 = vsel %vm1688_vm5, %v1689_v34, %v4219_v28  ;;  %v794_v8 = vrot.slane %v721_v19, 2  ;;  %v1205_v51 = vrot.slane %v1135_v9, 7 }
  0xa4   : > { %v4220_v58 = vrot.slane %v2398_v13, 1  ;;  %v519_v35 = vmul.f32 %v2304_v41, %v309_v50  ;;  %v720_v27 = vmul.f32 %v2320_v46, %v309_v50  ;;  %v4221_v56 = vrot.slane %v2449_v31, 6 }
  0xa5   : > { %v1786_v40 = vadd.f32 %v1691_v43, %v1585_v4  ;;  %v4222_v42 = vrot.slane %v2401_v14, 2  ;;  %v4223_v24 = vrot.slane %v2404_v15, 6  ;;  %v477_v4 = vadd.f32 %v2344_v55, %v445_v36 }
  0xa6   : > { %v596_v29 = vsel %vm579_vm0, %v593_v26, %v4220_v58  ;;  %v1891_v7 = vsel %vm996_vm3, %v1889_v53, %v4221_v56  ;;  %v591_v28 = vrot.slane %v519_v35, 1  ;;  %v933_v53 = vmul.f32 %v2325_v47, %v309_v50 }
  0xa7   : > { %v684_v34 = vadd.f32 %v596_v29, %v478_v0  ;;  %v797_v19 = vsel %vm780_vm1, %v794_v8, %v4222_v42  ;;  %v1007_v43 = vsel %vm996_vm3, %v1004_v6, %v4223_v24  ;;  %v1986_v37 = vadd.f32 %v1891_v7, %v1786_v40  ;;  %v379_v42 = vpop.permute.xlu2 %378 }
  0xa8   : > { %v1098_v9 = vadd.f32 %v1007_v43, %v2424_v22  ;;  %v792_v0 = vrot.slane %v720_v27, 2  ;;  %v1134_v58 = vmul.f32 %v2330_v48, %v309_v50  ;;  %v4224_v40 = vrot.slane %v2407_v16, 7 }
  0xa9   : > { %v2661_v29 = vadd.f32 %v797_v19, %v684_v34  ;;  %v2018_v56 = vpack.c.bf16 %v1986_v37, %v1986_v37  ;;  %v4225_v35 = vrot.slane %v2310_v44, 1  ;;  %v594_v7 = vsel %vm579_vm0, %v591_v28, %v593_v26 }
  0xaa   : > { %v1208_v22 = vsel %vm1197_vm2, %v1205_v51, %v4224_v40  ;;  %v2676_v43 = vadd.f32 %v2422_v21, %v1296_v63  ;;  %v1335_v44 = vmul.f32 %v2379_v3, %v2581_v30  ;;  %v1002_v40 = vrot.slane %v933_v53, 6 }
  0xab   : > { %v592_v36 = vsel %vm579_vm0, %v4225_v35, %v591_v28  ;;  %v1299_v24 = vadd.f32 %v1208_v22, %v1098_v9  ;;  %2051 = vst.msk [vmem:[%s2659_s26] sm:$0xf] %vm2050_vm6, %v2018_v56  ;;  %v683_v26 = vadd.f32 %v594_v7, %v477_v4  ;;  %v4226_v28 = vrot.slane %v2339_v54, 2  ;;  %v329_v22 = vpop.permute.xlu1 %328 }
  0xac   : > { %v682_v37 = vadd.f32 %v592_v36, %v2419_v20  ;;  %v1203_v27 = vrot.slane %v1134_v58, 7  ;;  %v459_v19 = vmul.f32 %v2315_v45, %v379_v42  ;;  %v795_v9 = vsel %vm780_vm1, %v792_v0, %v794_v8 }
  0xad   : > { %v793_v35 = vsel %vm780_vm1, %v4226_v28, %v792_v0  ;;  %v4227_v21 = vrot.slane %v2354_v59, 6  ;;  %v1005_v56 = vsel %vm996_vm3, %v1002_v40, %v1004_v6  ;;  %v2693_v30 = vmul.f32 %v2304_v41, %v379_v42 }
  0xae   : > { %v2696_v20 = vadd.f32 %v2427_v23, %v1299_v24  ;;  %v1097_v4 = vadd.f32 %v1005_v56, %v2585_v32  ;;  %v1334_v53 = vmul.f32 %v2379_v3, %v309_v50  ;;  %v2701_v58 = vadd.f32 %v793_v35, %v682_v37 }
  0xaf   : > { %v1003_v63 = vsel %vm996_vm3, %v4227_v21, %v1002_v40  ;;  %4228 = vst [vmem:[#allocation26_spill] sm:$0xff] %v2693_v30  ;;  %v2704_v59 = vmul.f32 %v2320_v46, %v379_v42  ;;  %v2707_v8 = vmul.f32 %v2325_v47, %v379_v42  ;;  %v2710_v6 = vmul.f32 %v2330_v48, %v379_v42 }
  0xb0   : > { %v1096_v54 = vadd.f32 %v1003_v63, %v2583_v61  ;;  %v2712_v0 = vadd.f32 %v795_v9, %v683_v26  ;;  %v4232_v23 = vrot.slane %v2357_v60, 7  ;;  %v1206_v32 = vsel %vm1197_vm2, %v1203_v27, %v1205_v51 }
  0xb1   : > { %4229 = vst [vmem:[#allocation27_spill] sm:$0xff] %v2704_v59  ;;  %v2719_v50 = vadd.f32 %v2344_v55, %v459_v19  ;;  %v1298_v7 = vadd.f32 %v1206_v32, %v1097_v4  ;;  %v2723_v37 = vmul.f32 %v2379_v3, %v379_v42  ;;  %v2728_v60 = vmul.f32 %v2369_v1, %v379_v42 }
  0xb2   : > { %4230 = vst [vmem:[#allocation28_spill] sm:$0xff] %v2707_v8  ;;  %v1204_v61 = vsel %vm1197_vm2, %v4232_v23, %v1203_v27  ;;  %v2731_v51 = vmul.f32 %v2374_v2, %v379_v42  ;;  %v449_v19 = vmul.f32 %v2315_v45, %v329_v22  ;;  %v523_v28 = vmul.f32 %v2304_v41, %v329_v22 }
  0xb3   : > { %4231 = vst [vmem:[#allocation29_spill] sm:$0xff] %v2710_v6  ;;  %v1297_v36 = vadd.f32 %v1204_v61, %v1096_v54  ;;  %v2737_v35 = vmul.f32 %v2320_v46, %v329_v22  ;;  %v2740_v9 = vmul.f32 %v2394_v11, %v379_v42  ;;  %v937_v21 = vmul.f32 %v2325_v47, %v329_v22 }
  0xb4   : > { %4233 = vst [vmem:[#allocation30_spill] sm:$0xff] %v2719_v50  ;;  %v2744_v63 = vmul.f32 %v2330_v48, %v329_v22  ;;  %v1424_v56 = vmul.f32 %v2369_v1, %v329_v22  ;;  %v481_v54 = vadd.f32 %v2344_v55, %v449_v19  ;;  %v599_v4 = vrot.slane %v523_v28, 1  ;;  %v324_v28 = vpop.permute.xlu0 %323 }
  0xb5   : > { %4234 = vst [vmem:[#allocation31_spill] sm:$0xff] %v2723_v37  ;;  %v2750_v61 = vmul.f32 %v2374_v2, %v329_v22  ;;  %v1366_v32 = vadd.f32 %v1334_v53, %v1297_v36  ;;  %v1010_v27 = vrot.slane %v937_v21, 6  ;;  %v2753_v42 = vmul.f32 %v2394_v11, %v329_v22  ;;  %v4241_v21 = vld [vmem:[#allocation6_spill] sm:$0xff] }
  0xb6   : > { %4235 = vst [vmem:[#allocation32_spill] sm:$0xff] %v2728_v60  ;;  %v1493_v26 = vrot.slane %v1424_v56, 4  ;;  %v1367_v40 = vadd.f32 %v1335_v44, %v1298_v7  ;;  %v4238_v34 = vrot.slane %v2457_v38, 1  ;;  %v4240_v53 = vrot.slane %v4239_v57, 6  ;;  %v4243_v7 = vld [vmem:[#allocation3_spill] sm:$0xff] }
  0xb7   : > { %4236 = vst [vmem:[#allocation33_spill] sm:$0xff] %v2731_v51  ;;  %v1694_v19 = vrot.slane %v2750_v61, 5  ;;  %v4242_v56 = vrot.slane %v4241_v21, 4  ;;  %v4244_v24 = vrot.slane %v4243_v7, 2  ;;  %v4245_v6 = vrot.slane %v2737_v35, 2 }
  0xb8   : > { %4237 = vst [vmem:[#allocation34_spill] sm:$0xff] %v2740_v9  ;;  %v602_v37 = vsel %vm579_vm0, %v599_v4, %v4238_v34  ;;  %v1013_v36 = vsel %vm996_vm3, %v1010_v27, %v4240_v53  ;;  %v1211_v61 = vrot.slane %v2744_v63, 7  ;;  %v1894_v23 = vrot.slane %v2753_v42, 6 }
  0xb9   : > { %v687_v50 = vadd.f32 %v602_v37, %v481_v54  ;;  %v1496_v44 = vsel %vm1487_vm4, %v1493_v26, %v4242_v56  ;;  %v803_v34 = vsel %vm780_vm1, %v4245_v6, %v4244_v24  ;;  %v4246_v54 = vld [vmem:[#allocation7_spill] sm:$0xff]  ;;  %v448_v8 = vmul.f32 %v2315_v45, %v324_v28 }
  0xba   : > { %v1588_v60 = vadd.f32 %v1496_v44, %v1367_v40  ;;  %v4247_v51 = vrot.slane %v4246_v54, 5  ;;  %v522_v56 = vmul.f32 %v2304_v41, %v324_v28  ;;  %v1101_v30 = vadd.f32 %v1013_v36, %v2661_v29  ;;  %v4248_v40 = vld [vmem:[#allocation8_spill] sm:$0xff]  ;;  %v4250_v29 = vld [vmem:[#allocation5_spill] sm:$0xff] }
  0xbb   : > { %v2774_v37 = vadd.f32 %v803_v34, %v687_v50  ;;  %v936_v24 = vmul.f32 %v2325_v47, %v324_v28  ;;  %v4249_v63 = vrot.slane %v4248_v40, 6  ;;  %v723_v44 = vmul.f32 %v2320_v46, %v324_v28 }
  0xbc   : > { %v1697_v53 = vsel %vm1688_vm5, %v1694_v19, %v4247_v51  ;;  %v597_v42 = vrot.slane %v522_v56, 1  ;;  %v1137_v51 = vmul.f32 %v2330_v48, %v324_v28  ;;  %v1423_v33 = vmul.f32 %v2369_v1, %v324_v28 }
  0xbd   : > { %v1789_v6 = vadd.f32 %v1697_v53, %v1588_v60  ;;  %v1897_v50 = vsel %vm996_vm3, %v1894_v23, %v4249_v63  ;;  %v1008_v52 = vrot.slane %v936_v24, 6  ;;  %v1624_v59 = vmul.f32 %v2374_v2, %v324_v28 }
  0xbe   : > { %v4251_v60 = vrot.slane %v4250_v29, 7  ;;  %v2795_v53 = vmul.f32 %v2379_v3, %v329_v22  ;;  %v480_v56 = vadd.f32 %v2344_v55, %v448_v8  ;;  %v4252_v63 = vrot.slane %v2398_v13, 1  ;;  %v4254_v13 = vld [vmem:[#allocation2_spill] sm:$0xff] }
  0xbf   : > { %v1989_v34 = vadd.f32 %v1897_v50, %v1789_v6  ;;  %v600_v50 = vsel %vm579_vm0, %v597_v42, %v599_v4  ;;  %v4253_v10 = vrot.slane %v2404_v15, 6  ;;  %v1209_v25 = vrot.slane %v1137_v51, 7 }
  0xc0   : > { %v1214_v36 = vsel %vm1197_vm2, %v1211_v61, %v4251_v60  ;;  %v598_v9 = vsel %vm579_vm0, %v4252_v63, %v597_v42  ;;  %v1011_v60 = vsel %vm996_vm3, %v1008_v52, %v1010_v27  ;;  %v1491_v39 = vrot.slane %v1423_v33, 4 }
  0xc1   : > { %v2801_v6 = vadd.f32 %v1214_v36, %v1101_v30  ;;  %v2021_v24 = vpack.c.bf16 %v1989_v34, %v1989_v34  ;;  %v1009_v62 = vsel %vm996_vm3, %v4253_v10, %v1008_v52  ;;  %v685_v8 = vadd.f32 %v598_v9, %v4254_v13  ;;  %v394_v36 = vpop.permute.xlu2 %393  ;;  %v2847_v13 = vpop.permute.xlu1 %343 }
  0xc2   : > { %v1099_v22 = vadd.f32 %v1009_v62, %v2701_v58  ;;  %v798_v63 = vrot.slane %v723_v44, 2  ;;  %v1337_v30 = vmul.f32 %v2379_v3, %v324_v28  ;;  %v1692_v34 = vrot.slane %v1624_v59, 5 }
  0xc3   : > { %2054 = vst.msk [vmem:[%s2659_s26 + $0xc] sm:$0xf] %vm2050_vm6, %v2021_v24  ;;  %v686_v4 = vadd.f32 %v600_v50, %v480_v56  ;;  %v4255_v15 = vrot.slane %v2407_v16, 7  ;;  %v4256_v52 = vrot.slane %v2410_v17, 4  ;;  %v1494_v33 = vsel %vm1487_vm4, %v1491_v39, %v1493_v26 }
  0xc4   : > { %v1100_v58 = vadd.f32 %v1011_v60, %v2712_v0  ;;  %v1587_v42 = vadd.f32 %v1494_v33, %v1366_v32  ;;  %v4257_v59 = vrot.slane %v2413_v18, 5  ;;  %v1695_v16 = vsel %vm1688_vm5, %v1692_v34, %v1694_v19 }
  0xc5   : > { %v1210_v10 = vsel %vm1197_vm2, %v4255_v15, %v1209_v25  ;;  %v1492_v62 = vsel %vm1487_vm4, %v4256_v52, %v1491_v39  ;;  %v1825_v51 = vmul.f32 %v2394_v11, %v324_v28  ;;  %v462_v17 = vmul.f32 %v2315_v45, %v394_v36 }
  0xc6   : > { %v1300_v27 = vadd.f32 %v1210_v10, %v1099_v22  ;;  %v1586_v9 = vadd.f32 %v1492_v62, %v2676_v43  ;;  %v1693_v44 = vsel %vm1688_vm5, %v4257_v59, %v1692_v34  ;;  %v4258_v56 = vrot.slane %v2401_v14, 2 }
  0xc7   : > { %v1788_v0 = vadd.f32 %v1695_v16, %v1587_v42  ;;  %v2832_v24 = vmul.f32 %v2304_v41, %v394_v36  ;;  %v4259_v43 = vrot.slane %v2737_v35, 2  ;;  %v1212_v19 = vsel %vm1197_vm2, %v1209_v25, %v1211_v61 }
  0xc8   : > { %v799_v39 = vsel %vm780_vm1, %v4258_v56, %v798_v63  ;;  %v1787_v26 = vadd.f32 %v1693_v44, %v1586_v9  ;;  %v1892_v28 = vrot.slane %v1825_v51, 6  ;;  %v1301_v60 = vadd.f32 %v1212_v19, %v1100_v58 }
  0xc9   : > { %v801_v18 = vsel %vm780_vm1, %v798_v63, %v4259_v43  ;;  %v2837_v32 = vadd.f32 %v799_v39, %v685_v8  ;;  %v2842_v14 = vadd.f32 %v1337_v30, %v1300_v27  ;;  %v2845_v22 = vadd.f32 %v2344_v55, %v462_v17 }
  0xca   : > { %v2840_v50 = vadd.f32 %v801_v18, %v686_v4  ;;  %v4261_v34 = vrot.slane %v2449_v31, 6  ;;  %v1895_v8 = vsel %vm996_vm3, %v1892_v28, %v1894_v23  ;;  %v2854_v63 = vmul.f32 %v2320_v46, %v394_v36 }
  0xcb   : > { %4260 = vst [vmem:[#allocation4_spill] sm:$0xff] %v2845_v22  ;;  %v2857_v25 = vmul.f32 %v2325_v47, %v394_v36  ;;  %v1988_v30 = vadd.f32 %v1895_v8, %v1788_v0  ;;  %v2861_v15 = vmul.f32 %v2330_v48, %v394_v36  ;;  %v2864_v31 = vmul.f32 %v2379_v3, %v394_v36  ;;  %v4270_v8 = vld [vmem:[#allocation12_spill] sm:$0xff]  ;;  %v4277_v22 = vld [vmem:[#allocation14_spill] sm:$0xff] }
  0xcc   : > { %v1893_v35 = vsel %vm996_vm3, %v4261_v34, %v1892_v28  ;;  %4262 = vst [vmem:[#allocation6_spill] sm:$0xff] %v2854_v63  ;;  %v2867_v10 = vmul.f32 %v2369_v1, %v394_v36  ;;  %v452_v23 = vmul.f32 %v2315_v45, %v2847_v13  ;;  %v526_v52 = vmul.f32 %v2304_v41, %v2847_v13  ;;  %v339_v28 = vpop.permute.xlu0 %338  ;;  %v4281_v63 = vld [vmem:[#allocation10_spill] sm:$0xff] }
  0xcd   : > { %v1987_v61 = vadd.f32 %v1893_v35, %v1787_v26  ;;  %4263 = vst [vmem:[#allocation3_spill] sm:$0xff] %v2861_v15  ;;  %v2020_v33 = vpack.c.bf16 %v1988_v30, %v1988_v30  ;;  %v2875_v58 = vmul.f32 %v2320_v46, %v2847_v13  ;;  %v940_v27 = vmul.f32 %v2325_v47, %v2847_v13  ;;  %v4267_v26 = vld [vmem:[#allocation11_spill] sm:$0xff] }
  0xce   : > { %4264 = vst [vmem:[#allocation7_spill] sm:$0xff] %v2864_v31  ;;  %v484_v59 = vadd.f32 %v2344_v55, %v452_v23  ;;  %v605_v44 = vrot.slane %v526_v52, 1  ;;  %v2888_v56 = vmul.f32 %v2330_v48, %v2847_v13  ;;  %v2893_v39 = vmul.f32 %v2374_v2, %v394_v36  ;;  %v4272_v52 = vld [vmem:[#allocation13_spill] sm:$0xff] }
  0xcf   : > { %4265 = vst [vmem:[#allocation8_spill] sm:$0xff] %v2867_v10  ;;  %v2019_v62 = vpack.c.bf16 %v1987_v61, %v1987_v61  ;;  %v806_v51 = vrot.slane %v2875_v58, 2  ;;  %v1016_v17 = vrot.slane %v940_v27, 6  ;;  %v4268_v0 = vrot.slane %v4267_v26, 1 }
  0xd0   : > { %2053 = vst.msk [vmem:[%s2659_s26 + $0x8] sm:$0xf] %vm2050_vm6, %v2020_v33  ;;  %v1427_v18 = vmul.f32 %v2369_v1, %v2847_v13  ;;  %v2902_v19 = vmul.f32 %v2374_v2, %v2847_v13  ;;  %v2905_v34 = vmul.f32 %v2394_v11, %v394_v36  ;;  %v4271_v61 = vrot.slane %v4270_v8, 2 }
  0xd1   : > { %2052 = vst.msk [vmem:[%s2659_s26 + $0x4] sm:$0xf] %vm2050_vm6, %v2019_v62  ;;  %v608_v43 = vsel %vm579_vm0, %v605_v44, %v4268_v0  ;;  %v1370_v23 = vadd.f32 %v2795_v53, %v1301_v60  ;;  %v4273_v62 = vrot.slane %v4272_v52, 6  ;;  %v2917_v0 = vmul.f32 %v2394_v11, %v2847_v13 }
  0xd2   : > { %4266 = vst [vmem:[#allocation5_spill] sm:$0xff] %v2893_v39  ;;  %v690_v35 = vadd.f32 %v608_v43, %v484_v59  ;;  %v809_v30 = vsel %vm780_vm1, %v806_v51, %v4271_v61  ;;  %v1499_v58 = vrot.slane %v1427_v18, 4  ;;  %v1700_v27 = vrot.slane %v2902_v19, 5 }
  0xd3   : > { %4269 = vst [vmem:[#allocation2_spill] sm:$0xff] %v2905_v34  ;;  %v1019_v33 = vsel %vm996_vm3, %v1016_v17, %v4273_v62  ;;  %v1217_v59 = vrot.slane %v2888_v56, 7  ;;  %v451_v43 = vmul.f32 %v2315_v45, %v339_v28  ;;  %v525_v61 = vmul.f32 %v2304_v41, %v339_v28  ;;  %v4274_v62 = vld [vmem:[#allocation17_spill] sm:$0xff] }
  0xd4   : > { %v2919_v36 = vadd.f32 %v809_v30, %v690_v35  ;;  %v4275_v18 = vrot.slane %v4274_v62, 4  ;;  %v1900_v16 = vrot.slane %v2917_v0, 6  ;;  %v726_v56 = vmul.f32 %v2320_v46, %v339_v28 }
  0xd5   : > { %v603_v30 = vrot.slane %v525_v61, 1  ;;  %v1104_v42 = vadd.f32 %v1019_v33, %v2774_v37  ;;  %v4276_v4 = vrot.slane %v2529_v12, 5  ;;  %v939_v60 = vmul.f32 %v2325_v47, %v339_v28 }
  0xd6   : > { %v1502_v19 = vsel %vm1487_vm4, %v1499_v58, %v4275_v18  ;;  %v1140_v31 = vmul.f32 %v2330_v48, %v339_v28  ;;  %v4278_v18 = vrot.slane %v4277_v22, 7  ;;  %v4279_v61 = vrot.slane %v2457_v38, 1 }
  0xd7   : > { %v1591_v35 = vadd.f32 %v1502_v19, %v1370_v23  ;;  %v1703_v53 = vsel %vm1688_vm5, %v1700_v27, %v4276_v4  ;;  %v483_v23 = vadd.f32 %v2344_v55, %v451_v43  ;;  %v4280_v37 = vrot.slane %v2532_v5, 6 }
  0xd8   : > { %v1220_v0 = vsel %vm1197_vm2, %v1217_v59, %v4278_v18  ;;  %v604_v19 = vsel %vm579_vm0, %v4279_v61, %v603_v30  ;;  %v606_v4 = vsel %vm579_vm0, %v603_v30, %v605_v44  ;;  %v804_v9 = vrot.slane %v726_v56, 2 }
  0xd9   : > { %v1792_v15 = vadd.f32 %v1703_v53, %v1591_v35  ;;  %v1903_v33 = vsel %vm996_vm3, %v1900_v16, %v4280_v37  ;;  %v1014_v34 = vrot.slane %v939_v60, 6  ;;  %v688_v10 = vadd.f32 %v604_v19, %v4281_v63 }
  0xda   : > { %v1215_v18 = vrot.slane %v1140_v31, 7  ;;  %v1426_v53 = vmul.f32 %v2369_v1, %v339_v28  ;;  %v2951_v43 = vadd.f32 %v1220_v0, %v1104_v42  ;;  %v2955_v38 = vmul.f32 %v2379_v3, %v2847_v13 }
  0xdb   : > { %v1992_v39 = vadd.f32 %v1903_v33, %v1792_v15  ;;  %v4282_v35 = vrot.slane %v4239_v57, 6  ;;  %v1017_v44 = vsel %vm996_vm3, %v1014_v34, %v1016_v17  ;;  %v689_v15 = vadd.f32 %v606_v4, %v483_v23 }
  0xdc   : > { %v1340_v63 = vmul.f32 %v2379_v3, %v339_v28  ;;  %v4283_v31 = vrot.slane %v4243_v7, 2  ;;  %v1497_v56 = vrot.slane %v1426_v53, 4  ;;  %v1627_v13 = vmul.f32 %v2374_v2, %v339_v28  ;;  %v409_v7 = vpop.permute.xlu2 %408 }
  0xdd   : > { %v1015_v61 = vsel %vm996_vm3, %v4282_v35, %v1014_v34  ;;  %v2024_v60 = vpack.c.bf16 %v1992_v39, %v1992_v39  ;;  %v1828_v0 = vmul.f32 %v2394_v11, %v339_v28  ;;  %v807_v57 = vsel %vm780_vm1, %v804_v9, %v806_v51 }
  0xde   : > { %v1102_v30 = vadd.f32 %v1015_v61, %v2837_v32  ;;  %v805_v42 = vsel %vm780_vm1, %v4283_v31, %v804_v9  ;;  %v1103_v39 = vadd.f32 %v1017_v44, %v2840_v50  ;;  %v4284_v32 = vrot.slane %v4250_v29, 7 }
  0xdf   : > { %2057 = vst.msk [vmem:[%s2659_s26 + $0x18] sm:$0xf] %vm2050_vm6, %v2024_v60  ;;  %v2971_v17 = vadd.f32 %v805_v42, %v688_v10  ;;  %v4285_v23 = vrot.slane %v4241_v21, 4  ;;  %v1500_v37 = vsel %vm1487_vm4, %v1497_v56, %v1499_v58  ;;  %v1698_v28 = vrot.slane %v1627_v13, 5 }
  0xe0   : > { %v1216_v34 = vsel %vm1197_vm2, %v4284_v32, %v1215_v18  ;;  %v1898_v33 = vrot.slane %v1828_v0, 6  ;;  %v2981_v4 = vadd.f32 %v807_v57, %v689_v15  ;;  %v1590_v50 = vadd.f32 %v1500_v37, %v2842_v14  ;;  %v4303_v37 = vld [vmem:[#allocation24_spill] sm:$0xff] }
  0xe1   : > { %v1498_v19 = vsel %vm1487_vm4, %v4285_v23, %v1497_v56  ;;  %v1303_v9 = vadd.f32 %v1216_v34, %v1102_v30  ;;  %v4286_v29 = vrot.slane %v4246_v54, 5  ;;  %v1701_v53 = vsel %vm1688_vm5, %v1698_v28, %v1700_v27  ;;  %v359_v30 = vpop.permute.xlu1 %358 }
  0xe2   : > { %v1589_v10 = vadd.f32 %v1498_v19, %v2696_v20  ;;  %v465_v21 = vmul.f32 %v2315_v45, %v409_v7  ;;  %v2991_v35 = vmul.f32 %v2304_v41, %v409_v7  ;;  %v1218_v58 = vsel %vm1197_vm2, %v1215_v18, %v1217_v59 }
  0xe3   : > { %v1699_v51 = vsel %vm1688_vm5, %v4286_v29, %v1698_v28  ;;  %v1791_v44 = vadd.f32 %v1701_v53, %v1590_v50  ;;  %v2995_v60 = vmul.f32 %v2320_v46, %v409_v7  ;;  %v1304_v20 = vadd.f32 %v1218_v58, %v1103_v39  ;;  %v4301_v28 = vld [vmem:[#allocation23_spill] sm:$0xff] }
  0xe4   : > { %4287 = vst [vmem:[#allocation11_spill] sm:$0xff] %v2991_v35  ;;  %v1790_v61 = vadd.f32 %v1699_v51, %v1589_v10  ;;  %v4289_v14 = vrot.slane %v4248_v40, 6  ;;  %v1901_v15 = vsel %vm996_vm3, %v1898_v33, %v1900_v16  ;;  %v3002_v27 = vmul.f32 %v2325_v47, %v409_v7 }
  0xe5   : > { %4288 = vst [vmem:[#allocation12_spill] sm:$0xff] %v2995_v60  ;;  %v1991_v42 = vadd.f32 %v1901_v15, %v1791_v44  ;;  %v3005_v59 = vmul.f32 %v2330_v48, %v409_v7  ;;  %v3008_v18 = vmul.f32 %v2369_v1, %v409_v7  ;;  %v3010_v56 = vadd.f32 %v1340_v63, %v1303_v9  ;;  %v354_v44 = vpop.permute.xlu0 %353 }
  0xe6   : > { %v1899_v54 = vsel %vm996_vm3, %v4289_v14, %v1898_v33  ;;  %v3013_v40 = vadd.f32 %v2344_v55, %v465_v21  ;;  %v3017_v13 = vmul.f32 %v2379_v3, %v409_v7  ;;  %v455_v32 = vmul.f32 %v2315_v45, %v359_v30 }
  0xe7   : > { %v1990_v31 = vadd.f32 %v1899_v54, %v1790_v61  ;;  %4290 = vst [vmem:[#allocation13_spill] sm:$0xff] %v3005_v59  ;;  %v2023_v57 = vpack.c.bf16 %v1991_v42, %v1991_v42  ;;  %v3022_v34 = vmul.f32 %v2374_v2, %v409_v7  ;;  %v529_v63 = vmul.f32 %v2304_v41, %v359_v30 }
  0xe8   : > { %4291 = vst [vmem:[#allocation17_spill] sm:$0xff] %v3008_v18  ;;  %v3026_v23 = vmul.f32 %v2320_v46, %v359_v30  ;;  %v943_v19 = vmul.f32 %v2325_v47, %v359_v30  ;;  %v487_v9 = vadd.f32 %v2344_v55, %v455_v32  ;;  %v1430_v51 = vmul.f32 %v2369_v1, %v359_v30  ;;  %v4345_v18 = vld [vmem:[#allocation15_spill] sm:$0xff] }
  0xe9   : > { %4292 = vst [vmem:[#allocation14_spill] sm:$0xff] %v3013_v40  ;;  %v2022_v0 = vpack.c.bf16 %v1990_v31, %v1990_v31  ;;  %v611_v10 = vrot.slane %v529_v63, 1  ;;  %v3040_v53 = vmul.f32 %v2394_v11, %v409_v7  ;;  %v3043_v21 = vmul.f32 %v2330_v48, %v359_v30  ;;  %v4299_v63 = vld [vmem:[#allocation19_spill] sm:$0xff] }
  0xea   : > { %4293 = vst [vmem:[#allocation10_spill] sm:$0xff] %v3017_v13  ;;  %v4144_v50 = vrot.slane %v3026_v23, 2  ;;  %v1022_v29 = vrot.slane %v943_v19, 6  ;;  %v3046_v58 = vmul.f32 %v2374_v2, %v359_v30  ;;  %v3049_v61 = vmul.f32 %v2394_v11, %v359_v30 }
  0xeb   : > { %4294 = vst [vmem:[#allocation35_spill] sm:$0xff] %v3022_v34  ;;  %v4296_v54 = vrot.slane %v2561_v49, 1  ;;  %v1373_v31 = vadd.f32 %v2955_v38, %v1304_v20  ;;  %v1505_v7 = vrot.slane %v1430_v51, 4  ;;  %v4300_v19 = vrot.slane %v4299_v63, 6 }
  0xec   : > { %2055 = vst.msk [vmem:[%s2659_s26 + $0x10] sm:$0xf] %vm2050_vm6, %v2022_v0  ;;  %v4297_v0 = vld [vmem:[#allocation18_spill] sm:$0xff]  ;;  %v1706_v16 = vrot.slane %v3046_v58, 5  ;;  %v4302_v14 = vrot.slane %v4301_v28, 4  ;;  %v454_v20 = vmul.f32 %v2315_v45, %v354_v44  ;;  %v3077_v58 = vmul.f32 %v2379_v3, %v359_v30 }
  0xed   : > { %2056 = vst.msk [vmem:[%s2659_s26 + $0x14] sm:$0xf] %vm2050_vm6, %v2023_v57  ;;  %v614_v15 = vsel %vm579_vm0, %v611_v10, %v4296_v54  ;;  %v4298_v57 = vrot.slane %v4297_v0, 2  ;;  %v1025_v39 = vsel %vm996_vm3, %v1022_v29, %v4300_v19  ;;  %v942_v51 = vmul.f32 %v2325_v47, %v354_v44 }
  0xee   : > { %4295 = vst [vmem:[#allocation36_spill] sm:$0xff] %v3040_v53  ;;  %v693_v42 = vadd.f32 %v614_v15, %v487_v9  ;;  %v1508_v54 = vsel %vm1487_vm4, %v1505_v7, %v4302_v14  ;;  %v528_v9 = vmul.f32 %v2304_v41, %v354_v44  ;;  %v1107_v19 = vadd.f32 %v1025_v39, %v2919_v36 }
  0xef   : > { %v815_v32 = vsel %vm780_vm1, %v4144_v50, %v4298_v57  ;;  %v1223_v57 = vrot.slane %v3043_v21, 7  ;;  %v1594_v33 = vadd.f32 %v1508_v54, %v1373_v31  ;;  %v4304_v14 = vrot.slane %v4303_v37, 5 }
  0xf0   : > { %v3072_v15 = vadd.f32 %v815_v32, %v693_v42  ;;  %v609_v38 = vrot.slane %v528_v9, 1  ;;  %v729_v41 = vmul.f32 %v2320_v46, %v354_v44  ;;  %v1143_v42 = vmul.f32 %v2330_v48, %v354_v44  ;;  %v4305_v32 = vld [vmem:[#allocation25_spill] sm:$0xff] }
  0xf1   : > { %v1709_v50 = vsel %vm1688_vm5, %v1706_v16, %v4304_v14  ;;  %v4306_v21 = vrot.slane %v4305_v32, 6  ;;  %v4307_v31 = vrot.slane %v3049_v61, 6  ;;  %v486_v30 = vadd.f32 %v2344_v55, %v454_v20 }
  0xf2   : > { %v1795_v45 = vadd.f32 %v1709_v50, %v1594_v33  ;;  %v4308_v39 = vrot.slane %v4267_v26, 1  ;;  %v1429_v33 = vmul.f32 %v2369_v1, %v354_v44  ;;  %v4309_v50 = vld [vmem:[#allocation20_spill] sm:$0xff]  ;;  %v612_v9 = vsel %vm579_vm0, %v609_v38, %v611_v10 }
  0xf3   : > { %v1909_v36 = vsel %vm996_vm3, %v4307_v31, %v4306_v21  ;;  %v4310_v46 = vrot.slane %v4309_v50, 7  ;;  %v1020_v14 = vrot.slane %v942_v51, 6  ;;  %v4311_v21 = vld [vmem:[#allocation9_spill] sm:$0xff]  ;;  %v1221_v20 = vrot.slane %v1143_v42, 7 }
  0xf4   : > { %v610_v54 = vsel %vm579_vm0, %v4308_v39, %v609_v38  ;;  %v1995_v48 = vadd.f32 %v1909_v36, %v1795_v45  ;;  %v1371_v55 = vadd.f32 %v4311_v21, %v2801_v6  ;;  %v1503_v26 = vrot.slane %v1429_v33, 4  ;;  %v4312_v39 = vld [vmem:[#allocation16_spill] sm:$0xff]  ;;  %v3122_v36 = vpop.permute.xlu2 %423 }
  0xf5   : > { %v1226_v47 = vsel %vm1197_vm2, %v1223_v57, %v4310_v46  ;;  %v691_v40 = vadd.f32 %v610_v54, %v4312_v39  ;;  %v810_v1 = vrot.slane %v729_v41, 2  ;;  %v4313_v35 = vrot.slane %v4272_v52, 6  ;;  %4316 = vst [vmem:[#allocation18_spill] sm:$0xff] %v3122_v36 }
  0xf6   : > { %v3099_v60 = vadd.f32 %v1226_v47, %v1107_v19  ;;  %v2027_v31 = vpack.c.bf16 %v1995_v48, %v1995_v48  ;;  %v692_v13 = vadd.f32 %v612_v9, %v486_v30  ;;  %v1023_v45 = vsel %vm996_vm3, %v1020_v14, %v1022_v29 }
  0xf7   : > { %v1021_v46 = vsel %vm996_vm3, %v4313_v35, %v1020_v14  ;;  %v4314_v38 = vrot.slane %v4277_v22, 7  ;;  %v1106_v6 = vadd.f32 %v1023_v45, %v2981_v4  ;;  %v4315_v19 = vrot.slane %v4274_v62, 4  ;;  %v3187_v45 = vld [vmem:[%s4075_s2] ss:$0 sm:$0xff] }
  0xf8   : > { %v1105_v10 = vadd.f32 %v1021_v46, %v2971_v17  ;;  %2060 = vst.msk [vmem:[%s2659_s26 + $0x24] sm:$0xf] %vm2050_vm6, %v2027_v31  ;;  %v1506_v52 = vsel %vm1487_vm4, %v1503_v26, %v1505_v7  ;;  %v1630_v35 = vmul.f32 %v2374_v2, %v354_v44  ;;  %v1831_v22 = vmul.f32 %v2394_v11, %v354_v44  ;;  %v3169_v31 = vld [vmem:[%s4075_s2 + $0x4] ss:$0 sm:$0xff] }
  0xf9   : > { %v1222_v51 = vsel %vm1197_vm2, %v4314_v38, %v1221_v20  ;;  %v1504_v41 = vsel %vm1487_vm4, %v4315_v19, %v1503_v26  ;;  %v1593_v17 = vadd.f32 %v1506_v52, %v3010_v56  ;;  %v4317_v30 = vrot.slane %v4270_v8, 2 }
  0xfa   : > { %v1306_v42 = vadd.f32 %v1222_v51, %v1105_v10  ;;  %v1592_v29 = vadd.f32 %v1504_v41, %v1371_v55  ;;  %v4318_v62 = vrot.slane %v3026_v23, 2  ;;  %v1343_v7 = vmul.f32 %v2379_v3, %v354_v44  ;;  %v3143_v23 = vld [vmem:[%s4075_s2 + $0x3] ss:$0 sm:$0xff] }
  0xfb   : > { %v811_v4 = vsel %vm780_vm1, %v4317_v30, %v810_v1  ;;  %v1704_v33 = vrot.slane %v1630_v35, 5  ;;  %v1224_v56 = vsel %vm1197_vm2, %v1221_v20, %v1223_v57  ;;  %v1904_v11 = vrot.slane %v1831_v22, 6 }
  0xfc   : > { %v813_v54 = vsel %vm780_vm1, %v810_v1, %v4318_v62  ;;  %v3131_v2 = vadd.f32 %v811_v4, %v691_v40  ;;  %v1307_v48 = vadd.f32 %v1224_v56, %v1106_v6  ;;  %v4319_v9 = vrot.slane %v2529_v12, 5  ;;  %v374_v40 = vpop.permute.xlu1 %373  ;;  %v3154_v12 = vld [vmem:[%s4075_s2 + $0x1] ss:$0 sm:$0xff]  ;;  %v3178_v1 = vld [vmem:[%s4075_s2 + $0x6] ss:$0 sm:$0xff] }
  0xfd   : > { %v3133_v47 = vadd.f32 %v813_v54, %v692_v13  ;;  %v1707_v14 = vsel %vm1688_vm5, %v1704_v33, %v1706_v16  ;;  %v3147_v3 = vmul.f32 %v3143_v23, %v3122_v36  ;;  %v3149_v13 = vadd.f32 %v1343_v7, %v1306_v42  ;;  %v3195_v6 = vld [vmem:[%s4075_s2 + $0x2] ss:$0 sm:$0xff]  ;;  %v3214_v4 = vld [vmem:[%s4075_s2 + $0x7] ss:$0 sm:$0xff] }
  0xfe   : > { %v1705_v8 = vsel %vm1688_vm5, %v4319_v9, %v1704_v33  ;;  %v1794_v57 = vadd.f32 %v1707_v14, %v1593_v17  ;;  %v3158_v16 = vmul.f32 %v3154_v12, %v3122_v36  ;;  %v4322_v21 = vrot.slane %v2532_v5, 6  ;;  %v3226_v33 = vld [vmem:[%s4075_s2 + $0x8] ss:$0 sm:$0xff] }
  0xff   : > { %4320 = vst [vmem:[#allocation19_spill] sm:$0xff] %v3147_v3  ;;  %v1793_v44 = vadd.f32 %v1705_v8, %v1592_v29  ;;  %v4323_v20 = vrot.slane %v3049_v61, 6  ;;  %v3173_v39 = vmul.f32 %v3169_v31, %v3122_v36  ;;  %v3182_v5 = vmul.f32 %v3178_v1, %v3122_v36  ;;  %v3207_v29 = vld [vmem:[%s4076_s3] ss:$0 sm:$0xff] }
 0x100   : > { %4321 = vst [vmem:[#allocation23_spill] sm:$0xff] %v3158_v16  ;;  %v1905_v55 = vsel %vm996_vm3, %v4322_v21, %v1904_v11  ;;  %v458_v10 = vmul.f32 %v3187_v45, %v374_v40  ;;  %v532_v38 = vmul.f32 %v3154_v12, %v374_v40  ;;  %v3198_v19 = vmul.f32 %v3195_v6, %v374_v40 }
 0x101   : > { %v1907_v26 = vsel %vm996_vm3, %v1904_v11, %v4323_v20  ;;  %4324 = vst [vmem:[#allocation24_spill] sm:$0xff] %v3173_v39  ;;  %v1993_v61 = vadd.f32 %v1905_v55, %v1793_v44  ;;  %v946_v41 = vmul.f32 %v3143_v23, %v374_v40  ;;  %v3202_v52 = vmul.f32 %v3169_v31, %v374_v40  ;;  %v4329_v11 = vld [vmem:[#allocation26_spill] sm:$0xff]  ;;  %v4337_v20 = vld [vmem:[#allocation33_spill] sm:$0xff] }
 0x102   : > { %4325 = vst [vmem:[#allocation25_spill] sm:$0xff] %v3182_v5  ;;  %v1994_v46 = vadd.f32 %v1907_v26, %v1794_v57  ;;  %v490_v17 = vadd.f32 %v3207_v29, %v458_v10  ;;  %v617_v22 = vrot.slane %v532_v38, 1  ;;  %v3218_v62 = vmul.f32 %v3214_v4, %v3122_v36  ;;  %v369_v57 = vpop.permute.xlu0 %368  ;;  %v4339_v39 = vld [vmem:[#allocation29_spill] sm:$0xff] }
 0x103   : > { %v2025_v35 = vpack.c.bf16 %v1993_v61, %v1993_v61  ;;  %4326 = vst [vmem:[#allocation20_spill] sm:$0xff] %v3207_v29  ;;  %v818_v54 = vrot.slane %v3198_v19, 2  ;;  %v1028_v7 = vrot.slane %v946_v41, 6  ;;  %v3230_v56 = vmul.f32 %v3226_v33, %v3122_v36  ;;  %v4331_v61 = vld [vmem:[#allocation27_spill] sm:$0xff] }
 0x104   : > { %v2026_v42 = vpack.c.bf16 %v1994_v46, %v1994_v46  ;;  %4327 = vst [vmem:[#allocation9_spill] sm:$0xff] %v3218_v62  ;;  %v4330_v9 = vrot.slane %v4329_v11, 1  ;;  %v1433_v14 = vmul.f32 %v3178_v1, %v374_v40  ;;  %v3237_v44 = vmul.f32 %v3214_v4, %v374_v40 }
 0x105   : > { %2058 = vst.msk [vmem:[%s2659_s26 + $0x1c] sm:$0xf] %vm2050_vm6, %v2025_v35  ;;  %v1376_v26 = vadd.f32 %v3077_v58, %v1307_v48  ;;  %v4332_v46 = vrot.slane %v4331_v61, 2  ;;  %v3249_v41 = vmul.f32 %v3226_v33, %v374_v40  ;;  %v531_v58 = vmul.f32 %v3154_v12, %v369_v57 }
 0x106   : > { %4328 = vst [vmem:[#allocation16_spill] sm:$0xff] %v3230_v56  ;;  %v620_v8 = vsel %vm579_vm0, %v617_v22, %v4330_v9  ;;  %v1511_v38 = vrot.slane %v1433_v14, 4  ;;  %v1712_v19 = vrot.slane %v3237_v44, 5  ;;  %v4335_v14 = vld [vmem:[#allocation32_spill] sm:$0xff]  ;;  %v732_v48 = vmul.f32 %v3195_v6, %v369_v57 }
 0x107   : > { %2059 = vst.msk [vmem:[%s2659_s26 + $0x20] sm:$0xf] %vm2050_vm6, %v2026_v42  ;;  %v696_v55 = vadd.f32 %v620_v8, %v490_v17  ;;  %v821_v10 = vsel %vm780_vm1, %v818_v54, %v4332_v46  ;;  %v4333_v42 = vld [vmem:[#allocation28_spill] sm:$0xff]  ;;  %v457_v8 = vmul.f32 %v3187_v45, %v369_v57  ;;  %v4336_v30 = vrot.slane %v4335_v14, 4 }
 0x108   : > { %v4334_v9 = vrot.slane %v4333_v42, 6  ;;  %v1912_v51 = vrot.slane %v3249_v41, 6  ;;  %v615_v21 = vrot.slane %v531_v58, 1  ;;  %v4338_v16 = vrot.slane %v4337_v20, 5  ;;  %v4342_v58 = vld [vmem:[#allocation34_spill] sm:$0xff] }
 0x109   : > { %v3251_v35 = vadd.f32 %v821_v10, %v696_v55  ;;  %v1514_v44 = vsel %vm1487_vm4, %v1511_v38, %v4336_v30  ;;  %v3267_v55 = vld [vmem:[%s4075_s2 + $0x5] ss:$0 sm:$0xff]  ;;  %v945_v41 = vmul.f32 %v3143_v23, %v369_v57  ;;  %v1146_v36 = vmul.f32 %v3169_v31, %v369_v57 }
 0x10a   : > { %v1031_v17 = vsel %vm996_vm3, %v1028_v7, %v4334_v9  ;;  %v3270_v10 = vmul.f32 %v3267_v55, %v374_v40  ;;  %v1597_v9 = vadd.f32 %v1514_v44, %v1376_v26  ;;  %v1715_v30 = vsel %vm1688_vm5, %v1712_v19, %v4338_v16 }
 0x10b   : > { %v1110_v46 = vadd.f32 %v1031_v17, %v3072_v15  ;;  %v4340_v3 = vrot.slane %v4339_v39, 7  ;;  %v4341_v56 = vrot.slane %v3202_v52, 7  ;;  %v4343_v44 = vrot.slane %v4342_v58, 6 }
 0x10c   : > { %v1798_v26 = vadd.f32 %v1715_v30, %v1597_v9  ;;  %v489_v15 = vadd.f32 %v3207_v29, %v457_v8  ;;  %v4344_v17 = vrot.slane %v2561_v49, 1  ;;  %v618_v5 = vsel %vm579_vm0, %v615_v21, %v617_v22 }
 0x10d   : > { %v1232_v40 = vsel %vm1197_vm2, %v4341_v56, %v4340_v3  ;;  %v1915_v62 = vsel %vm996_vm3, %v1912_v51, %v4343_v44  ;;  %v1026_v53 = vrot.slane %v945_v41, 6  ;;  %v1227_v59 = vrot.slane %v1146_v36, 7  ;;  %v4347_v36 = vld [vmem:[#allocation21_spill] sm:$0xff] }
 0x10e   : > { %v616_v16 = vsel %vm579_vm0, %v4344_v17, %v615_v21  ;;  %v1998_v34 = vadd.f32 %v1915_v62, %v1798_v26  ;;  %v1374_v3 = vadd.f32 %v4345_v18, %v2951_v43  ;;  %v816_v56 = vrot.slane %v732_v48, 2 }
 0x10f   : > { %v1432_v9 = vmul.f32 %v3178_v1, %v369_v57  ;;  %v3295_v30 = vadd.f32 %v1232_v40, %v1110_v46  ;;  %v4346_v8 = vrot.slane %v4299_v63, 6  ;;  %v1029_v44 = vsel %vm996_vm3, %v1026_v53, %v1028_v7  ;;  %v3316_v40 = vpop.permute.xlu2 %507 }
 0x110   : > { %v1346_v22 = vmul.f32 %v3267_v55, %v369_v57  ;;  %v2030_v21 = vpack.c.bf16 %v1998_v34, %v1998_v34  ;;  %v694_v62 = vadd.f32 %v616_v16, %v4347_v36  ;;  %v695_v41 = vadd.f32 %v618_v5, %v489_v15  ;;  %4350 = vst [vmem:[#allocation26_spill] sm:$0xff] %v3316_v40 }
 0x111   : > { %v1027_v49 = vsel %vm996_vm3, %v4346_v8, %v1026_v53  ;;  %v4348_v43 = vrot.slane %v4309_v50, 7  ;;  %v1509_v48 = vrot.slane %v1432_v9, 4  ;;  %v1633_v46 = vmul.f32 %v3214_v4, %v369_v57 }
 0x112   : > { %v1108_v26 = vadd.f32 %v1027_v49, %v3131_v2  ;;  %v1834_v63 = vmul.f32 %v3226_v33, %v369_v57  ;;  %2063 = vst.msk [vmem:[%s2659_s26 + $0x30] sm:$0xf] %vm2050_vm6, %v2030_v21  ;;  %v4349_v53 = vrot.slane %v4297_v0, 2  ;;  %v819_v7 = vsel %vm780_vm1, %v816_v56, %v818_v54 }
 0x113   : > { %v1228_v18 = vsel %vm1197_vm2, %v4348_v43, %v1227_v59  ;;  %v1109_v5 = vadd.f32 %v1029_v44, %v3133_v47  ;;  %v4351_v50 = vrot.slane %v4301_v28, 4  ;;  %v1512_v17 = vsel %vm1487_vm4, %v1509_v48, %v1511_v38 }
 0x114   : > { %v817_v34 = vsel %vm780_vm1, %v4349_v53, %v816_v56  ;;  %v1309_v2 = vadd.f32 %v1228_v18, %v1108_v26  ;;  %v1710_v57 = vrot.slane %v1633_v46, 5  ;;  %v1910_v16 = vrot.slane %v1834_v63, 6  ;;  %v389_v56 = vpop.permute.xlu1 %388 }
 0x115   : > { %v1510_v15 = vsel %vm1487_vm4, %v4351_v50, %v1509_v48  ;;  %v3322_v9 = vadd.f32 %v817_v34, %v694_v62  ;;  %v3324_v0 = vadd.f32 %v819_v7, %v695_v41  ;;  %v1596_v54 = vadd.f32 %v1512_v17, %v3149_v13 }
 0x116   : > { %v1595_v8 = vadd.f32 %v1510_v15, %v1374_v3  ;;  %v4352_v47 = vrot.slane %v3202_v52, 7  ;;  %v4353_v28 = vrot.slane %v4303_v37, 5  ;;  %v1713_v38 = vsel %vm1688_vm5, %v1710_v57, %v1712_v19 }
 0x117   : > { %v3336_v21 = vmul.f32 %v3154_v12, %v3316_v40  ;;  %v1797_v3 = vadd.f32 %v1713_v38, %v1596_v54  ;;  %v3340_v13 = vmul.f32 %v3195_v6, %v3316_v40  ;;  %v3342_v52 = vadd.f32 %v1346_v22, %v1309_v2  ;;  %v384_v38 = vpop.permute.xlu0 %383 }
 0x118   : > { %v1230_v49 = vsel %vm1197_vm2, %v1227_v59, %v4352_v47  ;;  %v1711_v44 = vsel %vm1688_vm5, %v4353_v28, %v1710_v57  ;;  %v4356_v59 = vrot.slane %v4305_v32, 6  ;;  %v1913_v41 = vsel %vm996_vm3, %v1910_v16, %v1912_v51  ;;  %v4368_v47 = vld [vmem:[#allocation2_spill] sm:$0xff] }
 0x119   : > { %4354 = vst [vmem:[#allocation27_spill] sm:$0xff] %v3336_v21  ;;  %v1310_v36 = vadd.f32 %v1230_v49, %v1109_v5  ;;  %v1796_v62 = vadd.f32 %v1711_v44, %v1595_v8  ;;  %v461_v19 = vmul.f32 %v3187_v45, %v389_v56  ;;  %v1997_v43 = vadd.f32 %v1913_v41, %v1797_v3 }
 0x11a   : > { %4355 = vst [vmem:[#allocation28_spill] sm:$0xff] %v3340_v13  ;;  %v1911_v37 = vsel %vm996_vm3, %v4356_v59, %v1910_v16  ;;  %v3351_v18 = vmul.f32 %v3143_v23, %v3316_v40  ;;  %v535_v48 = vmul.f32 %v3154_v12, %v389_v56  ;;  %v3357_v32 = vmul.f32 %v3178_v1, %v3316_v40 }
 0x11b   : > { %v1996_v26 = vadd.f32 %v1911_v37, %v1796_v62  ;;  %v3361_v51 = vmul.f32 %v3214_v4, %v3316_v40  ;;  %v3365_v46 = vmul.f32 %v3226_v33, %v3316_v40  ;;  %v2029_v53 = vpack.c.bf16 %v1997_v43, %v1997_v43 }
 0x11c   : > { %4357 = vst [vmem:[#allocation32_spill] sm:$0xff] %v3351_v18  ;;  %v623_v34 = vrot.slane %v535_v48, 1  ;;  %v3368_v7 = vmul.f32 %v3195_v6, %v389_v56  ;;  %v493_v2 = vadd.f32 %v3207_v29, %v461_v19  ;;  %v949_v50 = vmul.f32 %v3143_v23, %v389_v56 }
 0x11d   : > { %4358 = vst [vmem:[#allocation33_spill] sm:$0xff] %v3365_v46  ;;  %v2028_v63 = vpack.c.bf16 %v1996_v26, %v1996_v26  ;;  %v3374_v15 = vmul.f32 %v3169_v31, %v389_v56  ;;  %v4359_v57 = vrot.slane %v2832_v24, 1  ;;  %v3383_v8 = vmul.f32 %v3178_v1, %v389_v56 }
 0x11e   : > { %v3386_v54 = vmul.f32 %v3214_v4, %v389_v56  ;;  %2062 = vst.msk [vmem:[%s2659_s26 + $0x2c] sm:$0xf] %vm2050_vm6, %v2029_v53  ;;  %v824_v49 = vrot.slane %v3368_v7, 2  ;;  %v1034_v28 = vrot.slane %v949_v50, 6  ;;  %v3393_v44 = vmul.f32 %v3226_v33, %v389_v56  ;;  %v4361_v53 = vld [vmem:[#allocation8_spill] sm:$0xff] }
 0x11f   : > { %2061 = vst.msk [vmem:[%s2659_s26 + $0x28] sm:$0xf] %vm2050_vm6, %v2028_v63  ;;  %v626_v16 = vsel %vm579_vm0, %v623_v34, %v4359_v57  ;;  %v1517_v59 = vrot.slane %v3383_v8, 4  ;;  %v1235_v19 = vrot.slane %v3374_v15, 7  ;;  %v3401_v26 = vmul.f32 %v3267_v55, %v389_v56 }
 0x120   : > { %v1718_v37 = vrot.slane %v3386_v54, 5  ;;  %v699_v41 = vadd.f32 %v626_v16, %v493_v2  ;;  %v1379_v43 = vadd.f32 %v3270_v10, %v1310_v36  ;;  %v4360_v48 = vrot.slane %v2857_v25, 6  ;;  %v4363_v2 = vld [vmem:[#allocation6_spill] sm:$0xff]  ;;  %v4365_v36 = vld [vmem:[#allocation5_spill] sm:$0xff] }
 0x121   : > { %v4362_v7 = vrot.slane %v4361_v53, 4  ;;  %v460_v8 = vmul.f32 %v3187_v45, %v384_v38  ;;  %v4364_v16 = vrot.slane %v4363_v2, 2  ;;  %v534_v54 = vmul.f32 %v3154_v12, %v384_v38 }
 0x122   : > { %v1037_v63 = vsel %vm996_vm3, %v1034_v28, %v4360_v48  ;;  %v735_v10 = vmul.f32 %v3195_v6, %v384_v38  ;;  %v4366_v5 = vrot.slane %v4365_v36, 5  ;;  %v1149_v17 = vmul.f32 %v3169_v31, %v384_v38 }
 0x123   : > { %v1520_v50 = vsel %vm1487_vm4, %v1517_v59, %v4362_v7  ;;  %v827_v15 = vsel %vm780_vm1, %v824_v49, %v4364_v16  ;;  %v492_v22 = vadd.f32 %v3207_v29, %v460_v8  ;;  %v948_v7 = vmul.f32 %v3143_v23, %v384_v38  ;;  %v4367_v16 = vld [vmem:[#allocation22_spill] sm:$0xff] }
 0x124   : > { %v1600_v56 = vadd.f32 %v1520_v50, %v1379_v43  ;;  %v1721_v48 = vsel %vm1688_vm5, %v1718_v37, %v4366_v5  ;;  %v1113_v3 = vadd.f32 %v1037_v63, %v3251_v35  ;;  %v1377_v43 = vadd.f32 %v4367_v16, %v3099_v60 }
 0x125   : > { %v621_v50 = vrot.slane %v534_v54, 1  ;;  %v4369_v57 = vrot.slane %v4368_v47, 6  ;;  %v4370_v13 = vrot.slane %v3393_v44, 6  ;;  %v822_v5 = vrot.slane %v735_v10, 2  ;;  %v4374_v10 = vld [vmem:[#allocation3_spill] sm:$0xff] }
 0x126   : > { %v1801_v62 = vadd.f32 %v1721_v48, %v1600_v56  ;;  %v1032_v18 = vrot.slane %v948_v7, 6  ;;  %v1435_v8 = vmul.f32 %v3178_v1, %v384_v38  ;;  %v4371_v46 = vrot.slane %v4329_v11, 1  ;;  %v4372_v56 = vld [vmem:[#allocation30_spill] sm:$0xff] }
 0x127   : > { %v1921_v21 = vsel %vm996_vm3, %v4370_v13, %v4369_v57  ;;  %v624_v63 = vsel %vm579_vm0, %v621_v50, %v623_v34  ;;  %v1636_v60 = vmul.f32 %v3214_v4, %v384_v38  ;;  %v4373_v16 = vrot.slane %v4333_v42, 6 }
 0x128   : > { %v2001_v40 = vadd.f32 %v1921_v21, %v1801_v62  ;;  %v622_v35 = vsel %vm579_vm0, %v4371_v46, %v621_v50  ;;  %v698_v48 = vadd.f32 %v624_v63, %v492_v22  ;;  %v1233_v57 = vrot.slane %v1149_v17, 7 }
 0x129   : > { %v697_v54 = vadd.f32 %v622_v35, %v4372_v56  ;;  %v1033_v13 = vsel %vm996_vm3, %v4373_v16, %v1032_v18  ;;  %v4375_v7 = vrot.slane %v4374_v10, 7  ;;  %v1035_v62 = vsel %vm996_vm3, %v1032_v18, %v1034_v28  ;;  %v404_v16 = vpop.permute.xlu1 %403 }
 0x12a   : > { %v2033_v11 = vpack.c.bf16 %v2001_v40, %v2001_v40  ;;  %v1111_v46 = vadd.f32 %v1033_v13, %v3322_v9  ;;  %v3446_v34 = vadd.f32 %v827_v15, %v699_v41  ;;  %v4376_v22 = vrot.slane %v4331_v61, 2  ;;  %v3466_v15 = vpop.permute.xlu2 %924 }
 0x12b   : > { %v1238_v21 = vsel %vm1197_vm2, %v1235_v19, %v4375_v7  ;;  %v1112_v35 = vadd.f32 %v1035_v62, %v3324_v0  ;;  %v825_v17 = vsel %vm780_vm1, %v822_v5, %v824_v49  ;;  %v1515_v63 = vrot.slane %v1435_v8, 4  ;;  %4378 = vst [vmem:[#allocation29_spill] sm:$0xff] %v3466_v15 }
 0x12c   : > { %v3448_v50 = vadd.f32 %v1238_v21, %v1113_v3  ;;  %v823_v42 = vsel %vm780_vm1, %v4376_v22, %v822_v5  ;;  %2066 = vst.msk [vmem:[%s2659_s26 + $0x3c] sm:$0xf] %vm2050_vm6, %v2033_v11  ;;  %v1716_v40 = vrot.slane %v1636_v60, 5  ;;  %v1837_v18 = vmul.f32 %v3226_v33, %v384_v38 }
 0x12d   : > { %v3458_v28 = vadd.f32 %v823_v42, %v697_v54  ;;  %v3460_v9 = vadd.f32 %v825_v17, %v698_v48  ;;  %v4377_v3 = vrot.slane %v4339_v39, 7  ;;  %v1349_v41 = vmul.f32 %v3267_v55, %v384_v38 }
 0x12e   : > { %v1236_v0 = vsel %vm1197_vm2, %v1233_v57, %v1235_v19  ;;  %v4379_v49 = vrot.slane %v4335_v14, 4  ;;  %v1518_v8 = vsel %vm1487_vm4, %v1515_v63, %v1517_v59  ;;  %v1916_v39 = vrot.slane %v1837_v18, 6 }
 0x12f   : > { %v1234_v61 = vsel %vm1197_vm2, %v4377_v3, %v1233_v57  ;;  %v1313_v60 = vadd.f32 %v1236_v0, %v1112_v35  ;;  %v1599_v48 = vadd.f32 %v1518_v8, %v3342_v52  ;;  %v4380_v13 = vrot.slane %v4337_v20, 5 }
 0x130   : > { %v1312_v56 = vadd.f32 %v1234_v61, %v1111_v46  ;;  %v1516_v5 = vsel %vm1487_vm4, %v4379_v49, %v1515_v63  ;;  %v1719_v7 = vsel %vm1688_vm5, %v1716_v40, %v1718_v37  ;;  %v3480_v19 = vmul.f32 %v3143_v23, %v3466_v15  ;;  %v399_v49 = vpop.permute.xlu0 %398  ;;  %v4390_v63 = vld [vmem:[#allocation35_spill] sm:$0xff] }
 0x131   : > { %v1598_v54 = vadd.f32 %v1516_v5, %v1377_v43  ;;  %v1717_v38 = vsel %vm1688_vm5, %v4380_v13, %v1716_v40  ;;  %v3484_v14 = vmul.f32 %v3169_v31, %v3466_v15  ;;  %v1800_v43 = vadd.f32 %v1719_v7, %v1599_v48 }
 0x132   : > { %4381 = vst [vmem:[#allocation34_spill] sm:$0xff] %v3480_v19  ;;  %v3488_v52 = vmul.f32 %v3178_v1, %v3466_v15  ;;  %v3492_v20 = vmul.f32 %v3214_v4, %v3466_v15  ;;  %v4384_v37 = vrot.slane %v4342_v58, 6  ;;  %v4385_v21 = vrot.slane %v3393_v44, 6  ;;  %v4400_v19 = vld [vmem:[#allocation4_spill] sm:$0xff] }
 0x133   : > { %4382 = vst [vmem:[#allocation15_spill] sm:$0xff] %v3484_v14  ;;  %v1799_v59 = vadd.f32 %v1717_v38, %v1598_v54  ;;  %v3502_v62 = vmul.f32 %v3226_v33, %v3466_v15  ;;  %v464_v46 = vmul.f32 %v3187_v45, %v404_v16  ;;  %v3506_v35 = vmul.f32 %v3154_v12, %v404_v16 }
 0x134   : > { %4383 = vst [vmem:[#allocation21_spill] sm:$0xff] %v3492_v20  ;;  %v1917_v57 = vsel %vm996_vm3, %v4384_v37, %v1916_v39  ;;  %v1919_v11 = vsel %vm996_vm3, %v1916_v39, %v4385_v21  ;;  %v952_v58 = vmul.f32 %v3143_v23, %v404_v16  ;;  %v3509_v17 = vadd.f32 %v1349_v41, %v1312_v56 }
 0x135   : > { %4386 = vst [vmem:[#allocation8_spill] sm:$0xff] %v3502_v62  ;;  %v1999_v22 = vadd.f32 %v1917_v57, %v1799_v59  ;;  %v2000_v42 = vadd.f32 %v1919_v11, %v1800_v43  ;;  %v3514_v40 = vmul.f32 %v3195_v6, %v404_v16  ;;  %v3520_v41 = vmul.f32 %v3169_v31, %v404_v16 }
 0x136   : > { %v1040_v0 = vrot.slane %v952_v58, 6  ;;  %v1439_v56 = vmul.f32 %v3178_v1, %v404_v16  ;;  %v3526_v54 = vadd.f32 %v3207_v29, %v464_v46  ;;  %v3530_v39 = vmul.f32 %v3214_v4, %v404_v16 }
 0x137   : > { %v2031_v18 = vpack.c.bf16 %v1999_v22, %v1999_v22  ;;  %v2032_v3 = vpack.c.bf16 %v2000_v42, %v2000_v42  ;;  %v3533_v13 = vmul.f32 %v3226_v33, %v404_v16  ;;  %v4387_v7 = vrot.slane %v3002_v27, 6  ;;  %v4388_v42 = vld [vmem:[#allocation17_spill] sm:$0xff] }
 0x138   : > { %v1523_v43 = vrot.slane %v1439_v56, 4  ;;  %v463_v37 = vmul.f32 %v3187_v45, %v399_v49  ;;  %v1382_v57 = vadd.f32 %v3401_v26, %v1313_v60  ;;  %v1724_v21 = vrot.slane %v3530_v39, 5 }
 0x139   : > { %2064 = vst.msk [vmem:[%s2659_s26 + $0x34] sm:$0xf] %vm2050_vm6, %v2031_v18  ;;  %v1043_v59 = vsel %vm996_vm3, %v1040_v0, %v4387_v7  ;;  %v537_v11 = vmul.f32 %v3154_v12, %v399_v49  ;;  %v738_v46 = vmul.f32 %v3195_v6, %v399_v49  ;;  %v1241_v22 = vrot.slane %v3520_v41, 7 }
 0x13a   : > { %2065 = vst.msk [vmem:[%s2659_s26 + $0x38] sm:$0xf] %vm2050_vm6, %v2032_v3  ;;  %v4389_v58 = vrot.slane %v4388_v42, 4  ;;  %v1924_v3 = vrot.slane %v3533_v13, 6  ;;  %v951_v56 = vmul.f32 %v3143_v23, %v399_v49  ;;  %v1116_v7 = vadd.f32 %v1043_v59, %v3446_v34  ;;  %v4393_v59 = vld [vmem:[#allocation13_spill] sm:$0xff] }
 0x13b   : > { %v3554_v26 = vmul.f32 %v3267_v55, %v404_v16  ;;  %v627_v39 = vrot.slane %v537_v11, 1  ;;  %v4391_v44 = vrot.slane %v4390_v63, 5  ;;  %v495_v41 = vadd.f32 %v3207_v29, %v463_v37  ;;  %v4397_v37 = vld [vmem:[#allocation31_spill] sm:$0xff] }
 0x13c   : > { %v1526_v18 = vsel %vm1487_vm4, %v1523_v43, %v4389_v58  ;;  %v1038_v5 = vrot.slane %v951_v56, 6  ;;  %v1152_v58 = vmul.f32 %v3169_v31, %v399_v49  ;;  %v4392_v13 = vrot.slane %v2832_v24, 1 }
 0x13d   : > { %v1603_v60 = vadd.f32 %v1526_v18, %v1382_v57  ;;  %v1727_v8 = vsel %vm1688_vm5, %v1724_v21, %v4391_v44  ;;  %v828_v34 = vrot.slane %v738_v46, 2  ;;  %v1438_v16 = vmul.f32 %v3178_v1, %v399_v49  ;;  %v4395_v18 = vld [vmem:[#allocation36_spill] sm:$0xff] }
 0x13e   : > { %v628_v38 = vsel %vm579_vm0, %v4392_v13, %v627_v39  ;;  %v4394_v57 = vrot.slane %v4393_v59, 7  ;;  %v4396_v48 = vrot.slane %v4395_v18, 6  ;;  %v1380_v56 = vadd.f32 %v4397_v37, %v3295_v30 }
 0x13f   : > { %v1804_v61 = vadd.f32 %v1727_v8, %v1603_v60  ;;  %v4398_v8 = vrot.slane %v3506_v35, 1  ;;  %v4399_v46 = vrot.slane %v2857_v25, 6  ;;  %v1041_v15 = vsel %vm996_vm3, %v1038_v5, %v1040_v0 }
 0x140   : > { %v1244_v11 = vsel %vm1197_vm2, %v1241_v22, %v4394_v57  ;;  %v1927_v44 = vsel %vm996_vm3, %v1924_v3, %v4396_v48  ;;  %v1239_v57 = vrot.slane %v1152_v58, 7  ;;  %v700_v48 = vadd.f32 %v628_v38, %v4400_v19 }
 0x141   : > { %v630_v24 = vsel %vm579_vm0, %v627_v39, %v4398_v8  ;;  %v2004_v60 = vadd.f32 %v1927_v44, %v1804_v61  ;;  %v1039_v13 = vsel %vm996_vm3, %v4399_v46, %v1038_v5  ;;  %v3580_v14 = vadd.f32 %v1244_v11, %v1116_v7  ;;  %v1411_v44 = vpop.permute.xlu2 %1410 }
 0x142   : > { %v1114_v62 = vadd.f32 %v1039_v13, %v3458_v28  ;;  %v1352_v30 = vmul.f32 %v3267_v55, %v399_v49  ;;  %v701_v20 = vadd.f32 %v630_v24, %v495_v41  ;;  %v4401_v61 = vrot.slane %v4363_v2, 2 }
 0x143   : > { %v2036_v37 = vpack.c.bf16 %v2004_v60, %v2004_v60  ;;  %v1521_v39 = vrot.slane %v1438_v16, 4  ;;  %v1115_v8 = vadd.f32 %v1041_v15, %v3460_v9  ;;  %v4402_v0 = vrot.slane %v4374_v10, 7  ;;  %v3603_v10 = vpop.permute.xlu1 %418 }
 0x144   : > { %v829_v25 = vsel %vm780_vm1, %v4401_v61, %v828_v34  ;;  %v1639_v19 = vmul.f32 %v3214_v4, %v399_v49  ;;  %v1840_v28 = vmul.f32 %v3226_v33, %v399_v49  ;;  %v4403_v38 = vrot.slane %v3514_v40, 2  ;;  %4405 = vst [vmem:[#allocation6_spill] sm:$0xff] %v3603_v10 }
 0x145   : > { %v1240_v5 = vsel %vm1197_vm2, %v4402_v0, %v1239_v57  ;;  %2069 = vst.msk [vmem:[%s2659_s26 + $0x48] sm:$0xf] %vm2050_vm6, %v2036_v37  ;;  %v4404_v41 = vrot.slane %v4361_v53, 4  ;;  %v1524_v9 = vsel %vm1487_vm4, %v1521_v39, %v1523_v43  ;;  %v3607_v49 = vmul.f32 %v3178_v1, %v1411_v44 }
 0x146   : > { %v831_v2 = vsel %vm780_vm1, %v828_v34, %v4403_v38  ;;  %v1315_v7 = vadd.f32 %v1240_v5, %v1114_v62  ;;  %v1602_v16 = vadd.f32 %v1524_v9, %v3509_v17  ;;  %v1722_v11 = vrot.slane %v1639_v19, 5 }
 0x147   : > { %v1522_v58 = vsel %vm1487_vm4, %v4404_v41, %v1521_v39  ;;  %4406 = vst [vmem:[#allocation5_spill] sm:$0xff] %v3607_v49  ;;  %v901_v24 = vadd.f32 %v829_v25, %v700_v48  ;;  %v902_v60 = vadd.f32 %v831_v2, %v701_v20  ;;  %v1242_v34 = vsel %vm1197_vm2, %v1239_v57, %v1241_v22 }
 0x148   : > { %v1601_v15 = vadd.f32 %v1522_v58, %v1380_v56  ;;  %v1922_v62 = vrot.slane %v1840_v28, 6  ;;  %v1316_v46 = vadd.f32 %v1242_v34, %v1115_v8  ;;  %v4407_v53 = vrot.slane %v4365_v36, 5 }
 0x149   : > { %v1725_v43 = vsel %vm1688_vm5, %v1722_v11, %v1724_v21  ;;  %v3616_v56 = vmul.f32 %v3154_v12, %v3603_v10  ;;  %v3619_v61 = vmul.f32 %v3214_v4, %v1411_v44  ;;  %v3623_v20 = vmul.f32 %v3195_v6, %v3603_v10 }
 0x14a   : > { %v1723_v13 = vsel %vm1688_vm5, %v4407_v53, %v1722_v11  ;;  %v1803_v37 = vadd.f32 %v1725_v43, %v1602_v16  ;;  %v3625_v22 = vadd.f32 %v1352_v30, %v1315_v7  ;;  %v4408_v36 = vrot.slane %v4368_v47, 6  ;;  %v414_v30 = vpop.permute.xlu0 %413  ;;  %v4409_v53 = vld [vmem:[#allocation25_spill] sm:$0xff] }
 0x14b   : > { %v1802_v17 = vadd.f32 %v1723_v13, %v1601_v15  ;;  %v1925_v21 = vsel %vm996_vm3, %v1922_v62, %v1924_v3  ;;  %v3633_v8 = vmul.f32 %v3226_v33, %v1411_v44  ;;  %v3637_v0 = vmul.f32 %v3143_v23, %v3603_v10 }
 0x14c   : > { %v1923_v57 = vsel %vm996_vm3, %v4408_v36, %v1922_v62  ;;  %v2003_v39 = vadd.f32 %v1925_v21, %v1803_v37  ;;  %v3642_v47 = vmul.f32 %v3169_v31, %v3603_v10  ;;  %v1442_v3 = vmul.f32 %v3178_v1, %v3603_v10 }
 0x14d   : > { %v2002_v25 = vadd.f32 %v1923_v57, %v1802_v17  ;;  %v1643_v19 = vmul.f32 %v3214_v4, %v3603_v10  ;;  %v1844_v2 = vmul.f32 %v3226_v33, %v3603_v10  ;;  %v1356_v7 = vmul.f32 %v3267_v55, %v3603_v10  ;;  %v4411_v57 = vld [vmem:[#allocation9_spill] sm:$0xff] }
 0x14e   : > { %v2035_v28 = vpack.c.bf16 %v2003_v39, %v2003_v39  ;;  %v1529_v41 = vrot.slane %v1442_v3, 4  ;;  %v466_v9 = vmul.f32 %v3187_v45, %v414_v30  ;;  %v4187_v15 = vrot.slane %v3637_v0, 6  ;;  %v3677_v3 = vpop.permute.xlu1 %433 }
 0x14f   : > { %v2034_v44 = vpack.c.bf16 %v2002_v25, %v2002_v25  ;;  %v1730_v58 = vrot.slane %v1643_v19, 5  ;;  %v1385_v16 = vadd.f32 %v3554_v26, %v1316_v46  ;;  %v1930_v11 = vrot.slane %v1844_v2, 6  ;;  %v4413_v46 = vld [vmem:[#allocation7_spill] sm:$0xff]  ;;  %v4414_v19 = vld [vmem:[#allocation16_spill] sm:$0xff] }
 0x150   : > { %v954_v34 = vmul.f32 %v3143_v23, %v414_v30  ;;  %2068 = vst.msk [vmem:[%s2659_s26 + $0x44] sm:$0xf] %vm2050_vm6, %v2035_v28  ;;  %v4410_v13 = vrot.slane %v4409_v53, 4  ;;  %v3666_v17 = vmul.f32 %v3154_v12, %v414_v30  ;;  %v1155_v37 = vmul.f32 %v3169_v31, %v414_v30 }
 0x151   : > { %2067 = vst.msk [vmem:[%s2659_s26 + $0x40] sm:$0xf] %vm2050_vm6, %v2034_v44  ;;  %v4412_v21 = vrot.slane %v4411_v57, 5  ;;  %v1383_v25 = vadd.f32 %v4413_v46, %v3448_v50  ;;  %v3675_v39 = vmul.f32 %v3195_v6, %v414_v30  ;;  %v4415_v44 = vrot.slane %v4414_v19, 6 }
 0x152   : > { %v1532_v43 = vsel %vm1487_vm4, %v1529_v41, %v4410_v13  ;;  %v3683_v2 = vadd.f32 %v3207_v29, %v466_v9  ;;  %v1441_v13 = vmul.f32 %v3178_v1, %v414_v30  ;;  %v1642_v48 = vmul.f32 %v3214_v4, %v414_v30 }
 0x153   : > { %v1606_v36 = vadd.f32 %v1532_v43, %v1385_v16  ;;  %v1733_v26 = vsel %vm1688_vm5, %v1730_v58, %v4412_v21  ;;  %v1933_v28 = vsel %vm996_vm3, %v1930_v11, %v4415_v44  ;;  %v1044_v16 = vrot.slane %v954_v34, 6 }
 0x154   : > { %v1245_v21 = vrot.slane %v1155_v37, 7  ;;  %v1843_v50 = vmul.f32 %v3226_v33, %v414_v30  ;;  %v4416_v38 = vrot.slane %v3002_v27, 6  ;;  %v3697_v34 = vmul.f32 %v3143_v23, %v3677_v3 }
 0x155   : > { %v1807_v43 = vadd.f32 %v1733_v26, %v1606_v36  ;;  %v1047_v9 = vsel %vm996_vm3, %v1044_v16, %v4187_v15  ;;  %v1527_v44 = vrot.slane %v1441_v13, 4  ;;  %v834_v62 = vrot.slane %v3675_v39, 2 }
 0x156   : > { %v1045_v5 = vsel %vm996_vm3, %v4416_v38, %v1044_v16  ;;  %v1118_v26 = vadd.f32 %v1047_v9, %v902_v60  ;;  %v1355_v46 = vmul.f32 %v3267_v55, %v414_v30  ;;  %v1728_v27 = vrot.slane %v1642_v48, 5 }
 0x157   : > { %v2007_v36 = vadd.f32 %v1933_v28, %v1807_v43  ;;  %v1117_v37 = vadd.f32 %v1045_v5, %v901_v24  ;;  %v1928_v49 = vrot.slane %v1843_v50, 6  ;;  %v4417_v10 = vrot.slane %v4393_v59, 7 }
 0x158   : > { %v4418_v15 = vrot.slane %v3642_v47, 7  ;;  %v4419_v28 = vrot.slane %v4388_v42, 4  ;;  %v1530_v5 = vsel %vm1487_vm4, %v1527_v44, %v1529_v41  ;;  %v1052_v48 = vrot.slane %v3697_v34, 6 }
 0x159   : > { %v2039_v38 = vpack.c.bf16 %v2007_v36, %v2007_v36  ;;  %v1246_v16 = vsel %vm1197_vm2, %v4417_v10, %v1245_v21  ;;  %v1605_v59 = vadd.f32 %v1530_v5, %v3625_v22  ;;  %v4420_v10 = vrot.slane %v4390_v63, 5 }
 0x15a   : > { %v1248_v29 = vsel %vm1197_vm2, %v1245_v21, %v4418_v15  ;;  %v1528_v24 = vsel %vm1487_vm4, %v4419_v28, %v1527_v44  ;;  %v1318_v30 = vadd.f32 %v1246_v16, %v1117_v37  ;;  %v3720_v42 = vmul.f32 %v3169_v31, %v3677_v3  ;;  %v3722_v15 = vpop.permute.xlu0 %428 }
 0x15b   : > { %v1319_v60 = vadd.f32 %v1248_v29, %v1118_v26  ;;  %v1604_v13 = vadd.f32 %v1528_v24, %v1383_v25  ;;  %2072 = vst.msk [vmem:[%s2659_s26 + $0x54] sm:$0xf] %vm2050_vm6, %v2039_v38  ;;  %v1729_v43 = vsel %vm1688_vm5, %v4420_v10, %v1728_v27  ;;  %v1731_v29 = vsel %vm1688_vm5, %v1728_v27, %v1730_v58 }
 0x15c   : > { %v4421_v25 = vrot.slane %v4395_v18, 6  ;;  %v1445_v22 = vmul.f32 %v3178_v1, %v3677_v3  ;;  %v1806_v50 = vadd.f32 %v1731_v29, %v1605_v59  ;;  %v1931_v63 = vsel %vm996_vm3, %v1928_v49, %v1930_v11 }
 0x15d   : > { %v1805_v41 = vadd.f32 %v1729_v43, %v1604_v13  ;;  %v1646_v9 = vmul.f32 %v3214_v4, %v3677_v3  ;;  %v1847_v36 = vmul.f32 %v3226_v33, %v3677_v3  ;;  %v1388_v58 = vadd.f32 %v1356_v7, %v1319_v60  ;;  %v4423_v13 = vld [vmem:[#allocation10_spill] sm:$0xff] }
 0x15e   : > { %v1929_v21 = vsel %vm996_vm3, %v4421_v25, %v1928_v49  ;;  %v1535_v26 = vrot.slane %v1445_v22, 4  ;;  %v3737_v18 = vmul.f32 %v3143_v23, %v3722_v15  ;;  %v2006_v44 = vadd.f32 %v1931_v63, %v1806_v50  ;;  %v4425_v25 = vld [vmem:[#allocation33_spill] sm:$0xff] }
 0x15f   : > { %v2005_v37 = vadd.f32 %v1929_v21, %v1805_v41  ;;  %v1736_v27 = vrot.slane %v1646_v9, 5  ;;  %v1936_v38 = vrot.slane %v1847_v36, 6  ;;  %v1444_v49 = vmul.f32 %v3178_v1, %v3722_v15 }
 0x160   : > { %v1387_v11 = vadd.f32 %v1355_v46, %v1318_v30  ;;  %v1253_v28 = vrot.slane %v3720_v42, 7  ;;  %v4422_v24 = vrot.slane %v3357_v32, 4  ;;  %v2038_v60 = vpack.c.bf16 %v2006_v44, %v2006_v44  ;;  %v2213_v42 = vld [vmem:[%s4075_s2 + $0x5] ss:$0 sm:$0xff] }
 0x161   : > { %v2037_v16 = vpack.c.bf16 %v2005_v37, %v2005_v37  ;;  %v1386_v59 = vadd.f32 %v4423_v13, %v3580_v14  ;;  %v3749_v10 = vmul.f32 %v3169_v31, %v3722_v15  ;;  %v4424_v46 = vrot.slane %v3361_v51, 5 }
 0x162   : > { %v1538_v7 = vsel %vm1487_vm4, %v1535_v26, %v4422_v24  ;;  %v1533_v43 = vrot.slane %v1444_v49, 4  ;;  %v1645_v29 = vmul.f32 %v3214_v4, %v3722_v15  ;;  %v1846_v41 = vmul.f32 %v3226_v33, %v3722_v15  ;;  %2071 = vst.msk [vmem:[%s2659_s26 + $0x50] sm:$0xf] %vm2050_vm6, %v2038_v60 }
 0x163   : > { %v1609_v5 = vadd.f32 %v1538_v7, %v1388_v58  ;;  %2070 = vst.msk [vmem:[%s2659_s26 + $0x4c] sm:$0xf] %vm2050_vm6, %v2037_v16  ;;  %v1739_v30 = vsel %vm1688_vm5, %v1736_v27, %v4424_v46  ;;  %v4426_v21 = vrot.slane %v4425_v25, 6  ;;  %v1050_v50 = vrot.slane %v3737_v18, 6 }
 0x164   : > { %v4427_v63 = vrot.slane %v3616_v56, 1  ;;  %v4428_v9 = vrot.slane %v3666_v17, 1  ;;  %v4429_v37 = vrot.slane %v4409_v53, 4  ;;  %v1536_v44 = vsel %vm1487_vm4, %v1533_v43, %v1535_v26 }
 0x165   : > { %v1810_v14 = vadd.f32 %v1739_v30, %v1609_v5  ;;  %v1939_v22 = vsel %vm996_vm3, %v1936_v38, %v4426_v21  ;;  %v1734_v49 = vrot.slane %v1645_v29, 5  ;;  %v1934_v16 = vrot.slane %v1846_v41, 6  ;;  %v3781_v30 = vpop.permute.xlu1 %919 }
 0x166   : > { %v636_v36 = vsel %vm579_vm0, %v4428_v9, %v4427_v63  ;;  %v1534_v58 = vsel %vm1487_vm4, %v4429_v37, %v1533_v43  ;;  %v1608_v60 = vadd.f32 %v1536_v44, %v1387_v11  ;;  %v1251_v5 = vrot.slane %v3749_v10, 7  ;;  %v4433_v37 = vld [vmem:[#allocation11_spill] sm:$0xff] }
 0x167   : > { %v2010_v24 = vadd.f32 %v1939_v22, %v1810_v14  ;;  %v1607_v7 = vadd.f32 %v1534_v58, %v1386_v59  ;;  %v704_v18 = vadd.f32 %v636_v36, %v3683_v2  ;;  %v4430_v13 = vrot.slane %v4411_v57, 5 }
 0x168   : > { %v1737_v53 = vsel %vm1688_vm5, %v1734_v49, %v1736_v27  ;;  %v4431_v26 = vrot.slane %v3623_v20, 2  ;;  %v4432_v10 = vrot.slane %v4414_v19, 6  ;;  %v1937_v41 = vsel %vm996_vm3, %v1934_v16, %v1936_v38 }
 0x169   : > { %v1735_v46 = vsel %vm1688_vm5, %v4430_v13, %v1734_v49  ;;  %v2042_v43 = vpack.c.bf16 %v2010_v24, %v2010_v24  ;;  %v1809_v29 = vadd.f32 %v1737_v53, %v1608_v60  ;;  %v1359_v27 = vmul.f32 %v3267_v55, %v3677_v3 }
 0x16a   : > { %v837_v59 = vsel %vm780_vm1, %v834_v62, %v4431_v26  ;;  %v1808_v11 = vadd.f32 %v1735_v46, %v1607_v7  ;;  %v1935_v57 = vsel %vm996_vm3, %v4432_v10, %v1934_v16  ;;  %v1053_v14 = vsel %vm996_vm3, %v1050_v50, %v1052_v48  ;;  %v4440_v10 = vld [vmem:[#allocation12_spill] sm:$0xff] }
 0x16b   : > { %v905_v2 = vadd.f32 %v837_v59, %v704_v18  ;;  %2075 = vst.msk [vmem:[%s2659_s26 + $0x60] sm:$0xf] %vm2050_vm6, %v2042_v43  ;;  %v2009_v22 = vadd.f32 %v1937_v41, %v1809_v29  ;;  %v1448_v19 = vmul.f32 %v3178_v1, %v3781_v30  ;;  %v1254_v38 = vsel %vm1197_vm2, %v1251_v5, %v1253_v28  ;;  %v4439_v29 = vld [vmem:[#allocation14_spill] sm:$0xff] }
 0x16c   : > { %v2008_v21 = vadd.f32 %v1935_v57, %v1808_v11  ;;  %v3806_v9 = vmul.f32 %v3214_v4, %v3781_v30  ;;  %v3810_v36 = vmul.f32 %v3226_v33, %v3781_v30  ;;  %v4434_v58 = vrot.slane %v4433_v37, 1 }
 0x16d   : > { %v1121_v63 = vadd.f32 %v1053_v14, %v905_v2  ;;  %v4435_v44 = vrot.slane %v3506_v35, 1  ;;  %v2041_v24 = vpack.c.bf16 %v2009_v22, %v2009_v22  ;;  %v1541_v60 = vrot.slane %v1448_v19, 4 }
 0x16e   : > { %v2040_v16 = vpack.c.bf16 %v2008_v21, %v2008_v21  ;;  %v1742_v18 = vrot.slane %v3806_v9, 5  ;;  %v1942_v13 = vrot.slane %v3810_v36, 6  ;;  %v4436_v46 = vrot.slane %v3666_v17, 1 }
 0x16f   : > { %v632_v49 = vsel %vm579_vm0, %v4435_v44, %v4434_v58  ;;  %v1322_v7 = vadd.f32 %v1254_v38, %v1121_v63  ;;  %v4437_v53 = vmov %v4434_v58  ;;  %v4438_v43 = vrot.slane %v3488_v52, 4  ;;  %2074 = vst.msk [vmem:[%s2659_s26 + $0x5c] sm:$0xf] %vm2050_vm6, %v2041_v24  ;;  %v4444_v38 = vld [vmem:[#allocation19_spill] sm:$0xff]  ;;  %v915_v44 = vpop.permute.xlu0 %914 }
 0x170   : > { %v634_v26 = vsel %vm579_vm0, %v4437_v53, %v4436_v46  ;;  %v702_v59 = vadd.f32 %v632_v49, %v3526_v54  ;;  %2073 = vst.msk [vmem:[%s2659_s26 + $0x58] sm:$0xf] %vm2050_vm6, %v2040_v16  ;;  %v4441_v57 = vrot.slane %v4440_v10, 2  ;;  %v4442_v41 = vrot.slane %v3514_v40, 2  ;;  %v4448_v49 = vld [vmem:[#allocation21_spill] sm:$0xff]  ;;  %v4450_v46 = vld [vmem:[#allocation8_spill] sm:$0xff] }
 0x171   : > { %v1391_v35 = vadd.f32 %v1359_v27, %v1322_v7  ;;  %v1544_v11 = vsel %vm1487_vm4, %v1541_v60, %v4438_v43  ;;  %v703_v2 = vadd.f32 %v634_v26, %v4439_v29  ;;  %v1750_v14 = vrot.slane %v3619_v61, 5 }
 0x172   : > { %v833_v17 = vsel %vm780_vm1, %v4442_v41, %v4441_v57  ;;  %v1950_v21 = vrot.slane %v3633_v8, 6  ;;  %v4443_v54 = vmov %v4441_v57  ;;  %v4445_v9 = vrot.slane %v4444_v38, 6  ;;  %v4456_v57 = vld [vmem:[#allocation18_spill] sm:$0xff] }
 0x173   : > { %v835_v27 = vsel %vm780_vm1, %v4443_v54, %v834_v62  ;;  %v903_v22 = vadd.f32 %v833_v17, %v702_v59  ;;  %v1612_v63 = vadd.f32 %v1544_v11, %v1391_v35  ;;  %v4446_v40 = vrot.slane %v3637_v0, 6  ;;  %v4452_v59 = vld [vmem:[#allocation24_spill] sm:$0xff] }
 0x174   : > { %v904_v19 = vadd.f32 %v835_v27, %v703_v2  ;;  %v4447_v37 = vmov %v4445_v9  ;;  %v3855_v39 = vmul.f32 %v3143_v23, %v3781_v30  ;;  %v3859_v62 = vmul.f32 %v3169_v31, %v3781_v30 }
 0x175   : > { %v1049_v36 = vsel %vm996_vm3, %v4446_v40, %v4445_v9  ;;  %v1051_v58 = vsel %vm996_vm3, %v4447_v37, %v1050_v50  ;;  %v4449_v16 = vrot.slane %v4448_v49, 5  ;;  %v4451_v53 = vrot.slane %v4450_v46, 6 }
 0x176   : > { %v1119_v0 = vadd.f32 %v1049_v36, %v903_v22  ;;  %v1120_v50 = vadd.f32 %v1051_v58, %v904_v19  ;;  %v4453_v35 = vrot.slane %v4452_v59, 7  ;;  %v4454_v43 = vrot.slane %v3642_v47, 7 }
 0x177   : > { %v1745_v24 = vsel %vm1688_vm5, %v1742_v18, %v4449_v16  ;;  %v1945_v26 = vsel %vm996_vm3, %v1942_v13, %v4451_v53  ;;  %v1357_v41 = vmul.f32 %v3267_v55, %v4456_v57  ;;  %v1447_v17 = vmul.f32 %v3178_v1, %v915_v44 }
 0x178   : > { %v1813_v7 = vadd.f32 %v1745_v24, %v1612_v63  ;;  %v1250_v11 = vsel %vm1197_vm2, %v4454_v43, %v4453_v35  ;;  %v4455_v29 = vmov %v4453_v35  ;;  %v1358_v22 = vmul.f32 %v3267_v55, %v3722_v15 }
 0x179   : > { %v1252_v2 = vsel %vm1197_vm2, %v4455_v29, %v1251_v5  ;;  %v1320_v10 = vadd.f32 %v1250_v11, %v1119_v0  ;;  %v1648_v47 = vmul.f32 %v3214_v4, %v915_v44  ;;  %v1058_v63 = vrot.slane %v3855_v39, 6 }
 0x17a   : > { %v2013_v54 = vadd.f32 %v1945_v26, %v1813_v7  ;;  %v1321_v27 = vadd.f32 %v1252_v2, %v1120_v50  ;;  %v3883_v19 = vmul.f32 %v3143_v23, %v915_v44  ;;  %v1539_v5 = vrot.slane %v1447_v17, 4 }
 0x17b   : > { %v1849_v38 = vmul.f32 %v3226_v33, %v915_v44  ;;  %v1389_v40 = vadd.f32 %v1357_v41, %v1320_v10  ;;  %v1740_v37 = vrot.slane %v1648_v47, 5  ;;  %v4457_v58 = vrot.slane %v3357_v32, 4  ;;  %v1406_v10 = vpop.permute.xlu1 %1405  ;;  %v4460_v47 = vld [vmem:[#allocation20_spill] sm:$0xff] }
 0x17c   : > { %v2045_v9 = vpack.c.bf16 %v2013_v54, %v2013_v54  ;;  %v1390_v36 = vadd.f32 %v1358_v22, %v1321_v27  ;;  %v1542_v24 = vsel %vm1487_vm4, %v1539_v5, %v1541_v60  ;;  %v3892_v7 = vmul.f32 %v3154_v12, %v3677_v3 }
 0x17d   : > { %v1540_v16 = vsel %vm1487_vm4, %v4457_v58, %v1539_v5  ;;  %v1940_v0 = vrot.slane %v1849_v38, 6  ;;  %v1259_v23 = vrot.slane %v3859_v62, 7  ;;  %v3898_v53 = vmul.f32 %v3169_v31, %v915_v44 }
 0x17e   : > { %2078 = vst.msk [vmem:[%s2659_s26 + $0x6c] sm:$0xf] %vm2050_vm6, %v2045_v9  ;;  %v1610_v26 = vadd.f32 %v1540_v16, %v1389_v40  ;;  %v1611_v50 = vadd.f32 %v1542_v24, %v1390_v36  ;;  %v1056_v32 = vrot.slane %v3883_v19, 6  ;;  %v4458_v59 = vrot.slane %v3361_v51, 5 }
 0x17f   : > { %v1743_v35 = vsel %vm1688_vm5, %v1740_v37, %v1742_v18  ;;  %v3907_v43 = vmul.f32 %v3195_v6, %v3677_v3  ;;  %v4459_v2 = vrot.slane %v4425_v25, 6  ;;  %v469_v41 = vmul.f32 %v3187_v45, %v3722_v15 }
 0x180   : > { %v1741_v60 = vsel %vm1688_vm5, %v4458_v59, %v1740_v37  ;;  %v1812_v29 = vadd.f32 %v1743_v35, %v1611_v50  ;;  %v1943_v51 = vsel %vm996_vm3, %v1940_v0, %v1942_v13  ;;  %v641_v17 = vrot.slane %v3892_v7, 1  ;;  %v2206_v50 = vld [vmem:[%s4075_s2 + $0x2] ss:$0 sm:$0xff] }
 0x181   : > { %v1811_v11 = vadd.f32 %v1741_v60, %v1610_v26  ;;  %v1941_v31 = vsel %vm996_vm3, %v4459_v2, %v1940_v0  ;;  %v543_v18 = vmul.f32 %v3154_v12, %v3722_v15  ;;  %v744_v54 = vmul.f32 %v3195_v6, %v3722_v15  ;;  %v4461_v6 = vld [vmem:[#allocation6_spill] sm:$0xff] }
 0x182   : > { %v1257_v27 = vrot.slane %v3898_v53, 7  ;;  %v2012_v22 = vadd.f32 %v1943_v51, %v1812_v29  ;;  %v501_v19 = vadd.f32 %v4460_v47, %v469_v41  ;;  %v842_v5 = vrot.slane %v3907_v43, 2  ;;  %v4462_v53 = vld [vmem:[#allocation23_spill] sm:$0xff]  ;;  %v4464_v51 = vld [vmem:[#allocation26_spill] sm:$0xff] }
 0x183   : > { %v2011_v25 = vadd.f32 %v1941_v31, %v1811_v11  ;;  %v639_v38 = vrot.slane %v543_v18, 1  ;;  %v840_v13 = vrot.slane %v744_v54, 2  ;;  %v3924_v9 = vmul.f32 %v3178_v1, %v1406_v10  ;;  %v2207_v11 = vld [vmem:[%s4076_s3] ss:$0 sm:$0xff] }
 0x184   : > { %v2044_v12 = vpack.c.bf16 %v2012_v22, %v2012_v22  ;;  %v3927_v36 = vmul.f32 %v3214_v4, %v1406_v10  ;;  %v467_v15 = vmul.f32 %v3187_v45, %v4461_v6  ;;  %v3932_v37 = vmul.f32 %v3267_v55, %v915_v44  ;;  %v2209_v6 = vld [vmem:[%s4075_s2 + $0x6] ss:$0 sm:$0xff] }
 0x185   : > { %v2043_v40 = vpack.c.bf16 %v2011_v25, %v2011_v25  ;;  %v1362_v58 = vmul.f32 %v3267_v55, %v3781_v30  ;;  %v642_v16 = vsel %vm579_vm0, %v639_v38, %v641_v17  ;;  %v1059_v1 = vsel %vm996_vm3, %v1056_v32, %v1058_v63  ;;  %v4476_v7 = vld [vmem:[#allocation34_spill] sm:$0xff] }
 0x186   : > { %v707_v4 = vadd.f32 %v642_v16, %v501_v19  ;;  %v1260_v24 = vsel %vm1197_vm2, %v1257_v27, %v1259_v23  ;;  %v468_v44 = vmul.f32 %v3187_v45, %v4456_v57  ;;  %v499_v55 = vadd.f32 %v4460_v47, %v467_v15  ;;  %2077 = vst.msk [vmem:[%s2659_s26 + $0x68] sm:$0xf] %vm2050_vm6, %v2044_v12  ;;  %v4465_v47 = vld [vmem:[#allocation32_spill] sm:$0xff] }
 0x187   : > { %2076 = vst.msk [vmem:[%s2659_s26 + $0x64] sm:$0xf] %vm2050_vm6, %v2043_v40  ;;  %v843_v30 = vsel %vm780_vm1, %v840_v13, %v842_v5  ;;  %v3956_v0 = vmul.f32 %v3226_v33, %v1406_v10  ;;  %v637_v26 = vrot.slane %v4462_v53, 1  ;;  %v743_v59 = vmul.f32 %v2206_v50, %v4456_v57  ;;  %v1401_v33 = vpop.permute.xlu0 %1400  ;;  %v2208_v57 = vld [vmem:[%s4075_s2 + $0x4] ss:$0 sm:$0xff] }
 0x188   : > { %v908_v45 = vadd.f32 %v843_v30, %v707_v4  ;;  %v1547_v60 = vrot.slane %v3924_v9, 4  ;;  %v1748_v35 = vrot.slane %v3927_v36, 5  ;;  %v500_v29 = vadd.f32 %v2207_v11, %v468_v44  ;;  %v4469_v4 = vld [vmem:[#allocation5_spill] sm:$0xff] }
 0x189   : > { %v4463_v2 = vrot.slane %v3616_v56, 1  ;;  %v640_v10 = vsel %vm579_vm0, %v637_v26, %v639_v38  ;;  %v838_v41 = vrot.slane %v743_v59, 2  ;;  %v1160_v18 = vmul.f32 %v2208_v57, %v4464_v51 }
 0x18a   : > { %v1124_v54 = vadd.f32 %v1059_v1, %v908_v45  ;;  %v706_v22 = vadd.f32 %v640_v10, %v500_v29  ;;  %v4466_v19 = vrot.slane %v4465_v47, 6  ;;  %v4467_v9 = vrot.slane %v3623_v20, 2  ;;  %v2211_v45 = vld [vmem:[%s4075_s2 + $0x8] ss:$0 sm:$0xff] }
 0x18b   : > { %v638_v31 = vsel %vm579_vm0, %v4463_v2, %v637_v26  ;;  %v841_v40 = vsel %vm780_vm1, %v838_v41, %v840_v13  ;;  %v1450_v15 = vmul.f32 %v2209_v6, %v1401_v33  ;;  %v1948_v34 = vrot.slane %v3956_v0, 6  ;;  %v4472_v47 = vld [vmem:[#allocation27_spill] sm:$0xff] }
 0x18c   : > { %v705_v25 = vadd.f32 %v638_v31, %v499_v55  ;;  %v1055_v56 = vsel %vm996_vm3, %v1052_v48, %v4466_v19  ;;  %v839_v38 = vsel %vm780_vm1, %v4467_v9, %v838_v41  ;;  %v4468_v12 = vmov %v4466_v19 }
 0x18d   : > { %v1057_v36 = vsel %vm996_vm3, %v4468_v12, %v1056_v32  ;;  %v1325_v16 = vadd.f32 %v1260_v24, %v1124_v54  ;;  %v907_v48 = vadd.f32 %v841_v40, %v706_v22  ;;  %v4470_v20 = vrot.slane %v4469_v4, 4  ;;  %v2210_v32 = vld [vmem:[%s4075_s2 + $0x7] ss:$0 sm:$0xff] }
 0x18e   : > { %v906_v1 = vadd.f32 %v839_v38, %v705_v25  ;;  %v1255_v55 = vrot.slane %v1160_v18, 7  ;;  %v1545_v13 = vrot.slane %v1450_v15, 4  ;;  %v1651_v30 = vmul.f32 %v2210_v32, %v1401_v33 }
 0x18f   : > { %v1550_v44 = vsel %vm1487_vm4, %v1547_v60, %v4470_v20  ;;  %v1394_v53 = vadd.f32 %v1362_v58, %v1325_v16  ;;  %v1751_v24 = vsel %vm1688_vm5, %v1748_v35, %v1750_v14  ;;  %v1123_v0 = vadd.f32 %v1057_v36, %v907_v48  ;;  %v2212_v58 = vld [vmem:[%s4075_s2] ss:$0 sm:$0xff]  ;;  %v1416_v9 = vpop.permute.xlu0 %1415 }
 0x190   : > { %v1122_v26 = vadd.f32 %v1055_v56, %v906_v1  ;;  %v1256_v50 = vsel %vm1197_vm2, %v1253_v28, %v1255_v55  ;;  %v1258_v59 = vsel %vm1197_vm2, %v1255_v55, %v1257_v27  ;;  %v1852_v29 = vmul.f32 %v2211_v45, %v1401_v33 }
 0x191   : > { %v470_v2 = vmul.f32 %v2212_v58, %v3677_v3  ;;  %v1615_v31 = vadd.f32 %v1550_v44, %v1394_v53  ;;  %v1324_v41 = vadd.f32 %v1258_v59, %v1123_v0  ;;  %v1360_v28 = vmul.f32 %v2213_v42, %v4464_v51 }
 0x192   : > { %v1323_v10 = vadd.f32 %v1256_v50, %v1122_v26  ;;  %v4471_v27 = vrot.slane %v3488_v52, 4  ;;  %v1548_v33 = vsel %vm1487_vm4, %v1545_v13, %v1547_v60  ;;  %v1746_v18 = vrot.slane %v1651_v30, 5  ;;  %v4474_v60 = vld [vmem:[#allocation28_spill] sm:$0xff]  ;;  %v4480_v26 = vld [vmem:[#allocation15_spill] sm:$0xff]  ;;  %v4482_v50 = vld [vmem:[#allocation29_spill] sm:$0xff] }
 0x193   : > { %v502_v54 = vadd.f32 %v2207_v11, %v470_v2  ;;  %v1816_v25 = vadd.f32 %v1751_v24, %v1615_v31  ;;  %v1393_v3 = vadd.f32 %v3932_v37, %v1324_v41  ;;  %v4473_v19 = vrot.slane %v4472_v47, 1 }
 0x194   : > { %v1546_v57 = vsel %vm1487_vm4, %v4471_v27, %v1545_v13  ;;  %v1392_v22 = vadd.f32 %v1360_v28, %v1323_v10  ;;  %v1951_v52 = vsel %vm996_vm3, %v1948_v34, %v1950_v21  ;;  %v1946_v51 = vrot.slane %v1852_v29, 6 }
 0x195   : > { %v644_v56 = vsel %vm579_vm0, %v641_v17, %v4473_v19  ;;  %v4475_v40 = vrot.slane %v4474_v60, 2  ;;  %v2016_v37 = vadd.f32 %v1951_v52, %v1816_v25  ;;  %v1614_v36 = vadd.f32 %v1548_v33, %v1393_v3 }
 0x196   : > { %v708_v38 = vadd.f32 %v644_v56, %v502_v54  ;;  %v1613_v12 = vadd.f32 %v1546_v57, %v1392_v22  ;;  %v4477_v15 = vrot.slane %v4476_v7, 6  ;;  %v4478_v16 = vrot.slane %v4448_v49, 5 }
 0x197   : > { %v845_v11 = vsel %vm780_vm1, %v842_v5, %v4475_v40  ;;  %v1749_v48 = vsel %vm1688_vm5, %v1746_v18, %v1748_v35  ;;  %v1453_v43 = vmul.f32 %v2209_v6, %v1416_v9  ;;  %v2048_v44 = vpack.c.bf16 %v2016_v37, %v2016_v37 }
 0x198   : > { %v1061_v17 = vsel %vm996_vm3, %v1058_v63, %v4477_v15  ;;  %v1747_v1 = vsel %vm1688_vm5, %v4478_v16, %v1746_v18  ;;  %v909_v20 = vadd.f32 %v845_v11, %v708_v38  ;;  %v1815_v55 = vadd.f32 %v1749_v48, %v1614_v36 }
 0x199   : > { %v1814_v5 = vadd.f32 %v1747_v1, %v1613_v12  ;;  %v1654_v13 = vmul.f32 %v2210_v32, %v1416_v9  ;;  %v4479_v30 = vrot.slane %v4450_v46, 6  ;;  %v1949_v39 = vsel %vm996_vm3, %v1946_v51, %v1948_v34  ;;  %2081 = vst.msk [vmem:[%s2659_s26 + $0x78] sm:$0xf] %vm2050_vm6, %v2048_v44 }
 0x19a   : > { %v1125_v63 = vadd.f32 %v1061_v17, %v909_v20  ;;  %v1551_v49 = vrot.slane %v1453_v43, 4  ;;  %v2015_v35 = vadd.f32 %v1949_v39, %v1815_v55  ;;  %v4481_v6 = vrot.slane %v4480_v26, 7 }
 0x19b   : > { %v1947_v53 = vsel %vm996_vm3, %v4479_v30, %v1946_v51  ;;  %v1855_v0 = vmul.f32 %v2211_v45, %v1416_v9  ;;  %v1363_v59 = vmul.f32 %v2213_v42, %v4482_v50  ;;  %v4483_v58 = vrot.slane %v4469_v4, 4 }
 0x19c   : > { %v2014_v24 = vadd.f32 %v1947_v53, %v1814_v5  ;;  %v1262_v32 = vsel %vm1197_vm2, %v1259_v23, %v4481_v6  ;;  %v2047_v34 = vpack.c.bf16 %v2015_v35, %v2015_v35  ;;  %v1752_v31 = vrot.slane %v1654_v13, 5 }
 0x19d   : > { %v1326_v46 = vadd.f32 %v1262_v32, %v1125_v63  ;;  %v1552_v2 = vsel %vm1487_vm4, %v4483_v58, %v1551_v49  ;;  %v1952_v41 = vrot.slane %v1855_v0, 6 }
 0x19e   : > { %v2046_v29 = vpack.c.bf16 %v2014_v24, %v2014_v24  ;;  %2080 = vst.msk [vmem:[%s2659_s26 + $0x74] sm:$0xf] %vm2050_vm6, %v2047_v34  ;;  %v1753_v23 = vsel %vm1688_vm5, %v1750_v14, %v1752_v31 }
 0x19f   : > { %v1395_v10 = vadd.f32 %v1363_v59, %v1326_v46  ;;  %v1953_v42 = vsel %vm996_vm3, %v1950_v21, %v1952_v41 }
 0x1a0   : > { %2079 = vst.msk [vmem:[%s2659_s26 + $0x70] sm:$0xf] %vm2050_vm6, %v2046_v29 }
 0x1a1   : > { %v1616_v62 = vadd.f32 %v1552_v2, %v1395_v10 }
 0x1a3   : > { %v1817_v45 = vadd.f32 %v1753_v23, %v1616_v62 }
 0x1a5   : > { %v2017_v4 = vadd.f32 %v1953_v42, %v1817_v45 }
 0x1a7   : > { %v2049_v28 = vpack.c.bf16 %v2017_v4, %v2017_v4 }
 0x1a9   : > { %2082 = vst.msk [vmem:[%s2659_s26 + $0x7c] sm:$0xf] %vm2050_vm6, %v2049_v28 }
 0x1aa PF: > { %s14_s15 = sadd.s32 1, %s2220_s15  }
 0x1ab   : > { %p11_p6 = scmp.ge.s32.totalorder %s14_s15, 10  }
 0x1ad   :  { %13 = sbr.rel (!%p11_p6) target bundleno = 1 (0x1), region = 77 }

// kernel: csnn_forward.11
= control target key start
LH: loop header
LB: loop body
LE: loop exit
PB: predicated region body
PF: predicated region fallthrough
CT: control target
= control target key end

     0   :  { %s439_s6 = smov 0   ;;  %s441_s7 = smov 0   ;;  %s509_s0 = inlined_call_operand.vmem [shape: bf16[4,4,8,128], index: 0, kind: input, shape index: {}]   ;;  %s510_s1 = inlined_call_operand.vmem [shape: bf16[4,8,128], index: 1, kind: output, shape index: {}]  }
   0x1   :  { %s443_s8 = smov 0   ;;  %s445_s9 = smov 0  }
   0x2   :  { %s447_s10 = smov 0  }
   0x3 LB: > { %s20_s11 = sadd.s32 1, %s421_s9  ;;  %p39_p1 = scmp.ne.s32.totalorder %s413_s7, %s409_s6  ;;  %s425_s10 = sphi %s447_s10, %s11_s10   ;;  %s421_s9 = sphi %s445_s9, %s514_s9   ;;  %s417_s8 = sphi %s443_s8, %s513_s8   ;;  %s413_s7 = sphi %s441_s7, %s512_s7   ;;  %s409_s6 = sphi %s439_s6, %s511_s6  }
   0x4   : > { %p21_p0 = scmp.ge.s32.totalorder %s20_s11, 4  ;;  %p40_p2 = scmp.eq.s32.totalorder %s425_s10, 0 }
   0x5   : > { %s32_s13 = sadd.s32 1, %s413_s7  ;;  %p323_p5 = scmp.ge.s32.totalorder %s425_s10, 4 }
   0x6   : > { %s516_s11 = smov (%p21_p0, %s20_s11), 0  ;;  %p41_p3 = por %p40_p2, %p39_p1 }
   0x7   : > { %s27_s12 = ssub.s32 %s421_s9, %s516_s11  ;;  %93 = sbr.rel (%p323_p5) target bundleno = 20 (0x14), region = 16 }
   0x8   : > { %p30_p4 = scmp.eq.s32.totalorder %s27_s12, 0 }
   0xa   : > { %s474_s14 = scalar_select %p30_p4, %s413_s7, %s32_s13  }
   0xc   : > { %96 = sbr.rel (!%p41_p3) target bundleno = 20 (0x14), region = 20  ;;  %s98_s15 = sand.u32 (%p41_p3), 1, %s413_s7  }
   0xd   : > { %s325_s16 = sshll.u32 (%p41_p3), %s421_s9, 2  ;;  %s324_s17 = sshll.u32 (%p41_p3), %s98_s15, 4 }
   0xe   : > { %s103_s20 = scalar_lea.vmem (%p41_p3), %s509_s0, %s325_s16  ;;  %s100_s21 = scalar_lea.vmem (%p41_p3), [#allocation3], %s324_s17 }
   0xf   : > { %v120_v0 = vld [vmem:[%s103_s20] sm:$0xf] (%p41_p3)  ;;  %v122_v1 = vld [vmem:[%s103_s20 + $0x10] sm:$0xf] (%p41_p3) }
  0x10   : > { %121 = vst [vmem:[%s100_s21] sm:$0xf] (%p41_p3), %v120_v0  ;;  %v124_v2 = vld [vmem:[%s103_s20 + $0x20] sm:$0xf] (%p41_p3)  ;;  %v126_v3 = vld [vmem:[%s103_s20 + $0x30] sm:$0xf] (%p41_p3) }
  0x11   : > { %123 = vst [vmem:[%s100_s21 + $0x4] sm:$0xf] %v122_v1 }
  0x12   : > { %125 = vst [vmem:[%s100_s21 + $0x8] sm:$0xf] %v124_v2 }
  0x13   : > { %127 = vst [vmem:[%s100_s21 + $0xc] sm:$0xf] %v126_v3 }
  0x14 PF: > { %p326_p6 = scmp.ge.s32.totalorder %s425_s10, 1  ;;  %p158_p7 = scmp.lt.s32.totalorder %s425_s10, 5 }
  0x16   : > { %p159_p8 = pnand %p326_p6, %p158_p7 }
  0x17   : > { %s165_s22 = sand.u32 (!%p159_p8), 1, %s409_s6   ;;  %p186_p9 = scmp.lt.s32.totalorder (!%p159_p8), %s417_s8, 3 }
  0x18   : > { %162 = sbr.rel (%p159_p8) target bundleno = 58 (0x3a), region = 61  ;;  %s327_s23 = sshll.u32 (!%p159_p8), %s165_s22, 4 }
  0x19   : > { %s167_s29 = scalar_lea.vmem (!%p159_p8), [#allocation3], %s327_s23  ;;  %p329_p10 = scmp.ne.s32.totalorder (!%p159_p8), %s417_s8, 0 }
  0x1d   : > { %s187_s24 = scalar_select %p186_p9, %s417_s8, 3 }
  0x1e   : > { %196 = sbr.rel (%p329_p10) target bundleno = 40 (0x28), region = 69 }
  0x1f   : > { %s328_s25 = sshll.u32 %s187_s24, 2 }
  0x20   : > { %s490_s28 = scalar_lea.vmem %s510_s1, %s328_s25 }
  0x23   : > { %v427_v4 = vmov 0.0  }
  0x24   : > { %197 = vst [vmem:[#allocation2 + $0x10] sm:$0xff] %v427_v4 }
  0x25   : > { %198 = vst [vmem:[#allocation2] sm:$0xff] %v427_v4 }
  0x26   : > { %199 = vst [vmem:[#allocation2 + $0x18] sm:$0xff] %v427_v4 }
  0x27   : > { %200 = vst [vmem:[#allocation2 + $0x8] sm:$0xff] %v427_v4 }
  0x28 PF: > { %v337_v6 = vld [vmem:[%s167_s29] sm:$0xff]   ;;  %v344_v11 = vld [vmem:[%s167_s29 + $0x8] sm:$0xff]   ;;  %v428_v20 = vmov 0.0  }
  0x29   : > { %v338_v8 = vunpack.c.l.bf16 %v337_v6  ;;  %v339_v9 = vunpack.c.h.bf16 %v337_v6  ;;  %v342_v13 = vunpack.c.l.bf16 %v344_v11  ;;  %v343_v14 = vunpack.c.h.bf16 %v344_v11 }
  0x2b   : > { %v201_v5 = vld [vmem:[#allocation2 + $0x10] sm:$0xff] }
  0x2c   : > { %v202_v7 = vld [vmem:[#allocation2] sm:$0xff]  ;;  %v213_v15 = vadd.f32 %v338_v8, %v201_v5 }
  0x2d   : > { %v203_v10 = vld [vmem:[#allocation2 + $0x18] sm:$0xff]  ;;  %v214_v16 = vadd.f32 %v339_v9, %v202_v7 }
  0x2e   : > { %v204_v12 = vld [vmem:[#allocation2 + $0x8] sm:$0xff]  ;;  %v215_v17 = vadd.f32 %v342_v13, %v203_v10  ;;  %vm217_vm0 = vcmp.ge.f32.partialorder %v213_v15, 1.0 }
  0x2f   : > { %v216_v18 = vadd.f32 %v343_v14, %v204_v12  ;;  %vm218_vm1 = vcmp.ge.f32.partialorder %v214_v16, 1.0  ;;  %v221_v19 = vsel %vm217_vm0, 0.0, %v213_v15  ;;  %v330_v21 = vsel %vm217_vm0, 1.0, %v428_v20 }
  0x30   : > { %v222_v22 = vsel %vm218_vm1, 0.0, %v214_v16  ;;  %v331_v23 = vsel %vm218_vm1, 1.0, %v428_v20  ;;  %225 = vst [vmem:[#allocation2 + $0x10] sm:$0xff] %v221_v19  ;;  %vm219_vm2 = vcmp.ge.f32.partialorder %v215_v17, 1.0 }
  0x31   : > { %vm220_vm3 = vcmp.ge.f32.partialorder %v216_v18, 1.0  ;;  %v237_v24 = vmax.f32 %v330_v21, %v331_v23  ;;  %226 = vst [vmem:[#allocation2] sm:$0xff] %v222_v22  ;;  %v223_v25 = vsel %vm219_vm2, 0.0, %v215_v17  ;;  %v332_v26 = vsel %vm219_vm2, 1.0, %v428_v20 }
  0x32   : > { %v224_v27 = vsel %vm220_vm3, 0.0, %v216_v18  ;;  %v333_v28 = vsel %vm220_vm3, 1.0, %v428_v20  ;;  %227 = vst [vmem:[#allocation2 + $0x18] sm:$0xff] %v223_v25 }
  0x33   : > { %v238_v29 = vmax.f32 %v332_v26, %v333_v28  ;;  %228 = vst [vmem:[#allocation2 + $0x8] sm:$0xff] %v224_v27 }
  0x35   : > { %v239_v30 = vmax.f32 %v237_v24, %v238_v29 }
  0x37   : > { %v240_v31 = vpack.c.bf16 %v239_v30, %v239_v30 }
  0x39   : > { %241 = vst [vmem:[%s490_s28] sm:$0xf] %v240_v31 }
  0x3a PF: > { %s11_s10 = sadd.s32 1, %s425_s10   ;;  %s511_s6 = smov %s413_s7 }
  0x3b   : > { %p8_p11 = scmp.ge.s32.totalorder %s11_s10, 6   ;;  %s512_s7 = smov %s474_s14 }
  0x3c   : > { %s513_s8 = smov %s421_s9  ;;  %s514_s9 = smov %s516_s11 }
  0x3d   :  { %10 = sbr.rel (!%p8_p11) target bundleno = 3 (0x3), region = 104 }

// kernel: csnn_forward.10
= control target key start
LH: loop header
LB: loop body
LE: loop exit
PB: predicated region body
PF: predicated region fallthrough
CT: control target
= control target key end

     0   :  { %s2283_s15 = smov 0   ;;  %s3125_s0 = inlined_call_operand.vmem [shape: bf16[2304,4], index: 0, kind: input, shape index: {}, may-alias: {0,1}]   ;;  %s3126_s1 = inlined_call_operand.vmem [shape: bf16[2304,4], index: 1, kind: input, shape index: {}, may-alias: {0,1}]   ;;  %s3127_s2 = inlined_call_operand.vmem [shape: bf16[9,4,4], index: 2, kind: input, shape index: {}]   ;;  %s3128_s3 = inlined_call_operand.vmem [shape: f32[1,4], index: 3, kind: input, shape index: {}]   ;;  %s3129_s4 = inlined_call_operand.vmem [shape: bf16[2048,4], index: 4, kind: output, shape index: {}]  }
   0x1 LB: > { %s1968_s16 = sadd.s32 4294967295, %s2256_s15   ;;  %p1972_p0 = scmp.ge.s32.totalorder %s2256_s15, 1  ;;  %s2256_s15 = sphi %s2283_s15, %s14_s15  }
   0x2   : > { %p178_p1 = scmp.lt.s32.totalorder %s2256_s15, 9 }
   0x4   : > { %p179_p2 = pnand %p1972_p0, %p178_p1 }
   0x6   : > { %182 = sbr.rel (%p179_p2) target bundleno = 729 (0x2d9), region = 36 }
   0xb   : > { %v369_v0 = vld [vmem:[%s3127_s2] sm:$0x3]  ;;  %vm419_vm0 = vcmask 1041408   ;;  %s2294_s19 = sshll.u32 %s1968_s16, 5  ;;  %v2088_v2 = vld [vmem:[%s3127_s2 + $0x4] sm:$0x3] }
   0xc   : > { %v421_v1 = vsel %vm419_vm0, %v369_v0, 0  ;;  %p211_p3 = scmp.lt.s32.totalorder %s2294_s19, 287  ;;  %v2105_v3 = vld [vmem:[%s3127_s2 + $0x6] sm:$0x3]  ;;  %v920_v4 = vsel %vm419_vm0, %v2088_v2, 0  ;;  %vm370_vm1 = vcmask 31744  }
   0xd   : > { %2230 = vmatpush.bf16.msra.mxu1 %v421_v1  ;;  %2231 = vmatpush.bf16.msra.mxu2 %v421_v1  ;;  %v1048_v5 = vsel %vm419_vm0, %v2105_v3, 0  ;;  %v2071_v6 = vld [vmem:[%s3127_s2 + $0x2] sm:$0x3]  ;;  %v2122_v7 = vld [vmem:[%s3127_s2 + $0x8] sm:$0x3]  ;;  %vm837_vm3 = vcmask 1046528  }
   0xe   : > { %2232 = vmatpush.bf16.msra.mxu3 %v421_v1  ;;  %430 = vmatpush.bf16.msra.mxu0 %v421_v1  ;;  %s212_s28 = scalar_select %p211_p3, %s2294_s19, 287  ;;  %v712_v8 = vsel %vm419_vm0, %v2071_v6, 0  ;;  %v1185_v9 = vsel %vm419_vm0, %v2122_v7, 0  ;;  %v2156_v22 = vld [vmem:[%s3127_s2 + $0xc] sm:$0x3]  ;;  %vm1867_vm4 = vcmask 27648  }
   0xf   : > { %v2173_v23 = vld [vmem:[%s3127_s2 + $0xe] sm:$0x3]  ;;  %v2139_v24 = vld [vmem:[%s3127_s2 + $0xa] sm:$0x3]  ;;  %v1444_v25 = vsel %vm419_vm0, %v2156_v22, 0  ;;  %s2210_s18 = sadd.s32 32, %s2294_s19 }
  0x10   : > { %s1974_s29 = sshll.u32 %s212_s28, 2  ;;  %v1581_v26 = vsel %vm419_vm0, %v2173_v23, 0  ;;  %v1316_v27 = vsel %vm419_vm0, %v2139_v24, 0  ;;  %v2190_v28 = vld [vmem:[%s3127_s2 + $0x10] sm:$0x3]  ;;  %p218_p4 = scmp.lt.s32.totalorder %s2210_s18, 287 }
  0x11   : > { %929 = vmatpush.bf16.msrb.mxu2 %v920_v4  ;;  %721 = vmatpush.bf16.msrb.mxu1 %v712_v8  ;;  %s2318_s6 = scalar_lea.vmem %s3125_s0, %s1974_s29  ;;  %v1712_v29 = vsel %vm419_vm0, %v2190_v28, 0  ;;  %vm546_vm2 = vsmask.f32 7424  ;;  %p225_p5 = scmp.lt.s32.totalorder %s2294_s19, 255 }
  0x12   : > { %1057 = vmatpush.bf16.msrb.mxu3 %v1048_v5  ;;  %1194 = vmatpush.bf16.msrb.mxu0 %v1185_v9  ;;  %v2321_v10 = vld [vmem:[%s2318_s6 + $0x20] sm:$0xff]  ;;  %v2338_v14 = vld [vmem:[%s2318_s6 + $0x28] sm:$0xff]  ;;  %v2355_v18 = vld [vmem:[%s2318_s6 + $0x30] sm:$0xff]  ;;  %s3190_s18 = smov (!%p218_p4, %s2210_s18), 287 }
  0x13   : > { %v2324_v11 = vld [vmem:[%s2318_s6 + $0x40] sm:$0xff]  ;;  %2059 = vmatmul.msk.bf16.vlgmr.msra.gmra.mxu1 %vm370_vm1, %v2321_v10  ;;  %v2341_v15 = vld [vmem:[%s2318_s6 + $0x48] sm:$0xff]  ;;  %3142 = vst [vmem:[#allocation2_spill] sm:$0xff] %v2355_v18  ;;  %v2358_v19 = vld [vmem:[%s2318_s6 + $0x50] sm:$0xff]  ;;  %v574_v57 = vshll.u32 %v2321_v10, 16  ;;  %v578_v63 = vshrl.u32 %v2321_v10, 16 }
  0x14   : > { %v2327_v12 = vld [vmem:[%s2318_s6 + $0x60] sm:$0xff]  ;;  %2063 = vmatmul.msk.bf16.vlgmr.msra.gmra.mxu2 %vm370_vm1, %v2324_v11  ;;  %v2344_v16 = vld [vmem:[%s2318_s6 + $0x68] sm:$0xff]  ;;  %v2361_v20 = vld [vmem:[%s2318_s6 + $0x70] sm:$0xff]  ;;  %v581_v0 = vshll.u32 %v2338_v14, 16  ;;  %v845_v1 = vrot.slane %v2321_v10, 1  ;;  %v585_v6 = vshrl.u32 %v2338_v14, 16 }
  0x15   : > { %v2211_v13 = vld [vmem:[%s2318_s6] sm:$0xff]  ;;  %2067 = vmatmul.msk.bf16.vlgmr.msra.gmra.mxu3 %vm370_vm1, %v2327_v12  ;;  %v2212_v17 = vld [vmem:[%s2318_s6 + $0x8] sm:$0xff]  ;;  %v2364_v21 = vld [vmem:[%s2318_s6 + $0x10] sm:$0xff]  ;;  %1453 = vmatpush.bf16.msra.mxu2 %v1444_v25  ;;  %v576_v60 = vrot.slane %v574_v57, 1  ;;  %v588_v7 = vshll.u32 %v2355_v18, 16  ;;  %v847_v8 = vrot.slane %v2338_v14, 1 }
  0x16   : > { %2055 = vmatmul.msk.bf16.vlgmr.msra.gmra.mxu0 %vm370_vm1, %v2211_v13  ;;  %1590 = vmatpush.bf16.msra.mxu3 %v1581_v26  ;;  %v2391_v30 = vld [vmem:[%s2318_s6 + $0x38] sm:$0xff]  ;;  %v549_v34 = vshll.u32 %v2211_v13, 16  ;;  %v553_v35 = vshll.u32 %v2212_v17, 16  ;;  %v547_v36 = vshrl.u32 %v2211_v13, 16  ;;  %v557_v39 = vshrl.u32 %v2212_v17, 16  ;;  %s1976_s20 = sshll.u32 %s3190_s18, 2 }
  0x17   : > { %1325 = vmatpush.bf16.msra.mxu1 %v1316_v27  ;;  %1721 = vmatpush.bf16.msra.mxu0 %v1712_v29  ;;  %3143 = vst [vmem:[#allocation3_spill] sm:$0xff] %v2391_v30  ;;  %v2394_v31 = vld [vmem:[%s2318_s6 + $0x58] sm:$0xff]  ;;  %v560_v40 = vshll.u32 %v2364_v21, 16  ;;  %v838_v42 = vrot.slane %v2211_v13, 1  ;;  %v839_v43 = vrot.slane %v2212_v17, 1  ;;  %v564_v49 = vshrl.u32 %v2364_v21, 16  ;;  %s2764_s23 = scalar_lea.vmem %s3126_s1, %s1976_s20 }
  0x18   : > { %v2397_v32 = vld [vmem:[%s2318_s6 + $0x78] sm:$0xff]  ;;  %v551_v37 = vrot.slane %v549_v34, 1  ;;  %v555_v38 = vrot.slane %v553_v35, 1  ;;  %v841_v51 = vrot.slane %v2364_v21, 1  ;;  %v580_v2 = vor.u32 %v578_v63, %v576_v60  ;;  %v2474_v9 = vld [vmem:[%s3128_s3] ss:$0 sm:$0xff] }
  0x19   : > { %v2400_v33 = vld [vmem:[%s2318_s6 + $0x18] sm:$0xff]  ;;  %v562_v45 = vrot.slane %v560_v40, 1  ;;  %v840_v47 = vsel %vm837_vm3, %v838_v42, %v839_v43  ;;  %v583_v3 = vrot.slane %v581_v0, 1  ;;  %v2477_v23 = vsel %vm837_vm3, %v845_v1, %v847_v8  ;;  %s3192_s19 = smov (!%p225_p5, %s2294_s19), 255 }
  0x1a   : > { %v552_v41 = vor.u32 %v551_v37, %v547_v36  ;;  %v559_v44 = vor.u32 %v557_v39, %v555_v38  ;;  %v567_v50 = vshll.u32 %v2400_v33, 16  ;;  %v2422_v54 = vsel %vm837_vm3, %v839_v43, %v841_v51  ;;  %s1978_s24 = sshll.u32 %s3192_s19, 2 }
  0x1b   : > { %v566_v52 = vor.u32 %v564_v49, %v562_v45  ;;  %v571_v56 = vshrl.u32 %v2400_v33, 16  ;;  %v843_v58 = vrot.slane %v2400_v33, 1  ;;  %v2458_v5 = vsel %vm546_vm2, %v580_v2, %v583_v3  ;;  %s2964_s27 = scalar_lea.vmem %s3129_s4, %s1978_s24 }
  0x1c   : > { %v556_v46 = vsel %vm546_vm2, %v552_v41, %v555_v38  ;;  %v563_v48 = vsel %vm546_vm2, %v559_v44, %v562_v45  ;;  %v569_v53 = vrot.slane %v567_v50, 1  ;;  %v587_v13 = vor.u32 %v585_v6, %v583_v3 }
  0x1d   : > { %v2438_v61 = vsel %vm837_vm3, %v841_v51, %v843_v58  ;;  %v2455_v4 = vsel %vm837_vm3, %v843_v58, %v845_v1  ;;  %v592_v38 = vshrl.u32 %v2355_v18, 16  ;;  %v595_v39 = vshll.u32 %v2391_v30, 16 }
  0x1e   : > { %v2425_v55 = vsel %vm546_vm2, %v566_v52, %v569_v53  ;;  %v573_v59 = vor.u32 %v571_v56, %v569_v53  ;;  %v849_v40 = vrot.slane %v2355_v18, 1  ;;  %v599_v63 = vshrl.u32 %v2391_v30, 16 }
  0x1f   : > { %v597_v42 = vrot.slane %v595_v39, 1  ;;  %v602_v0 = vshll.u32 %v2324_v11, 16  ;;  %v851_v1 = vrot.slane %v2391_v30, 1 }
  0x20   : > { %v2441_v62 = vsel %vm546_vm2, %v573_v59, %v576_v60 }
  0x21   : > { %v601_v2 = vor.u32 %v599_v63, %v597_v42  ;;  %v604_v3 = vrot.slane %v602_v0, 1 }
  0x23   : > { %2060 = vmatmul.msk.bf16.gmra.mxu1 %vm370_vm1, %v2338_v14 }
  0x24   : > { %2064 = vmatmul.msk.bf16.gmra.mxu2 %vm370_vm1, %v2341_v15 }
  0x25   : > { %2068 = vmatmul.msk.bf16.gmra.mxu3 %vm370_vm1, %v2344_v16 }
  0x26   : > { %2056 = vmatmul.msk.bf16.gmra.mxu0 %vm370_vm1, %v2212_v17 }
  0x33   : > { %2061 = vmatmul.msk.bf16.gmra.mxu1 %vm370_vm1, %v2355_v18 }
  0x34   : > { %2065 = vmatmul.msk.bf16.gmra.mxu2 %vm370_vm1, %v2358_v19 }
  0x35   : > { %2069 = vmatmul.msk.bf16.gmra.mxu3 %vm370_vm1, %v2361_v20 }
  0x36   : > { %2057 = vmatmul.msk.bf16.gmra.mxu0 %vm370_vm1, %v2364_v21 }
  0x43   : > { %2062 = vmatmul.msk.bf16.gmra.mxu1 %vm370_vm1, %v2391_v30 }
  0x44   : > { %2066 = vmatmul.msk.bf16.gmra.mxu2 %vm370_vm1, %v2394_v31 }
  0x45   : > { %2070 = vmatmul.msk.bf16.gmra.mxu3 %vm370_vm1, %v2397_v32 }
  0x46   : > { %2058 = vmatmul.msk.bf16.gmra.mxu0 %vm370_vm1, %v2400_v33 }
  0x53   : > { %2072 = vmatmul.msk.bf16.vlgmr.msrb.gmra.mxu1 %vm370_vm1, %v556_v46 }
  0x54   : > { %2089 = vmatmul.msk.bf16.vlgmr.msrb.gmra.mxu2 %vm370_vm1, %v840_v47 }
  0x55   : > { %2106 = vmatmul.msk.bf16.vlgmr.msrb.gmra.mxu3 %vm370_vm1, %v2212_v17  ;;  %v590_v17 = vrot.slane %v588_v7, 1 }
  0x56   : > { %2123 = vmatmul.msk.bf16.vlgmr.msrb.gmra.mxu0 %vm370_vm1, %v563_v48 }
  0x57   : > { %v2485_v26 = vsel %vm546_vm2, %v587_v13, %v590_v17  ;;  %v594_v41 = vor.u32 %v592_v38, %v590_v17 }
  0x59   : > { %v2524_v51 = vsel %vm546_vm2, %v594_v41, %v597_v42 }
  0x5a   : > { %3146 = vst [vmem:[#allocation6_spill] sm:$0xff] %v2524_v51 }
  0x63   : > { %2073 = vmatmul.msk.bf16.gmra.mxu1 %vm370_vm1, %v563_v48  ;;  %v2516_v48 = vsel %vm837_vm3, %v847_v8, %v849_v40 }
  0x64   : > { %2090 = vmatmul.msk.bf16.gmra.mxu2 %vm370_vm1, %v2422_v54 }
  0x65   : > { %2107 = vmatmul.msk.bf16.gmra.mxu3 %vm370_vm1, %v2364_v21 }
  0x66   : > { %2124 = vmatmul.msk.bf16.gmra.mxu0 %vm370_vm1, %v2425_v55 }
  0x73   : > { %2074 = vmatmul.msk.bf16.gmra.mxu1 %vm370_vm1, %v2425_v55 }
  0x74   : > { %2091 = vmatmul.msk.bf16.gmra.mxu2 %vm370_vm1, %v2438_v61 }
  0x75   : > { %2108 = vmatmul.msk.bf16.gmra.mxu3 %vm370_vm1, %v2400_v33 }
  0x76   : > { %2125 = vmatmul.msk.bf16.gmra.mxu0 %vm370_vm1, %v2441_v62 }
  0x83   : > { %2075 = vmatmul.msk.bf16.gmra.mxu1 %vm370_vm1, %v2441_v62 }
  0x84   : > { %2092 = vmatmul.msk.bf16.gmra.mxu2 %vm370_vm1, %v2455_v4 }
  0x85   : > { %2109 = vmatmul.msk.bf16.gmra.mxu3 %vm370_vm1, %v2321_v10 }
  0x86   : > { %2126 = vmatmul.msk.bf16.gmra.mxu0 %vm370_vm1, %v2458_v5 }
  0x90   : > { %v452_v22 = vpop.f32.mrf.mxu1 }
  0x91   : > { %v2480_v24 = vadd.f32 %v2474_v9, %v452_v22  ;;  %v2555_v22 = vsel %vm837_vm3, %v849_v40, %v851_v1 }
  0x92   : > { %3149 = vst [vmem:[#allocation9_spill] sm:$0xff] %v2555_v22 }
  0x93   : > { %v2482_v25 = vpop.f32.mrf.mxu0  ;;  %2076 = vmatmul.msk.bf16.gmra.mxu1 %vm370_vm1, %v2458_v5 }
  0x94   : > { %2093 = vmatmul.msk.bf16.gmra.mxu2 %vm370_vm1, %v2477_v23 }
  0x95   : > { %2110 = vmatmul.msk.bf16.gmra.mxu3 %vm370_vm1, %v2338_v14 }
  0x96   : > { %2127 = vmatmul.msk.bf16.gmra.mxu0 %vm370_vm1, %v2485_v26 }
  0x97   : > { %v472_v27 = vpop.f32.mrf.mxu2 }
  0x98   : > { %v2496_v28 = vadd.f32 %v2474_v9, %v472_v27  ;;  %v492_v29 = vpop.f32.mrf.mxu3  ;;  %v454_v35 = vpop.f32.mrf.mxu1 }
  0x99   : > { %v2499_v34 = vadd.f32 %v2474_v9, %v492_v29  ;;  %v2502_v36 = vadd.f32 %v2474_v9, %v454_v35  ;;  %v2563_v35 = vsel %vm546_vm2, %v601_v2, %v604_v3 }
  0x9a   : > { %3150 = vst [vmem:[#allocation10_spill] sm:$0xff] %v2563_v35 }
  0x9b   : > { %3144 = vst [vmem:[#allocation4_spill] sm:$0xff] %v2499_v34  ;;  %v2504_v37 = vpop.f32.mrf.mxu0 }
  0x9f   : > { %v474_v43 = vpop.f32.mrf.mxu2 }
  0xa0   : > { %v2510_v44 = vadd.f32 %v2474_v9, %v474_v43  ;;  %v494_v45 = vpop.f32.mrf.mxu3  ;;  %v457_v47 = vpop.f32.mrf.mxu1 }
  0xa1   : > { %v2513_v46 = vadd.f32 %v2474_v9, %v494_v45  ;;  %v2519_v49 = vadd.f32 %v2474_v9, %v457_v47  ;;  %v606_v47 = vshrl.u32 %v2324_v11, 16 }
  0xa3   : > { %3145 = vst [vmem:[#allocation5_spill] sm:$0xff] %v2513_v46  ;;  %v2521_v50 = vpop.f32.mrf.mxu0  ;;  %2077 = vmatmul.msk.bf16.gmra.mxu1 %vm370_vm1, %v2485_v26 }
  0xa4   : > { %2094 = vmatmul.msk.bf16.gmra.mxu2 %vm370_vm1, %v2516_v48 }
  0xa5   : > { %2111 = vmatmul.msk.bf16.gmra.mxu3 %vm370_vm1, %v2355_v18 }
  0xa6   : > { %2128 = vmatmul.msk.bf16.gmra.mxu0 %vm370_vm1, %v2524_v51 }
  0xa7   : > { %v477_v52 = vpop.f32.mrf.mxu2 }
  0xa8   : > { %v2535_v53 = vadd.f32 %v2474_v9, %v477_v52  ;;  %v497_v56 = vpop.f32.mrf.mxu3  ;;  %v459_v58 = vpop.f32.mrf.mxu1  ;;  %v609_v52 = vshll.u32 %v2341_v15, 16 }
  0xa9   : > { %v2538_v57 = vadd.f32 %v2474_v9, %v497_v56  ;;  %v2541_v59 = vadd.f32 %v2474_v9, %v459_v58  ;;  %v853_v56 = vrot.slane %v2324_v11, 1  ;;  %v608_v58 = vor.u32 %v606_v47, %v604_v3 }
  0xaa   : > { %v611_v63 = vrot.slane %v609_v52, 1 }
  0xab   : > { %3147 = vst [vmem:[#allocation7_spill] sm:$0xff] %v2538_v57  ;;  %v2543_v60 = vpop.f32.mrf.mxu0 }
  0xac   : > { %v2602_v3 = vsel %vm546_vm2, %v608_v58, %v611_v63 }
  0xad   : > { %3154 = vst [vmem:[#allocation14_spill] sm:$0xff] %v2602_v3 }
  0xaf   : > { %v479_v6 = vpop.f32.mrf.mxu2 }
  0xb0   : > { %v2549_v7 = vadd.f32 %v2474_v9, %v479_v6  ;;  %v499_v8 = vpop.f32.mrf.mxu3  ;;  %v462_v17 = vpop.f32.mrf.mxu1 }
  0xb1   : > { %v2552_v13 = vadd.f32 %v2474_v9, %v499_v8  ;;  %v2558_v27 = vadd.f32 %v2474_v9, %v462_v17 }
  0xb3   : > { %3148 = vst [vmem:[#allocation8_spill] sm:$0xff] %v2552_v13  ;;  %v2560_v29 = vpop.f32.mrf.mxu0  ;;  %2078 = vmatmul.msk.bf16.gmra.mxu1 %vm370_vm1, %v2524_v51 }
  0xb4   : > { %2095 = vmatmul.msk.bf16.gmra.mxu2 %vm370_vm1, %v2555_v22 }
  0xb5   : > { %2112 = vmatmul.msk.bf16.gmra.mxu3 %vm370_vm1, %v2391_v30 }
  0xb6   : > { %2129 = vmatmul.msk.bf16.gmra.mxu0 %vm370_vm1, %v2563_v35 }
  0xb7   : > { %v482_v38 = vpop.f32.mrf.mxu2 }
  0xb8   : > { %v2574_v39 = vadd.f32 %v2474_v9, %v482_v38  ;;  %v502_v40 = vpop.f32.mrf.mxu3  ;;  %v464_v42 = vpop.f32.mrf.mxu1  ;;  %v2594_v38 = vsel %vm837_vm3, %v851_v1, %v853_v56 }
  0xb9   : > { %v2577_v41 = vadd.f32 %v2474_v9, %v502_v40  ;;  %v2580_v43 = vadd.f32 %v2474_v9, %v464_v42  ;;  %3153 = vst [vmem:[#allocation13_spill] sm:$0xff] %v2594_v38 }
  0xbb   : > { %3151 = vst [vmem:[#allocation11_spill] sm:$0xff] %v2577_v41  ;;  %v2582_v45 = vpop.f32.mrf.mxu0  ;;  %v855_v41 = vrot.slane %v2341_v15, 1 }
  0xbd   : > { %v2635_v57 = vsel %vm837_vm3, %v853_v56, %v855_v41 }
  0xbe   : > { %3157 = vst [vmem:[#allocation17_spill] sm:$0xff] %v2635_v57 }
  0xbf   : > { %v484_v0 = vpop.f32.mrf.mxu2 }
  0xc0   : > { %v2588_v2 = vadd.f32 %v2474_v9, %v484_v0  ;;  %v504_v6 = vpop.f32.mrf.mxu3  ;;  %v467_v17 = vpop.f32.mrf.mxu1 }
  0xc1   : > { %v2591_v8 = vadd.f32 %v2474_v9, %v504_v6  ;;  %v2597_v40 = vadd.f32 %v2474_v9, %v467_v17 }
  0xc3   : > { %3152 = vst [vmem:[#allocation12_spill] sm:$0xff] %v2591_v8  ;;  %v2599_v42 = vpop.f32.mrf.mxu0  ;;  %2079 = vmatmul.msk.bf16.gmra.mxu1 %vm370_vm1, %v2563_v35  ;;  %v613_v8 = vshrl.u32 %v2341_v15, 16  ;;  %v512_v35 = vadd.f32 %v2474_v9, %v2482_v25 }
  0xc4   : > { %2096 = vmatmul.msk.bf16.gmra.mxu2 %vm370_vm1, %v2594_v38 }
  0xc5   : > { %2113 = vmatmul.msk.bf16.gmra.mxu3 %vm370_vm1, %v2324_v11  ;;  %v616_v11 = vshll.u32 %v2358_v19, 16  ;;  %v615_v13 = vor.u32 %v613_v8, %v611_v63 }
  0xc6   : > { %2130 = vmatmul.msk.bf16.gmra.mxu0 %vm370_vm1, %v2602_v3 }
  0xc7   : > { %v487_v1 = vpop.f32.mrf.mxu2  ;;  %v618_v38 = vrot.slane %v616_v11, 1 }
  0xc8   : > { %v2613_v47 = vadd.f32 %v2474_v9, %v487_v1  ;;  %v507_v52 = vpop.f32.mrf.mxu3  ;;  %v469_v0 = vpop.f32.mrf.mxu1 }
  0xc9   : > { %v2616_v58 = vadd.f32 %v2474_v9, %v507_v52  ;;  %v2619_v6 = vadd.f32 %v2474_v9, %v469_v0  ;;  %v2638_v63 = vsel %vm546_vm2, %v615_v13, %v618_v38 }
  0xcb   : > { %3155 = vst [vmem:[#allocation15_spill] sm:$0xff] %v2616_v58  ;;  %v2621_v17 = vpop.f32.mrf.mxu0 }
  0xcf   : > { %v489_v1 = vpop.f32.mrf.mxu2 }
  0xd0   : > { %v2629_v52 = vadd.f32 %v2474_v9, %v489_v1  ;;  %v509_v58 = vpop.f32.mrf.mxu3  ;;  %v723_v30 = vpop.f32.mrf.mxu1  ;;  %v620_v1 = vshrl.u32 %v2358_v19, 16 }
  0xd1   : > { %v2632_v0 = vadd.f32 %v2474_v9, %v509_v58  ;;  %v803_v46 = vadd.f32 %v723_v30, %v512_v35  ;;  %v513_v30 = vadd.f32 %v2474_v9, %v2504_v37  ;;  %v514_v37 = vadd.f32 %v2474_v9, %v2521_v50 }
  0xd3   : > { %3156 = vst [vmem:[#allocation16_spill] sm:$0xff] %v2632_v0  ;;  %v1196_v22 = vpop.f32.mrf.mxu0  ;;  %2080 = vmatmul.msk.bf16.gmra.mxu1 %vm370_vm1, %v2602_v3  ;;  %v623_v0 = vshll.u32 %v2394_v31, 16  ;;  %v622_v3 = vor.u32 %v620_v1, %v618_v38  ;;  %v627_v1 = vshrl.u32 %v2394_v31, 16 }
  0xd4   : > { %2097 = vmatmul.msk.bf16.gmra.mxu2 %vm370_vm1, %v2635_v57 }
  0xd5   : > { %2114 = vmatmul.msk.bf16.gmra.mxu3 %vm370_vm1, %v2341_v15  ;;  %v857_v15 = vrot.slane %v2358_v19, 1  ;;  %v625_v51 = vrot.slane %v623_v0, 1 }
  0xd6   : > { %2131 = vmatmul.msk.bf16.gmra.mxu0 %vm370_vm1, %v2638_v63 }
  0xd7   : > { %v931_v25 = vpop.f32.mrf.mxu2 }
  0xd8   : > { %v1011_v35 = vadd.f32 %v931_v25, %v803_v46  ;;  %v1059_v56 = vpop.f32.mrf.mxu3  ;;  %v725_v13 = vpop.f32.mrf.mxu1 }
  0xd9   : > { %v804_v58 = vadd.f32 %v725_v13, %v513_v30  ;;  %v2658_v30 = vsel %vm837_vm3, %v855_v41, %v857_v15 }
  0xda   : > { %v1139_v8 = vadd.f32 %v1059_v56, %v1011_v35 }
  0xdb   : > { %v1198_v11 = vpop.f32.mrf.mxu0 }
  0xdc   : > { %v2652_v57 = vadd.f32 %v1196_v22, %v1139_v8  ;;  %v2661_v22 = vsel %vm546_vm2, %v622_v3, %v625_v51 }
  0xdf   : > { %v933_v18 = vpop.f32.mrf.mxu2 }
  0xe0   : > { %v1012_v46 = vadd.f32 %v933_v18, %v804_v58  ;;  %v1061_v25 = vpop.f32.mrf.mxu3  ;;  %v728_v34 = vpop.f32.mrf.mxu1 }
  0xe1   : > { %v805_v56 = vadd.f32 %v728_v34, %v514_v37  ;;  %v515_v34 = vadd.f32 %v2474_v9, %v2543_v60  ;;  %v516_v60 = vadd.f32 %v2474_v9, %v2560_v29 }
  0xe2   : > { %v1140_v35 = vadd.f32 %v1061_v25, %v1012_v46  ;;  %v629_v46 = vor.u32 %v627_v1, %v625_v51 }
  0xe3   : > { %v1201_v13 = vpop.f32.mrf.mxu0  ;;  %2081 = vmatmul.msk.bf16.gmra.mxu1 %vm370_vm1, %v2638_v63 }
  0xe4   : > { %2098 = vmatmul.msk.bf16.gmra.mxu2 %vm370_vm1, %v2658_v30  ;;  %v2667_v38 = vadd.f32 %v1198_v11, %v1140_v35  ;;  %v630_v11 = vshll.u32 %v2327_v12, 16 }
  0xe5   : > { %2115 = vmatmul.msk.bf16.gmra.mxu3 %vm370_vm1, %v2358_v19  ;;  %v859_v19 = vrot.slane %v2394_v31, 1 }
  0xe6   : > { %3158 = vst [vmem:[#allocation18_spill] sm:$0xff] %v2667_v38  ;;  %2132 = vmatmul.msk.bf16.gmra.mxu0 %vm370_vm1, %v2661_v22  ;;  %v632_v25 = vrot.slane %v630_v11, 1 }
  0xe7   : > { %v936_v18 = vpop.f32.mrf.mxu2 }
  0xe8   : > { %v1013_v50 = vadd.f32 %v936_v18, %v805_v56  ;;  %v1064_v41 = vpop.f32.mrf.mxu3  ;;  %v730_v3 = vpop.f32.mrf.mxu1 }
  0xe9   : > { %v806_v8 = vadd.f32 %v730_v3, %v515_v34  ;;  %v2683_v34 = vsel %vm837_vm3, %v857_v15, %v859_v19  ;;  %v517_v15 = vadd.f32 %v2474_v9, %v2582_v45  ;;  %v518_v45 = vadd.f32 %v2474_v9, %v2599_v42 }
  0xea   : > { %v1141_v0 = vadd.f32 %v1064_v41, %v1013_v50 }
  0xeb   : > { %v1203_v58 = vpop.f32.mrf.mxu0 }
  0xec   : > { %v2677_v37 = vadd.f32 %v1201_v13, %v1141_v0  ;;  %v2686_v13 = vsel %vm546_vm2, %v629_v46, %v632_v25 }
  0xef   : > { %v938_v35 = vpop.f32.mrf.mxu2 }
  0xf0   : > { %v1014_v56 = vadd.f32 %v938_v35, %v806_v8  ;;  %v1066_v18 = vpop.f32.mrf.mxu3  ;;  %v733_v38 = vpop.f32.mrf.mxu1  ;;  %v634_v35 = vshrl.u32 %v2327_v12, 16 }
  0xf1   : > { %v807_v41 = vadd.f32 %v733_v38, %v516_v60 }
  0xf2   : > { %v1142_v50 = vadd.f32 %v1066_v18, %v1014_v56  ;;  %v636_v56 = vor.u32 %v634_v35, %v632_v25 }
  0xf3   : > { %v1206_v3 = vpop.f32.mrf.mxu0  ;;  %2082 = vmatmul.msk.bf16.gmra.mxu1 %vm370_vm1, %v2661_v22 }
  0xf4   : > { %2099 = vmatmul.msk.bf16.gmra.mxu2 %vm370_vm1, %v2683_v34  ;;  %v2692_v51 = vadd.f32 %v1203_v58, %v1142_v50  ;;  %v637_v58 = vshll.u32 %v2344_v16, 16 }
  0xf5   : > { %2116 = vmatmul.msk.bf16.gmra.mxu3 %vm370_vm1, %v2394_v31  ;;  %v861_v31 = vrot.slane %v2327_v12, 1 }
  0xf6   : > { %3159 = vst [vmem:[#allocation19_spill] sm:$0xff] %v2692_v51  ;;  %2133 = vmatmul.msk.bf16.gmra.mxu0 %vm370_vm1, %v2686_v13  ;;  %v639_v18 = vrot.slane %v637_v58, 1 }
  0xf7   : > { %v941_v29 = vpop.f32.mrf.mxu2 }
  0xf8   : > { %v1015_v38 = vadd.f32 %v941_v29, %v807_v41  ;;  %v1069_v0 = vpop.f32.mrf.mxu3  ;;  %v735_v8 = vpop.f32.mrf.mxu1 }
  0xf9   : > { %v808_v11 = vadd.f32 %v735_v8, %v517_v15  ;;  %v2708_v15 = vsel %vm837_vm3, %v859_v19, %v861_v31  ;;  %v519_v19 = vadd.f32 %v2474_v9, %v2621_v17 }
  0xfa   : > { %v1143_v1 = vadd.f32 %v1069_v0, %v1015_v38 }
  0xfb   : > { %v1208_v46 = vpop.f32.mrf.mxu0 }
  0xfc   : > { %v2702_v60 = vadd.f32 %v1206_v3, %v1143_v1  ;;  %v2711_v3 = vsel %vm546_vm2, %v636_v56, %v639_v18 }
  0xff   : > { %v943_v50 = vpop.f32.mrf.mxu2 }
 0x100   : > { %v1016_v41 = vadd.f32 %v943_v50, %v808_v11  ;;  %v1071_v29 = vpop.f32.mrf.mxu3  ;;  %v738_v51 = vpop.f32.mrf.mxu1  ;;  %v641_v50 = vshrl.u32 %v2344_v16, 16 }
 0x101   : > { %v809_v0 = vadd.f32 %v738_v51, %v518_v45 }
 0x102   : > { %v1144_v38 = vadd.f32 %v1071_v29, %v1016_v41  ;;  %v643_v41 = vor.u32 %v641_v50, %v639_v18  ;;  %v648_v50 = vshrl.u32 %v2361_v20, 16 }
 0x103   : > { %v1211_v8 = vpop.f32.mrf.mxu0  ;;  %2083 = vmatmul.msk.bf16.gmra.mxu1 %vm370_vm1, %v2686_v13 }
 0x104   : > { %2100 = vmatmul.msk.bf16.gmra.mxu2 %vm370_vm1, %v2708_v15  ;;  %v2717_v25 = vadd.f32 %v1208_v46, %v1144_v38  ;;  %v644_v46 = vshll.u32 %v2361_v20, 16 }
 0x105   : > { %2117 = vmatmul.msk.bf16.gmra.mxu3 %vm370_vm1, %v2327_v12  ;;  %v863_v12 = vrot.slane %v2344_v16, 1 }
 0x106   : > { %3160 = vst [vmem:[#allocation20_spill] sm:$0xff] %v2717_v25  ;;  %2134 = vmatmul.msk.bf16.gmra.mxu0 %vm370_vm1, %v2711_v3  ;;  %v646_v29 = vrot.slane %v644_v46, 1 }
 0x107   : > { %v946_v42 = vpop.f32.mrf.mxu2 }
 0x108   : > { %v1017_v51 = vadd.f32 %v946_v42, %v809_v0  ;;  %v1074_v1 = vpop.f32.mrf.mxu3  ;;  %v740_v11 = vpop.f32.mrf.mxu1  ;;  %v2731_v0 = vsel %vm837_vm3, %v861_v31, %v863_v12 }
 0x109   : > { %v810_v58 = vadd.f32 %v740_v11, %v519_v19 }
 0x10a   : > { %v1145_v35 = vadd.f32 %v1074_v1, %v1017_v51  ;;  %v2735_v1 = vsel %vm546_vm2, %v643_v41, %v646_v29  ;;  %v650_v41 = vor.u32 %v648_v50, %v646_v29 }
 0x10b   : > { %v1213_v56 = vpop.f32.mrf.mxu0 }
 0x10c   : > { %v2727_v45 = vadd.f32 %v1211_v8, %v1145_v35 }
 0x10f   : > { %v948_v38 = vpop.f32.mrf.mxu2 }
 0x110   : > { %v1018_v25 = vadd.f32 %v948_v38, %v810_v58  ;;  %v1076_v9 = vpop.f32.mrf.mxu3  ;;  %v743_v17 = vpop.f32.mrf.mxu1 }
 0x111   : > { %v811_v19 = vadd.f32 %v743_v17, %v2480_v24 }
 0x112   : > { %v1146_v42 = vadd.f32 %v1076_v9, %v1018_v25 }
 0x113   : > { %v1216_v51 = vpop.f32.mrf.mxu0  ;;  %2084 = vmatmul.msk.bf16.gmra.mxu1 %vm370_vm1, %v2711_v3 }
 0x114   : > { %2101 = vmatmul.msk.bf16.gmra.mxu2 %vm370_vm1, %v2731_v0  ;;  %v2741_v18 = vadd.f32 %v1213_v56, %v1146_v42  ;;  %v651_v56 = vshll.u32 %v2397_v32, 16 }
 0x115   : > { %2118 = vmatmul.msk.bf16.gmra.mxu3 %vm370_vm1, %v2344_v16  ;;  %v865_v16 = vrot.slane %v2361_v20, 1 }
 0x116   : > { %2135 = vmatmul.msk.bf16.gmra.mxu0 %vm370_vm1, %v2735_v1  ;;  %v653_v38 = vrot.slane %v651_v56, 1 }
 0x117   : > { %v951_v24 = vpop.f32.mrf.mxu2 }
 0x118   : > { %v1019_v31 = vadd.f32 %v951_v24, %v811_v19  ;;  %v1079_v8 = vpop.f32.mrf.mxu3  ;;  %v745_v25 = vpop.f32.mrf.mxu1  ;;  %v2755_v24 = vsel %vm837_vm3, %v863_v12, %v865_v16 }
 0x119   : > { %v812_v35 = vadd.f32 %v745_v25, %v2502_v36  ;;  %v2759_v25 = vsel %vm546_vm2, %v650_v41, %v653_v38 }
 0x11a   : > { %v1147_v11 = vadd.f32 %v1079_v8, %v1019_v31 }
 0x11b   : > { %v1218_v58 = vpop.f32.mrf.mxu0 }
 0x11c   : > { %v2751_v46 = vadd.f32 %v1216_v51, %v1147_v11 }
 0x11e   : > { %3161 = vst [vmem:[#allocation21_spill] sm:$0xff] %v2751_v46 }
 0x11f   : > { %v953_v9 = vpop.f32.mrf.mxu2 }
 0x120   : > { %v1020_v17 = vadd.f32 %v953_v9, %v812_v35  ;;  %v1081_v42 = vpop.f32.mrf.mxu3  ;;  %v748_v19 = vpop.f32.mrf.mxu1  ;;  %v655_v9 = vshrl.u32 %v2397_v32, 16 }
 0x121   : > { %v813_v31 = vadd.f32 %v748_v19, %v2519_v49  ;;  %v2777_v49 = vld [vmem:[%s2764_s23] sm:$0xff] }
 0x122   : > { %v1148_v36 = vadd.f32 %v1081_v42, %v1020_v17  ;;  %v657_v42 = vor.u32 %v655_v9, %v653_v38 }
 0x123   : > { %v1221_v8 = vpop.f32.mrf.mxu0  ;;  %2085 = vmatmul.msk.bf16.gmra.mxu1 %vm370_vm1, %v2735_v1 }
 0x124   : > { %2102 = vmatmul.msk.bf16.gmra.mxu2 %vm370_vm1, %v2755_v24  ;;  %v2770_v12 = vadd.f32 %v1218_v58, %v1148_v36  ;;  %v659_v58 = vshll.u32 %v2777_v49, 16 }
 0x125   : > { %2119 = vmatmul.msk.bf16.gmra.mxu3 %vm370_vm1, %v2361_v20  ;;  %v867_v20 = vrot.slane %v2397_v32, 1 }
 0x126   : > { %3162 = vst [vmem:[#allocation22_spill] sm:$0xff] %v2770_v12  ;;  %2136 = vmatmul.msk.bf16.gmra.mxu0 %vm370_vm1, %v2759_v25  ;;  %v661_v19 = vrot.slane %v659_v58, 1 }
 0x127   : > { %v956_v29 = vpop.f32.mrf.mxu2 }
 0x128   : > { %v1021_v51 = vadd.f32 %v956_v29, %v813_v31  ;;  %v1084_v11 = vpop.f32.mrf.mxu3  ;;  %v750_v35 = vpop.f32.mrf.mxu1  ;;  %v2790_v46 = vsel %vm546_vm2, %v657_v42, %v661_v19  ;;  %v1173_v42 = vshrl.u32 %v2777_v49, 16 }
 0x129   : > { %v814_v56 = vadd.f32 %v750_v35, %v2541_v59 }
 0x12a   : > { %v1149_v50 = vadd.f32 %v1084_v11, %v1021_v51  ;;  %v2786_v51 = vsel %vm837_vm3, %v865_v16, %v867_v20  ;;  %v2803_v16 = vld [vmem:[%s2764_s23 + $0x8] sm:$0xff] }
 0x12b   : > { %v1223_v41 = vpop.f32.mrf.mxu0 }
 0x12c   : > { %v2782_v17 = vadd.f32 %v1221_v8, %v1149_v50 }
 0x12f   : > { %v958_v36 = vpop.f32.mrf.mxu2 }
 0x130   : > { %v1022_v12 = vadd.f32 %v958_v36, %v814_v56  ;;  %v1086_v31 = vpop.f32.mrf.mxu3  ;;  %v753_v29 = vpop.f32.mrf.mxu1 }
 0x131   : > { %v815_v11 = vadd.f32 %v753_v29, %v2558_v27 }
 0x132   : > { %v1150_v59 = vadd.f32 %v1086_v31, %v1022_v12  ;;  %v1175_v31 = vor.u32 %v1173_v42, %v661_v19 }
 0x133   : > { %v1226_v35 = vpop.f32.mrf.mxu0  ;;  %2086 = vmatmul.msk.bf16.gmra.mxu1 %vm370_vm1, %v2759_v25 }
 0x134   : > { %2103 = vmatmul.msk.bf16.gmra.mxu2 %vm370_vm1, %v2786_v51  ;;  %v2796_v38 = vadd.f32 %v1223_v41, %v1150_v59  ;;  %v1177_v41 = vshll.u32 %v2803_v16, 16 }
 0x135   : > { %2120 = vmatmul.msk.bf16.gmra.mxu3 %vm370_vm1, %v2397_v32  ;;  %v3141_v32 = vrot.slane %v2777_v49, 1 }
 0x136   : > { %3163 = vst [vmem:[#allocation23_spill] sm:$0xff] %v2796_v38  ;;  %2137 = vmatmul.msk.bf16.gmra.mxu0 %vm370_vm1, %v2790_v46  ;;  %v2811_v29 = vrot.slane %v1177_v41, 1 }
 0x137   : > { %v961_v27 = vpop.f32.mrf.mxu2 }
 0x138   : > { %v1023_v8 = vadd.f32 %v961_v27, %v815_v11  ;;  %v1089_v12 = vpop.f32.mrf.mxu3  ;;  %v755_v50 = vpop.f32.mrf.mxu1 }
 0x139   : > { %v816_v9 = vadd.f32 %v755_v50, %v2580_v43  ;;  %v2816_v43 = vsel %vm837_vm3, %v867_v20, %v3141_v32 }
 0x13a   : > { %v1151_v56 = vadd.f32 %v1089_v12, %v1023_v8 }
 0x13b   : > { %v1228_v58 = vpop.f32.mrf.mxu0 }
 0x13c   : > { %v2808_v36 = vadd.f32 %v1226_v35, %v1151_v56  ;;  %v2821_v35 = vsel %vm546_vm2, %v1175_v31, %v2811_v29 }
 0x13f   : > { %v963_v59 = vpop.f32.mrf.mxu2 }
 0x140   : > { %v1024_v38 = vadd.f32 %v963_v59, %v816_v9  ;;  %v1091_v11 = vpop.f32.mrf.mxu3  ;;  %v758_v27 = vpop.f32.mrf.mxu1 }
 0x141   : > { %v817_v12 = vadd.f32 %v758_v27, %v2597_v40 }
 0x142   : > { %v1152_v8 = vadd.f32 %v1091_v11, %v1024_v38 }
 0x143   : > { %v1231_v50 = vpop.f32.mrf.mxu0  ;;  %2087 = vmatmul.msk.bf16.gmra.mxu1 %vm370_vm1, %v2790_v46 }
 0x144   : > { %2104 = vmatmul.msk.bf16.gmra.mxu2 %vm370_vm1, %v2816_v43  ;;  %v2827_v19 = vadd.f32 %v1228_v58, %v1152_v8 }
 0x145   : > { %2121 = vmatmul.msk.bf16.gmra.mxu3 %vm370_vm1, %v2777_v49 }
 0x146   : > { %3164 = vst [vmem:[#allocation24_spill] sm:$0xff] %v2827_v19  ;;  %2138 = vmatmul.msk.bf16.gmra.mxu0 %vm370_vm1, %v2821_v35 }
 0x147   : > { %v966_v40 = vpop.f32.mrf.mxu2 }
 0x148   : > { %v1025_v20 = vadd.f32 %v966_v40, %v817_v12  ;;  %v1094_v38 = vpop.f32.mrf.mxu3  ;;  %v760_v56 = vpop.f32.mrf.mxu1 }
 0x149   : > { %v818_v42 = vadd.f32 %v760_v56, %v2619_v6 }
 0x14a   : > { %v1153_v9 = vadd.f32 %v1094_v38, %v1025_v20 }
 0x14b   : > { %v1233_v41 = vpop.f32.mrf.mxu0 }
 0x14c   : > { %v2834_v31 = vadd.f32 %v1231_v50, %v1153_v9 }
 0x14f   : > { %v968_v59 = vpop.f32.mrf.mxu2 }
 0x150   : > { %v1026_v11 = vadd.f32 %v968_v59, %v818_v42  ;;  %v1096_v58 = vpop.f32.mrf.mxu3  ;;  %v763_v27 = vpop.f32.mrf.mxu1 }
 0x151   : > { %v819_v32 = vadd.f32 %v763_v27, %v2496_v28 }
 0x152   : > { %v1154_v8 = vadd.f32 %v1096_v58, %v1026_v11 }
 0x153   : > { %v1236_v19 = vpop.f32.mrf.mxu0  ;;  %2140 = vmatmul.msk.bf16.vlgmr.msra.gmra.mxu1 %vm370_vm1, %v2422_v54 }
 0x154   : > { %2157 = vmatmul.msk.bf16.vlgmr.msra.gmra.mxu2 %vm370_vm1, %v2364_v21  ;;  %v2841_v12 = vadd.f32 %v1233_v41, %v1154_v8 }
 0x155   : > { %2174 = vmatmul.msk.bf16.vlgmr.msra.gmra.mxu3 %vm370_vm1, %v2425_v55 }
 0x156   : > { %2191 = vmatmul.msk.bf16.vlgmr.msra.gmra.mxu0 %vm370_vm1, %v2438_v61 }
 0x157   : > { %v971_v6 = vpop.f32.mrf.mxu2 }
 0x158   : > { %v1027_v50 = vadd.f32 %v971_v6, %v819_v32  ;;  %v1099_v40 = vpop.f32.mrf.mxu3  ;;  %v765_v20 = vpop.f32.mrf.mxu1 }
 0x159   : > { %v820_v38 = vadd.f32 %v765_v20, %v2510_v44 }
 0x15a   : > { %v1155_v28 = vadd.f32 %v1099_v40, %v1027_v50 }
 0x15b   : > { %v1238_v56 = vpop.f32.mrf.mxu0 }
 0x15c   : > { %v2848_v54 = vadd.f32 %v1236_v19, %v1155_v28 }
 0x15f   : > { %v973_v9 = vpop.f32.mrf.mxu2 }
 0x160   : > { %v1028_v21 = vadd.f32 %v973_v9, %v820_v38  ;;  %v1101_v42 = vpop.f32.mrf.mxu3  ;;  %v768_v41 = vpop.f32.mrf.mxu1 }
 0x161   : > { %v821_v55 = vadd.f32 %v768_v41, %v2535_v53 }
 0x162   : > { %v1156_v59 = vadd.f32 %v1101_v42, %v1028_v21 }
 0x163   : > { %v1241_v11 = vpop.f32.mrf.mxu0  ;;  %2141 = vmatmul.msk.bf16.gmra.mxu1 %vm370_vm1, %v2438_v61 }
 0x164   : > { %2158 = vmatmul.msk.bf16.gmra.mxu2 %vm370_vm1, %v2400_v33  ;;  %v2855_v32 = vadd.f32 %v1238_v56, %v1156_v59 }
 0x165   : > { %2175 = vmatmul.msk.bf16.gmra.mxu3 %vm370_vm1, %v2441_v62 }
 0x166   : > { %2192 = vmatmul.msk.bf16.gmra.mxu0 %vm370_vm1, %v2455_v4 }
 0x167   : > { %v976_v44 = vpop.f32.mrf.mxu2 }
 0x168   : > { %v1029_v19 = vadd.f32 %v976_v44, %v821_v55  ;;  %v1104_v58 = vpop.f32.mrf.mxu3  ;;  %v770_v27 = vpop.f32.mrf.mxu1 }
 0x169   : > { %v822_v8 = vadd.f32 %v770_v27, %v2549_v7 }
 0x16a   : > { %v1157_v53 = vadd.f32 %v1104_v58, %v1029_v19 }
 0x16b   : > { %v1243_v6 = vpop.f32.mrf.mxu0 }
 0x16c   : > { %v2862_v61 = vadd.f32 %v1241_v11, %v1157_v53 }
 0x16f   : > { %v978_v50 = vpop.f32.mrf.mxu2 }
 0x170   : > { %v1030_v33 = vadd.f32 %v978_v50, %v822_v8  ;;  %v1106_v40 = vpop.f32.mrf.mxu3  ;;  %v773_v20 = vpop.f32.mrf.mxu1 }
 0x171   : > { %v823_v62 = vadd.f32 %v773_v20, %v2574_v39 }
 0x172   : > { %v1158_v28 = vadd.f32 %v1106_v40, %v1030_v33 }
 0x173   : > { %v1246_v38 = vpop.f32.mrf.mxu0  ;;  %2142 = vmatmul.msk.bf16.gmra.mxu1 %vm370_vm1, %v2455_v4 }
 0x174   : > { %2159 = vmatmul.msk.bf16.gmra.mxu2 %vm370_vm1, %v2321_v10  ;;  %v2869_v56 = vadd.f32 %v1243_v6, %v1158_v28 }
 0x175   : > { %2176 = vmatmul.msk.bf16.gmra.mxu3 %vm370_vm1, %v2458_v5 }
 0x176   : > { %2193 = vmatmul.msk.bf16.gmra.mxu0 %vm370_vm1, %v2477_v23 }
 0x177   : > { %v981_v7 = vpop.f32.mrf.mxu2 }
 0x178   : > { %v1031_v9 = vadd.f32 %v981_v7, %v823_v62  ;;  %v1109_v21 = vpop.f32.mrf.mxu3  ;;  %v775_v42 = vpop.f32.mrf.mxu1 }
 0x179   : > { %v824_v41 = vadd.f32 %v775_v42, %v2588_v2  ;;  %v3168_v42 = vld [vmem:[#allocation9_spill] sm:$0xff] }
 0x17a   : > { %v1159_v39 = vadd.f32 %v1109_v21, %v1031_v9  ;;  %v3166_v9 = vld [vmem:[#allocation2_spill] sm:$0xff] }
 0x17b   : > { %v1248_v59 = vpop.f32.mrf.mxu0 }
 0x17c   : > { %v2876_v4 = vadd.f32 %v1246_v38, %v1159_v39  ;;  %v3165_v38 = vld [vmem:[#allocation4_spill] sm:$0xff] }
 0x17f   : > { %v983_v55 = vpop.f32.mrf.mxu2 }
 0x180   : > { %v1032_v10 = vadd.f32 %v983_v55, %v824_v41  ;;  %v1111_v11 = vpop.f32.mrf.mxu3  ;;  %v778_v44 = vpop.f32.mrf.mxu1 }
 0x181   : > { %v825_v5 = vadd.f32 %v778_v44, %v2613_v47 }
 0x182   : > { %v1160_v19 = vadd.f32 %v1111_v11, %v1032_v10  ;;  %v3169_v11 = vld [vmem:[#allocation5_spill] sm:$0xff] }
 0x183   : > { %v1251_v58 = vpop.f32.mrf.mxu0  ;;  %2143 = vmatmul.msk.bf16.gmra.mxu1 %vm370_vm1, %v2477_v23 }
 0x184   : > { %2160 = vmatmul.msk.bf16.gmra.mxu2 %vm370_vm1, %v2338_v14  ;;  %v2883_v27 = vadd.f32 %v1248_v59, %v1160_v19 }
 0x185   : > { %2177 = vmatmul.msk.bf16.gmra.mxu3 %vm370_vm1, %v2485_v26 }
 0x186   : > { %2194 = vmatmul.msk.bf16.gmra.mxu0 %vm370_vm1, %v2516_v48 }
 0x187   : > { %v986_v2 = vpop.f32.mrf.mxu2 }
 0x188   : > { %v1033_v53 = vadd.f32 %v986_v2, %v825_v5  ;;  %v1114_v8 = vpop.f32.mrf.mxu3  ;;  %v780_v6 = vpop.f32.mrf.mxu1 }
 0x189   : > { %v826_v50 = vadd.f32 %v780_v6, %v2629_v52  ;;  %v3167_v52 = vld [vmem:[#allocation6_spill] sm:$0xff]  ;;  %v3170_v6 = vld [vmem:[#allocation7_spill] sm:$0xff] }
 0x18a   : > { %v1161_v47 = vadd.f32 %v1114_v8, %v1033_v53 }
 0x18b   : > { %v1253_v33 = vpop.f32.mrf.mxu0 }
 0x18c   : > { %v2890_v23 = vadd.f32 %v1251_v58, %v1161_v47 }
 0x18f   : > { %v988_v40 = vpop.f32.mrf.mxu2 }
 0x190   : > { %v1034_v14 = vadd.f32 %v988_v40, %v826_v50  ;;  %v1116_v20 = vpop.f32.mrf.mxu3  ;;  %v783_v28 = vpop.f32.mrf.mxu1 }
 0x191   : > { %v827_v26 = vadd.f32 %v783_v28, %v3165_v38 }
 0x192   : > { %v1162_v62 = vadd.f32 %v1116_v20, %v1034_v14  ;;  %v3172_v14 = vld [vmem:[#allocation10_spill] sm:$0xff]  ;;  %v3173_v20 = vld [vmem:[#allocation13_spill] sm:$0xff] }
 0x193   : > { %v1256_v7 = vpop.f32.mrf.mxu0  ;;  %2144 = vmatmul.msk.bf16.gmra.mxu1 %vm370_vm1, %v2516_v48 }
 0x194   : > { %2161 = vmatmul.msk.bf16.gmra.mxu2 %vm370_vm1, %v3166_v9  ;;  %v2897_v21 = vadd.f32 %v1253_v33, %v1162_v62  ;;  %v3171_v33 = vld [vmem:[#allocation3_spill] sm:$0xff]  ;;  %v3174_v9 = vld [vmem:[#allocation8_spill] sm:$0xff] }
 0x195   : > { %2178 = vmatmul.msk.bf16.gmra.mxu3 %vm370_vm1, %v3167_v52 }
 0x196   : > { %2195 = vmatmul.msk.bf16.gmra.mxu0 %vm370_vm1, %v3168_v42 }
 0x197   : > { %v991_v39 = vpop.f32.mrf.mxu2 }
 0x198   : > { %v1035_v41 = vadd.f32 %v991_v39, %v827_v26  ;;  %v1119_v59 = vpop.f32.mrf.mxu3  ;;  %v785_v55 = vpop.f32.mrf.mxu1 }
 0x199   : > { %v828_v44 = vadd.f32 %v785_v55, %v3169_v11 }
 0x19a   : > { %v1163_v10 = vadd.f32 %v1119_v59, %v1035_v41 }
 0x19b   : > { %v1258_v19 = vpop.f32.mrf.mxu0 }
 0x19c   : > { %v2904_v48 = vadd.f32 %v1256_v7, %v1163_v10 }
 0x19f   : > { %v993_v5 = vpop.f32.mrf.mxu2 }
 0x1a0   : > { %v1036_v58 = vadd.f32 %v993_v5, %v828_v44  ;;  %v1121_v2 = vpop.f32.mrf.mxu3  ;;  %v788_v53 = vpop.f32.mrf.mxu1  ;;  %v3175_v44 = vld [vmem:[#allocation11_spill] sm:$0xff] }
 0x1a1   : > { %v829_v47 = vadd.f32 %v788_v53, %v3170_v6  ;;  %v3176_v53 = vld [vmem:[#allocation14_spill] sm:$0xff] }
 0x1a2   : > { %v1164_v8 = vadd.f32 %v1121_v2, %v1036_v58  ;;  %v2242_v58 = vld [vmem:[%s2318_s6 + $0x40] sm:$0xff] }
 0x1a3   : > { %v1261_v50 = vpop.f32.mrf.mxu0  ;;  %2145 = vmatmul.msk.bf16.gmra.mxu1 %vm370_vm1, %v3168_v42 }
 0x1a4   : > { %2162 = vmatmul.msk.bf16.gmra.mxu2 %vm370_vm1, %v3171_v33  ;;  %v2911_v40 = vadd.f32 %v1258_v19, %v1164_v8  ;;  %v3177_v8 = vld [vmem:[#allocation17_spill] sm:$0xff] }
 0x1a5   : > { %2179 = vmatmul.msk.bf16.gmra.mxu3 %vm370_vm1, %v3172_v14 }
 0x1a6   : > { %2196 = vmatmul.msk.bf16.gmra.mxu0 %vm370_vm1, %v3173_v20 }
 0x1a7   : > { %v996_v28 = vpop.f32.mrf.mxu2 }
 0x1a8   : > { %v1037_v62 = vadd.f32 %v996_v28, %v829_v47  ;;  %v1124_v38 = vpop.f32.mrf.mxu3  ;;  %v790_v26 = vpop.f32.mrf.mxu1  ;;  %v3178_v28 = vld [vmem:[#allocation12_spill] sm:$0xff] }
 0x1a9   : > { %v830_v52 = vadd.f32 %v790_v26, %v3174_v9 }
 0x1aa   : > { %v1165_v7 = vadd.f32 %v1124_v38, %v1037_v62 }
 0x1ab   : > { %v1263_v42 = vpop.f32.mrf.mxu0 }
 0x1ac   : > { %v2918_v39 = vadd.f32 %v1261_v50, %v1165_v7 }
 0x1af   : > { %v998_v41 = vpop.f32.mrf.mxu2 }
 0x1b0   : > { %v1038_v59 = vadd.f32 %v998_v41, %v830_v52  ;;  %v1126_v55 = vpop.f32.mrf.mxu3  ;;  %v793_v10 = vpop.f32.mrf.mxu1  ;;  %v3179_v41 = vld [vmem:[#allocation15_spill] sm:$0xff] }
 0x1b1   : > { %v831_v19 = vadd.f32 %v793_v10, %v3175_v44  ;;  %v2243_v10 = vld [vmem:[%s2318_s6 + $0x48] sm:$0xff] }
 0x1b2   : > { %v1166_v11 = vadd.f32 %v1126_v55, %v1038_v59 }
 0x1b3   : > { %v1266_v5 = vpop.f32.mrf.mxu0  ;;  %2146 = vmatmul.msk.bf16.gmra.mxu1 %vm370_vm1, %v3173_v20 }
 0x1b4   : > { %2163 = vmatmul.msk.bf16.gmra.mxu2 %vm370_vm1, %v2242_v58  ;;  %v2925_v2 = vadd.f32 %v1263_v42, %v1166_v11 }
 0x1b5   : > { %2180 = vmatmul.msk.bf16.gmra.mxu3 %vm370_vm1, %v3176_v53 }
 0x1b6   : > { %2197 = vmatmul.msk.bf16.gmra.mxu0 %vm370_vm1, %v3177_v8 }
 0x1b7   : > { %v1001_v6 = vpop.f32.mrf.mxu2 }
 0x1b8   : > { %v1039_v47 = vadd.f32 %v1001_v6, %v831_v19  ;;  %v1129_v50 = vpop.f32.mrf.mxu3  ;;  %v795_v33 = vpop.f32.mrf.mxu1  ;;  %v3180_v6 = vld [vmem:[#allocation16_spill] sm:$0xff] }
 0x1b9   : > { %v832_v62 = vadd.f32 %v795_v33, %v3178_v28 }
 0x1ba   : > { %v1167_v14 = vadd.f32 %v1129_v50, %v1039_v47 }
 0x1bb   : > { %v1268_v20 = vpop.f32.mrf.mxu0 }
 0x1bc   : > { %v2932_v38 = vadd.f32 %v1266_v5, %v1167_v14 }
 0x1bf   : > { %v1003_v26 = vpop.f32.mrf.mxu2 }
 0x1c0   : > { %v1040_v7 = vadd.f32 %v1003_v26, %v832_v62  ;;  %v1131_v9 = vpop.f32.mrf.mxu3  ;;  %v798_v52 = vpop.f32.mrf.mxu1  ;;  %v2244_v26 = vld [vmem:[%s2318_s6 + $0x50] sm:$0xff] }
 0x1c1   : > { %v833_v59 = vadd.f32 %v798_v52, %v3179_v41 }
 0x1c2   : > { %v1168_v42 = vadd.f32 %v1131_v9, %v1040_v7 }
 0x1c3   : > { %v1271_v55 = vpop.f32.mrf.mxu0  ;;  %2147 = vmatmul.msk.bf16.gmra.mxu1 %vm370_vm1, %v3177_v8 }
 0x1c4   : > { %2164 = vmatmul.msk.bf16.gmra.mxu2 %vm370_vm1, %v2243_v10  ;;  %v2939_v11 = vadd.f32 %v1268_v20, %v1168_v42 }
 0x1c5   : > { %2181 = vmatmul.msk.bf16.gmra.mxu3 %vm370_vm1, %v2638_v63 }
 0x1c6   : > { %2198 = vmatmul.msk.bf16.gmra.mxu0 %vm370_vm1, %v2658_v30 }
 0x1c7   : > { %v1006_v44 = vpop.f32.mrf.mxu2 }
 0x1c8   : > { %v1041_v19 = vadd.f32 %v1006_v44, %v833_v59  ;;  %v1134_v5 = vpop.f32.mrf.mxu3  ;;  %v800_v58 = vpop.f32.mrf.mxu1  ;;  %v3181_v44 = vld [vmem:[#allocation18_spill] sm:$0xff] }
 0x1c9   : > { %v834_v8 = vadd.f32 %v800_v58, %v3180_v6 }
 0x1ca   : > { %v1169_v53 = vadd.f32 %v1134_v5, %v1041_v19 }
 0x1cb   : > { %v1273_v47 = vpop.f32.mrf.mxu0 }
 0x1cc   : > { %v2946_v50 = vadd.f32 %v1271_v55, %v1169_v53 }
 0x1cf   : > { %v1008_v33 = vpop.f32.mrf.mxu2 }
 0x1d0   : > { %v1042_v14 = vadd.f32 %v1008_v33, %v834_v8  ;;  %v1136_v28 = vpop.f32.mrf.mxu3  ;;  %v1327_v63 = vpop.f32.mrf.mxu1  ;;  %v2245_v33 = vld [vmem:[%s2318_s6 + $0x58] sm:$0xff] }
 0x1d1   : > { %v1407_v9 = vadd.f32 %v1327_v63, %v2652_v57 }
 0x1d2   : > { %v1170_v62 = vadd.f32 %v1136_v28, %v1042_v14 }
 0x1d3   : > { %v1723_v20 = vpop.f32.mrf.mxu0  ;;  %2148 = vmatmul.msk.bf16.gmra.mxu1 %vm370_vm1, %v2658_v30 }
 0x1d4   : > { %2165 = vmatmul.msk.bf16.gmra.mxu2 %vm370_vm1, %v2244_v26  ;;  %v2953_v7 = vadd.f32 %v1273_v47, %v1170_v62 }
 0x1d5   : > { %2182 = vmatmul.msk.bf16.gmra.mxu3 %vm370_vm1, %v2661_v22 }
 0x1d6   : > { %2199 = vmatmul.msk.bf16.gmra.mxu0 %vm370_vm1, %v2683_v34 }
 0x1d7   : > { %v1455_v52 = vpop.f32.mrf.mxu2 }
 0x1d8   : > { %v1535_v42 = vadd.f32 %v1455_v52, %v1407_v9  ;;  %v1592_v41 = vpop.f32.mrf.mxu3  ;;  %v1329_v59 = vpop.f32.mrf.mxu1 }
 0x1d9   : > { %v1408_v57 = vadd.f32 %v1329_v59, %v3181_v44 }
 0x1da   : > { %v1672_v30 = vadd.f32 %v1592_v41, %v1535_v42  ;;  %v3182_v41 = vld [vmem:[#allocation19_spill] sm:$0xff] }
 0x1db   : > { %v1725_v55 = vpop.f32.mrf.mxu0 }
 0x1dc   : > { %v1803_v10 = vadd.f32 %v1723_v20, %v1672_v30 }
 0x1de   : > { %v1835_v22 = vpack.c.bf16 %v1803_v10, %v1803_v10 }
 0x1df   : > { %v1457_v19 = vpop.f32.mrf.mxu2 }
 0x1e0   : > { %1868 = vst.msk [vmem:[%s2964_s27] sm:$0xf] %vm1867_vm4, %v1835_v22  ;;  %v1536_v5 = vadd.f32 %v1457_v19, %v1408_v57  ;;  %v1594_v58 = vpop.f32.mrf.mxu3  ;;  %v1332_v53 = vpop.f32.mrf.mxu1  ;;  %v2246_v57 = vld [vmem:[%s2318_s6 + $0x60] sm:$0xff] }
 0x1e1   : > { %v1409_v28 = vadd.f32 %v1332_v53, %v2677_v37 }
 0x1e2   : > { %v1673_v6 = vadd.f32 %v1594_v58, %v1536_v5 }
 0x1e3   : > { %v1728_v8 = vpop.f32.mrf.mxu0  ;;  %2149 = vmatmul.msk.bf16.gmra.mxu1 %vm370_vm1, %v2683_v34 }
 0x1e4   : > { %v1804_v47 = vadd.f32 %v1725_v55, %v1673_v6  ;;  %2166 = vmatmul.msk.bf16.gmra.mxu2 %vm370_vm1, %v2245_v33 }
 0x1e5   : > { %2183 = vmatmul.msk.bf16.gmra.mxu3 %vm370_vm1, %v2686_v13 }
 0x1e6   : > { %2200 = vmatmul.msk.bf16.gmra.mxu0 %vm370_vm1, %v2708_v15  ;;  %v1836_v14 = vpack.c.bf16 %v1804_v47, %v1804_v47 }
 0x1e7   : > { %v1460_v63 = vpop.f32.mrf.mxu2 }
 0x1e8   : > { %1869 = vst.msk [vmem:[%s2964_s27 + $0x4] sm:$0xf] %vm1867_vm4, %v1836_v14  ;;  %v1537_v62 = vadd.f32 %v1460_v63, %v1409_v28  ;;  %v1597_v20 = vpop.f32.mrf.mxu3  ;;  %v1334_v34 = vpop.f32.mrf.mxu1  ;;  %v3183_v28 = vld [vmem:[#allocation20_spill] sm:$0xff] }
 0x1e9   : > { %v1410_v59 = vadd.f32 %v1334_v34, %v3182_v41 }
 0x1ea   : > { %v1674_v26 = vadd.f32 %v1597_v20, %v1537_v62 }
 0x1eb   : > { %v1730_v9 = vpop.f32.mrf.mxu0 }
 0x1ec   : > { %v1805_v52 = vadd.f32 %v1728_v8, %v1674_v26 }
 0x1ee   : > { %v1837_v42 = vpack.c.bf16 %v1805_v52, %v1805_v52  ;;  %v2247_v52 = vld [vmem:[%s2318_s6 + $0x68] sm:$0xff] }
 0x1ef   : > { %v1462_v13 = vpop.f32.mrf.mxu2 }
 0x1f0   : > { %1870 = vst.msk [vmem:[%s2964_s27 + $0x8] sm:$0xf] %vm1867_vm4, %v1837_v42  ;;  %v1538_v30 = vadd.f32 %v1462_v13, %v1410_v59  ;;  %v1599_v55 = vpop.f32.mrf.mxu3  ;;  %v1337_v37 = vpop.f32.mrf.mxu1 }
 0x1f1   : > { %v1411_v5 = vadd.f32 %v1337_v37, %v2702_v60 }
 0x1f2   : > { %v1675_v10 = vadd.f32 %v1599_v55, %v1538_v30 }
 0x1f3   : > { %v1733_v22 = vpop.f32.mrf.mxu0  ;;  %2150 = vmatmul.msk.bf16.gmra.mxu1 %vm370_vm1, %v2708_v15 }
 0x1f4   : > { %v1806_v44 = vadd.f32 %v1730_v9, %v1675_v10  ;;  %2167 = vmatmul.msk.bf16.gmra.mxu2 %vm370_vm1, %v2246_v57 }
 0x1f5   : > { %2184 = vmatmul.msk.bf16.gmra.mxu3 %vm370_vm1, %v2711_v3 }
 0x1f6   : > { %2201 = vmatmul.msk.bf16.gmra.mxu0 %vm370_vm1, %v2731_v0  ;;  %v1838_v19 = vpack.c.bf16 %v1806_v44, %v1806_v44 }
 0x1f7   : > { %v1465_v58 = vpop.f32.mrf.mxu2 }
 0x1f8   : > { %1871 = vst.msk [vmem:[%s2964_s27 + $0xc] sm:$0xf] %vm1867_vm4, %v1838_v19  ;;  %v1539_v53 = vadd.f32 %v1465_v58, %v1411_v5  ;;  %v1602_v6 = vpop.f32.mrf.mxu3  ;;  %v1339_v15 = vpop.f32.mrf.mxu1 }
 0x1f9   : > { %v1412_v63 = vadd.f32 %v1339_v15, %v3183_v28  ;;  %v3184_v15 = vld [vmem:[#allocation21_spill] sm:$0xff] }
 0x1fa   : > { %v1676_v8 = vadd.f32 %v1602_v6, %v1539_v53  ;;  %v2248_v6 = vld [vmem:[%s2318_s6 + $0x70] sm:$0xff] }
 0x1fb   : > { %v1735_v47 = vpop.f32.mrf.mxu0 }
 0x1fc   : > { %v1807_v33 = vadd.f32 %v1733_v22, %v1676_v8 }
 0x1fe   : > { %v1839_v14 = vpack.c.bf16 %v1807_v33, %v1807_v33 }
 0x1ff   : > { %v1467_v3 = vpop.f32.mrf.mxu2 }
 0x200   : > { %1872 = vst.msk [vmem:[%s2964_s27 + $0x10] sm:$0xf] %vm1867_vm4, %v1839_v14  ;;  %v1540_v62 = vadd.f32 %v1467_v3, %v1412_v63  ;;  %v1604_v20 = vpop.f32.mrf.mxu3  ;;  %v1342_v60 = vpop.f32.mrf.mxu1 }
 0x201   : > { %v1413_v41 = vadd.f32 %v1342_v60, %v2727_v45 }
 0x202   : > { %v1677_v34 = vadd.f32 %v1604_v20, %v1540_v62  ;;  %v3185_v20 = vld [vmem:[#allocation22_spill] sm:$0xff] }
 0x203   : > { %v1738_v26 = vpop.f32.mrf.mxu0  ;;  %2151 = vmatmul.msk.bf16.gmra.mxu1 %vm370_vm1, %v2731_v0 }
 0x204   : > { %v1808_v9 = vadd.f32 %v1735_v47, %v1677_v34  ;;  %2168 = vmatmul.msk.bf16.gmra.mxu2 %vm370_vm1, %v2247_v52 }
 0x205   : > { %2185 = vmatmul.msk.bf16.gmra.mxu3 %vm370_vm1, %v2735_v1 }
 0x206   : > { %2202 = vmatmul.msk.bf16.gmra.mxu0 %vm370_vm1, %v2755_v24  ;;  %v1840_v42 = vpack.c.bf16 %v1808_v9, %v1808_v9 }
 0x207   : > { %v1470_v59 = vpop.f32.mrf.mxu2 }
 0x208   : > { %1873 = vst.msk [vmem:[%s2964_s27 + $0x14] sm:$0xf] %vm1867_vm4, %v1840_v42  ;;  %v1541_v13 = vadd.f32 %v1470_v59, %v1413_v41  ;;  %v1607_v30 = vpop.f32.mrf.mxu3  ;;  %v1344_v0 = vpop.f32.mrf.mxu1  ;;  %v2249_v59 = vld [vmem:[%s2318_s6 + $0x78] sm:$0xff] }
 0x209   : > { %v1414_v44 = vadd.f32 %v1344_v0, %v2741_v18 }
 0x20a   : > { %v1678_v55 = vadd.f32 %v1607_v30, %v1541_v13 }
 0x20b   : > { %v1740_v37 = vpop.f32.mrf.mxu0 }
 0x20c   : > { %v1809_v10 = vadd.f32 %v1738_v26, %v1678_v55 }
 0x20e   : > { %v1841_v22 = vpack.c.bf16 %v1809_v10, %v1809_v10 }
 0x20f   : > { %v1472_v1 = vpop.f32.mrf.mxu2 }
 0x210   : > { %1874 = vst.msk [vmem:[%s2964_s27 + $0x18] sm:$0xf] %vm1867_vm4, %v1841_v22  ;;  %v1542_v57 = vadd.f32 %v1472_v1, %v1414_v44  ;;  %v1609_v19 = vpop.f32.mrf.mxu3  ;;  %v1347_v45 = vpop.f32.mrf.mxu1 }
 0x211   : > { %v1415_v8 = vadd.f32 %v1347_v45, %v3184_v15 }
 0x212   : > { %v1679_v5 = vadd.f32 %v1609_v19, %v1542_v57  ;;  %v3186_v57 = vld [vmem:[#allocation23_spill] sm:$0xff] }
 0x213   : > { %v1743_v58 = vpop.f32.mrf.mxu0  ;;  %2152 = vmatmul.msk.bf16.gmra.mxu1 %vm370_vm1, %v2755_v24 }
 0x214   : > { %v1810_v53 = vadd.f32 %v1740_v37, %v1679_v5  ;;  %2169 = vmatmul.msk.bf16.gmra.mxu2 %vm370_vm1, %v2248_v6 }
 0x215   : > { %2186 = vmatmul.msk.bf16.gmra.mxu3 %vm370_vm1, %v2759_v25 }
 0x216   : > { %2203 = vmatmul.msk.bf16.gmra.mxu0 %vm370_vm1, %v2786_v51  ;;  %v1842_v18 = vpack.c.bf16 %v1810_v53, %v1810_v53 }
 0x217   : > { %v1475_v47 = vpop.f32.mrf.mxu2 }
 0x218   : > { %1875 = vst.msk [vmem:[%s2964_s27 + $0x1c] sm:$0xf] %vm1867_vm4, %v1842_v18  ;;  %v1543_v33 = vadd.f32 %v1475_v47, %v1415_v8  ;;  %v1612_v14 = vpop.f32.mrf.mxu3  ;;  %v1349_v24 = vpop.f32.mrf.mxu1  ;;  %v3187_v18 = vrot.slane %v2777_v49, 1 }
 0x219   : > { %v1416_v60 = vadd.f32 %v1349_v24, %v3185_v20 }
 0x21a   : > { %v1680_v28 = vadd.f32 %v1612_v14, %v1543_v33  ;;  %v2229_v14 = vld [vmem:[%s2764_s23 + $0x10] sm:$0xff] }
 0x21b   : > { %v1745_v63 = vpop.f32.mrf.mxu0  ;;  %v1573_v20 = vshll.u32 %v2229_v14, 16 }
 0x21c   : > { %v1811_v3 = vadd.f32 %v1743_v58, %v1680_v28 }
 0x21e   : > { %v1843_v62 = vpack.c.bf16 %v1811_v3, %v1811_v3 }
 0x21f   : > { %v1477_v25 = vpop.f32.mrf.mxu2 }
 0x220   : > { %1876 = vst.msk [vmem:[%s2964_s27 + $0x20] sm:$0xf] %vm1867_vm4, %v1843_v62  ;;  %v1544_v34 = vadd.f32 %v1477_v25, %v1416_v60  ;;  %v1614_v26 = vpop.f32.mrf.mxu3  ;;  %v1352_v9 = vpop.f32.mrf.mxu1 }
 0x221   : > { %v1417_v30 = vadd.f32 %v1352_v9, %v2782_v17  ;;  %v1706_v9 = vrot.slane %v2229_v14, 1 }
 0x222   : > { %v1681_v52 = vadd.f32 %v1614_v26, %v1544_v34  ;;  %v3188_v34 = vld [vmem:[#allocation24_spill] sm:$0xff] }
 0x223   : > { %v1748_v42 = vpop.f32.mrf.mxu0  ;;  %2153 = vmatmul.msk.bf16.gmra.mxu1 %vm370_vm1, %v2786_v51 }
 0x224   : > { %v1812_v41 = vadd.f32 %v1745_v63, %v1681_v52  ;;  %2170 = vmatmul.msk.bf16.gmra.mxu2 %vm370_vm1, %v2249_v59 }
 0x225   : > { %2187 = vmatmul.msk.bf16.gmra.mxu3 %vm370_vm1, %v2790_v46  ;;  %v1310_v46 = vrot.slane %v2803_v16, 1 }
 0x226   : > { %2204 = vmatmul.msk.bf16.gmra.mxu0 %vm370_vm1, %v2816_v43  ;;  %v1844_v13 = vpack.c.bf16 %v1812_v41, %v1812_v41 }
 0x227   : > { %v1480_v0 = vpop.f32.mrf.mxu2  ;;  %v1311_v15 = vsel %vm837_vm3, %v3187_v18, %v1310_v46 }
 0x228   : > { %1877 = vst.msk [vmem:[%s2964_s27 + $0x24] sm:$0xf] %vm1867_vm4, %v1844_v13  ;;  %v1545_v55 = vadd.f32 %v1480_v0, %v1417_v30  ;;  %v1617_v37 = vpop.f32.mrf.mxu3  ;;  %v1354_v10 = vpop.f32.mrf.mxu1 }
 0x229   : > { %v1418_v19 = vadd.f32 %v1354_v10, %v3186_v57 }
 0x22a   : > { %v1682_v51 = vadd.f32 %v1617_v37, %v1545_v55  ;;  %v1707_v55 = vsel %vm837_vm3, %v1310_v46, %v1706_v9 }
 0x22b   : > { %v1750_v22 = vpop.f32.mrf.mxu0 }
 0x22c   : > { %v1813_v44 = vadd.f32 %v1748_v42, %v1682_v51 }
 0x22e   : > { %v1845_v1 = vpack.c.bf16 %v1813_v44, %v1813_v44 }
 0x22f   : > { %v1482_v45 = vpop.f32.mrf.mxu2 }
 0x230   : > { %1878 = vst.msk [vmem:[%s2964_s27 + $0x28] sm:$0xf] %vm1867_vm4, %v1845_v1  ;;  %v1546_v17 = vadd.f32 %v1482_v45, %v1418_v19  ;;  %v1619_v5 = vpop.f32.mrf.mxu3  ;;  %v1357_v58 = vpop.f32.mrf.mxu1 }
 0x231   : > { %v1419_v33 = vadd.f32 %v1357_v58, %v2808_v36  ;;  %v1575_v36 = vrot.slane %v1573_v20, 1 }
 0x232   : > { %v1683_v53 = vadd.f32 %v1619_v5, %v1546_v17 }
 0x233   : > { %v1753_v6 = vpop.f32.mrf.mxu0  ;;  %2154 = vmatmul.msk.bf16.gmra.mxu1 %vm370_vm1, %v2816_v43  ;;  %v1569_v43 = vshrl.u32 %v2803_v16, 16 }
 0x234   : > { %v1814_v8 = vadd.f32 %v1750_v22, %v1683_v53  ;;  %2171 = vmatmul.msk.bf16.gmra.mxu2 %vm370_vm1, %v2777_v49 }
 0x235   : > { %2188 = vmatmul.msk.bf16.gmra.mxu3 %vm370_vm1, %v2821_v35  ;;  %v1571_v35 = vor.u32 %v1569_v43, %v2811_v29 }
 0x236   : > { %2205 = vmatmul.msk.bf16.gmra.mxu0 %vm370_vm1, %v1311_v15  ;;  %v1846_v47 = vpack.c.bf16 %v1814_v8, %v1814_v8 }
 0x237   : > { %v1485_v24 = vpop.f32.mrf.mxu2  ;;  %v1576_v0 = vsel %vm546_vm2, %v1571_v35, %v1575_v36 }
 0x238   : > { %1879 = vst.msk [vmem:[%s2964_s27 + $0x2c] sm:$0xf] %vm1867_vm4, %v1846_v47  ;;  %v1547_v28 = vadd.f32 %v1485_v24, %v1419_v33  ;;  %v1622_v63 = vpop.f32.mrf.mxu3  ;;  %v1359_v3 = vpop.f32.mrf.mxu1 }
 0x239   : > { %v1420_v26 = vadd.f32 %v1359_v3, %v3188_v34 }
 0x23a   : > { %v1684_v62 = vadd.f32 %v1622_v63, %v1547_v28 }
 0x23b   : > { %v1755_v49 = vpop.f32.mrf.mxu0 }
 0x23c   : > { %v1815_v60 = vadd.f32 %v1753_v6, %v1684_v62 }
 0x23e   : > { %v1847_v25 = vpack.c.bf16 %v1815_v60, %v1815_v60 }
 0x23f   : > { %v1487_v52 = vpop.f32.mrf.mxu2 }
 0x240   : > { %1880 = vst.msk [vmem:[%s2964_s27 + $0x30] sm:$0xf] %vm1867_vm4, %v1847_v25  ;;  %v1548_v42 = vadd.f32 %v1487_v52, %v1420_v26  ;;  %v1624_v41 = vpop.f32.mrf.mxu3  ;;  %v1362_v59 = vpop.f32.mrf.mxu1 }
 0x241   : > { %v1421_v10 = vadd.f32 %v1362_v59, %v2834_v31 }
 0x242   : > { %v1685_v13 = vadd.f32 %v1624_v41, %v1548_v42 }
 0x243   : > { %v1758_v30 = vpop.f32.mrf.mxu0  ;;  %2155 = vmatmul.msk.bf16.gmra.mxu1 %vm370_vm1, %v1311_v15 }
 0x244   : > { %v1816_v37 = vadd.f32 %v1755_v49, %v1685_v13  ;;  %2172 = vmatmul.msk.bf16.gmra.mxu2 %vm370_vm1, %v2803_v16 }
 0x245   : > { %2189 = vmatmul.msk.bf16.gmra.mxu3 %vm370_vm1, %v1576_v0 }
 0x246   : > { %2206 = vmatmul.msk.bf16.gmra.mxu0 %vm370_vm1, %v1707_v55  ;;  %v1848_v29 = vpack.c.bf16 %v1816_v37, %v1816_v37 }
 0x247   : > { %v1490_v51 = vpop.f32.mrf.mxu2 }
 0x248   : > { %1881 = vst.msk [vmem:[%s2964_s27 + $0x34] sm:$0xf] %vm1867_vm4, %v1848_v29  ;;  %v1549_v22 = vadd.f32 %v1490_v51, %v1421_v10  ;;  %v1627_v44 = vpop.f32.mrf.mxu3  ;;  %v1364_v1 = vpop.f32.mrf.mxu1 }
 0x249   : > { %v1422_v16 = vadd.f32 %v1364_v1, %v2841_v12 }
 0x24a   : > { %v1686_v57 = vadd.f32 %v1627_v44, %v1549_v22 }
 0x24b   : > { %v1760_v19 = vpop.f32.mrf.mxu0 }
 0x24c   : > { %v1817_v46 = vadd.f32 %v1758_v30, %v1686_v57 }
 0x24e   : > { %v1849_v45 = vpack.c.bf16 %v1817_v46, %v1817_v46 }
 0x24f   : > { %v1492_v17 = vpop.f32.mrf.mxu2 }
 0x250   : > { %1882 = vst.msk [vmem:[%s2964_s27 + $0x38] sm:$0xf] %vm1867_vm4, %v1849_v45  ;;  %v1550_v5 = vadd.f32 %v1492_v17, %v1422_v16  ;;  %v1629_v58 = vpop.f32.mrf.mxu3  ;;  %v1367_v53 = vpop.f32.mrf.mxu1 }
 0x251   : > { %v1423_v8 = vadd.f32 %v1367_v53, %v2848_v54 }
 0x252   : > { %v1687_v31 = vadd.f32 %v1629_v58, %v1550_v5 }
 0x253   : > { %v1763_v6 = vpop.f32.mrf.mxu0 }
 0x254   : > { %v1818_v18 = vadd.f32 %v1760_v19, %v1687_v31 }
 0x256   : > { %v1850_v15 = vpack.c.bf16 %v1818_v18, %v1818_v18 }
 0x257   : > { %v1495_v47 = vpop.f32.mrf.mxu2 }
 0x258   : > { %1883 = vst.msk [vmem:[%s2964_s27 + $0x3c] sm:$0xf] %vm1867_vm4, %v1850_v15  ;;  %v1551_v33 = vadd.f32 %v1495_v47, %v1423_v8  ;;  %v1632_v14 = vpop.f32.mrf.mxu3  ;;  %v1369_v24 = vpop.f32.mrf.mxu1 }
 0x259   : > { %v1424_v43 = vadd.f32 %v1369_v24, %v2855_v32 }
 0x25a   : > { %v1688_v12 = vadd.f32 %v1632_v14, %v1551_v33 }
 0x25b   : > { %v1765_v28 = vpop.f32.mrf.mxu0 }
 0x25c   : > { %v1819_v63 = vadd.f32 %v1763_v6, %v1688_v12 }
 0x25e   : > { %v1851_v3 = vpack.c.bf16 %v1819_v63, %v1819_v63 }
 0x25f   : > { %v1497_v62 = vpop.f32.mrf.mxu2 }
 0x260   : > { %1884 = vst.msk [vmem:[%s2964_s27 + $0x40] sm:$0xf] %vm1867_vm4, %v1851_v3  ;;  %v1552_v49 = vadd.f32 %v1497_v62, %v1424_v43  ;;  %v1634_v20 = vpop.f32.mrf.mxu3  ;;  %v1372_v60 = vpop.f32.mrf.mxu1 }
 0x261   : > { %v1425_v26 = vadd.f32 %v1372_v60, %v2862_v61 }
 0x262   : > { %v1689_v54 = vadd.f32 %v1634_v20, %v1552_v49 }
 0x263   : > { %v1768_v35 = vpop.f32.mrf.mxu0 }
 0x264   : > { %v1820_v25 = vadd.f32 %v1765_v28, %v1689_v54 }
 0x266   : > { %v1852_v34 = vpack.c.bf16 %v1820_v25, %v1820_v25 }
 0x267   : > { %v1500_v36 = vpop.f32.mrf.mxu2 }
 0x268   : > { %1885 = vst.msk [vmem:[%s2964_s27 + $0x44] sm:$0xf] %vm1867_vm4, %v1852_v34  ;;  %v1553_v9 = vadd.f32 %v1500_v36, %v1425_v26  ;;  %v1637_v52 = vpop.f32.mrf.mxu3  ;;  %v1374_v42 = vpop.f32.mrf.mxu1 }
 0x269   : > { %v1426_v30 = vadd.f32 %v1374_v42, %v2869_v56 }
 0x26a   : > { %v1690_v32 = vadd.f32 %v1637_v52, %v1553_v9 }
 0x26b   : > { %v1770_v41 = vpop.f32.mrf.mxu0 }
 0x26c   : > { %v1821_v59 = vadd.f32 %v1768_v35, %v1690_v32 }
 0x26e   : > { %v1853_v13 = vpack.c.bf16 %v1821_v59, %v1821_v59 }
 0x26f   : > { %v1502_v0 = vpop.f32.mrf.mxu2 }
 0x270   : > { %1886 = vst.msk [vmem:[%s2964_s27 + $0x48] sm:$0xf] %vm1867_vm4, %v1853_v13  ;;  %v1554_v55 = vadd.f32 %v1502_v0, %v1426_v30  ;;  %v1639_v37 = vpop.f32.mrf.mxu3  ;;  %v1377_v29 = vpop.f32.mrf.mxu1 }
 0x271   : > { %v1427_v44 = vadd.f32 %v1377_v29, %v2876_v4 }
 0x272   : > { %v1691_v61 = vadd.f32 %v1639_v37, %v1554_v55 }
 0x273   : > { %v1773_v10 = vpop.f32.mrf.mxu0 }
 0x274   : > { %v1822_v51 = vadd.f32 %v1770_v41, %v1691_v61 }
 0x276   : > { %v1854_v22 = vpack.c.bf16 %v1822_v51, %v1822_v51 }
 0x277   : > { %v1505_v1 = vpop.f32.mrf.mxu2 }
 0x278   : > { %1887 = vst.msk [vmem:[%s2964_s27 + $0x4c] sm:$0xf] %vm1867_vm4, %v1854_v22  ;;  %v1555_v57 = vadd.f32 %v1505_v1, %v1427_v44  ;;  %v1642_v19 = vpop.f32.mrf.mxu3  ;;  %v1379_v46 = vpop.f32.mrf.mxu1 }
 0x279   : > { %v1428_v5 = vadd.f32 %v1379_v46, %v2883_v27 }
 0x27a   : > { %v1692_v56 = vadd.f32 %v1642_v19, %v1555_v57 }
 0x27b   : > { %v1775_v45 = vpop.f32.mrf.mxu0 }
 0x27c   : > { %v1823_v16 = vadd.f32 %v1773_v10, %v1692_v56 }
 0x27e   : > { %v1855_v17 = vpack.c.bf16 %v1823_v16, %v1823_v16 }
 0x27f   : > { %v1507_v58 = vpop.f32.mrf.mxu2 }
 0x280   : > { %1888 = vst.msk [vmem:[%s2964_s27 + $0x50] sm:$0xf] %vm1867_vm4, %v1855_v17  ;;  %v1556_v53 = vadd.f32 %v1507_v58, %v1428_v5  ;;  %v1644_v31 = vpop.f32.mrf.mxu3  ;;  %v1382_v6 = vpop.f32.mrf.mxu1 }
 0x281   : > { %v1429_v47 = vadd.f32 %v1382_v6, %v2890_v23 }
 0x282   : > { %v1693_v4 = vadd.f32 %v1644_v31, %v1556_v53 }
 0x283   : > { %v1778_v18 = vpop.f32.mrf.mxu0 }
 0x284   : > { %v1824_v15 = vadd.f32 %v1775_v45, %v1693_v4 }
 0x286   : > { %v1856_v8 = vpack.c.bf16 %v1824_v15, %v1824_v15 }
 0x287   : > { %v1510_v33 = vpop.f32.mrf.mxu2 }
 0x288   : > { %1889 = vst.msk [vmem:[%s2964_s27 + $0x54] sm:$0xf] %vm1867_vm4, %v1856_v8  ;;  %v1557_v14 = vadd.f32 %v1510_v33, %v1429_v47  ;;  %v1647_v24 = vpop.f32.mrf.mxu3  ;;  %v1384_v12 = vpop.f32.mrf.mxu1 }
 0x289   : > { %v1430_v43 = vadd.f32 %v1384_v12, %v2897_v21 }
 0x28a   : > { %v1694_v27 = vadd.f32 %v1647_v24, %v1557_v14 }
 0x28b   : > { %v1780_v28 = vpop.f32.mrf.mxu0 }
 0x28c   : > { %v1825_v63 = vadd.f32 %v1778_v18, %v1694_v27 }
 0x28e   : > { %v1857_v3 = vpack.c.bf16 %v1825_v63, %v1825_v63 }
 0x28f   : > { %v1512_v62 = vpop.f32.mrf.mxu2 }
 0x290   : > { %1890 = vst.msk [vmem:[%s2964_s27 + $0x58] sm:$0xf] %vm1867_vm4, %v1857_v3  ;;  %v1558_v49 = vadd.f32 %v1512_v62, %v1430_v43  ;;  %v1649_v20 = vpop.f32.mrf.mxu3  ;;  %v1387_v60 = vpop.f32.mrf.mxu1 }
 0x291   : > { %v1431_v34 = vadd.f32 %v1387_v60, %v2904_v48 }
 0x292   : > { %v1695_v23 = vadd.f32 %v1649_v20, %v1558_v49 }
 0x293   : > { %v1783_v54 = vpop.f32.mrf.mxu0 }
 0x294   : > { %v1826_v35 = vadd.f32 %v1780_v28, %v1695_v23 }
 0x296   : > { %v1858_v25 = vpack.c.bf16 %v1826_v35, %v1826_v35 }
 0x297   : > { %v1515_v26 = vpop.f32.mrf.mxu2 }
 0x298   : > { %1891 = vst.msk [vmem:[%s2964_s27 + $0x5c] sm:$0xf] %vm1867_vm4, %v1858_v25  ;;  %v1559_v36 = vadd.f32 %v1515_v26, %v1431_v34  ;;  %v1652_v9 = vpop.f32.mrf.mxu3  ;;  %v1389_v52 = vpop.f32.mrf.mxu1 }
 0x299   : > { %v1432_v59 = vadd.f32 %v1389_v52, %v2911_v40 }
 0x29a   : > { %v1696_v21 = vadd.f32 %v1652_v9, %v1559_v36 }
 0x29b   : > { %v1785_v42 = vpop.f32.mrf.mxu0 }
 0x29c   : > { %v1827_v32 = vadd.f32 %v1783_v54, %v1696_v21 }
 0x29e   : > { %v1859_v41 = vpack.c.bf16 %v1827_v32, %v1827_v32 }
 0x29f   : > { %v1517_v13 = vpop.f32.mrf.mxu2 }
 0x2a0   : > { %1892 = vst.msk [vmem:[%s2964_s27 + $0x60] sm:$0xf] %vm1867_vm4, %v1859_v41  ;;  %v1560_v30 = vadd.f32 %v1517_v13, %v1432_v59  ;;  %v1654_v0 = vpop.f32.mrf.mxu3  ;;  %v1392_v55 = vpop.f32.mrf.mxu1 }
 0x2a1   : > { %v1433_v10 = vadd.f32 %v1392_v55, %v2918_v39 }
 0x2a2   : > { %v1697_v48 = vadd.f32 %v1654_v0, %v1560_v30 }
 0x2a3   : > { %v1788_v37 = vpop.f32.mrf.mxu0 }
 0x2a4   : > { %v1828_v29 = vadd.f32 %v1785_v42, %v1697_v48 }
 0x2a6   : > { %v1860_v61 = vpack.c.bf16 %v1828_v29, %v1828_v29 }
 0x2a7   : > { %v1520_v51 = vpop.f32.mrf.mxu2 }
 0x2a8   : > { %1893 = vst.msk [vmem:[%s2964_s27 + $0x64] sm:$0xf] %vm1867_vm4, %v1860_v61  ;;  %v1561_v22 = vadd.f32 %v1520_v51, %v1433_v10  ;;  %v1657_v44 = vpop.f32.mrf.mxu3  ;;  %v1394_v1 = vpop.f32.mrf.mxu1 }
 0x2a9   : > { %v1434_v56 = vadd.f32 %v1394_v1, %v2925_v2 }
 0x2aa   : > { %v1698_v40 = vadd.f32 %v1657_v44, %v1561_v22 }
 0x2ab   : > { %v1790_v57 = vpop.f32.mrf.mxu0 }
 0x2ac   : > { %v1829_v19 = vadd.f32 %v1788_v37, %v1698_v40 }
 0x2ae   : > { %v1861_v46 = vpack.c.bf16 %v1829_v19, %v1829_v19 }
 0x2af   : > { %v1522_v45 = vpop.f32.mrf.mxu2 }
 0x2b0   : > { %1894 = vst.msk [vmem:[%s2964_s27 + $0x68] sm:$0xf] %vm1867_vm4, %v1861_v46  ;;  %v1562_v16 = vadd.f32 %v1522_v45, %v1434_v56  ;;  %v1659_v17 = vpop.f32.mrf.mxu3  ;;  %v1397_v5 = vpop.f32.mrf.mxu1 }
 0x2b1   : > { %v1435_v6 = vadd.f32 %v1397_v5, %v2932_v38 }
 0x2b2   : > { %v1699_v39 = vadd.f32 %v1659_v17, %v1562_v16 }
 0x2b3   : > { %v1793_v53 = vpop.f32.mrf.mxu0 }
 0x2b4   : > { %v1830_v58 = vadd.f32 %v1790_v57, %v1699_v39 }
 0x2b6   : > { %v1862_v31 = vpack.c.bf16 %v1830_v58, %v1830_v58 }
 0x2b7   : > { %v1525_v4 = vpop.f32.mrf.mxu2 }
 0x2b8   : > { %1895 = vst.msk [vmem:[%s2964_s27 + $0x6c] sm:$0xf] %vm1867_vm4, %v1862_v31  ;;  %v1563_v18 = vadd.f32 %v1525_v4, %v1435_v6  ;;  %v1662_v15 = vpop.f32.mrf.mxu3  ;;  %v1399_v8 = vpop.f32.mrf.mxu1 }
 0x2b9   : > { %v1436_v14 = vadd.f32 %v1399_v8, %v2939_v11 }
 0x2ba   : > { %v1700_v2 = vadd.f32 %v1662_v15, %v1563_v18 }
 0x2bb   : > { %v1795_v24 = vpop.f32.mrf.mxu0 }
 0x2bc   : > { %v1831_v47 = vadd.f32 %v1793_v53, %v1700_v2 }
 0x2be   : > { %v1863_v33 = vpack.c.bf16 %v1831_v47, %v1831_v47 }
 0x2bf   : > { %v1527_v12 = vpop.f32.mrf.mxu2 }
 0x2c0   : > { %1896 = vst.msk [vmem:[%s2964_s27 + $0x70] sm:$0xf] %vm1867_vm4, %v1863_v33  ;;  %v1564_v27 = vadd.f32 %v1527_v12, %v1436_v14  ;;  %v1664_v28 = vpop.f32.mrf.mxu3  ;;  %v1402_v63 = vpop.f32.mrf.mxu1 }
 0x2c1   : > { %v1437_v62 = vadd.f32 %v1402_v63, %v2946_v50 }
 0x2c2   : > { %v1701_v38 = vadd.f32 %v1664_v28, %v1564_v27 }
 0x2c3   : > { %v1798_v11 = vpop.f32.mrf.mxu0 }
 0x2c4   : > { %v1832_v3 = vadd.f32 %v1795_v24, %v1701_v38 }
 0x2c6   : > { %v1864_v43 = vpack.c.bf16 %v1832_v3, %v1832_v3 }
 0x2c7   : > { %v1530_v49 = vpop.f32.mrf.mxu2 }
 0x2c8   : > { %1897 = vst.msk [vmem:[%s2964_s27 + $0x74] sm:$0xf] %vm1867_vm4, %v1864_v43  ;;  %v1565_v20 = vadd.f32 %v1530_v49, %v1437_v62  ;;  %v1667_v60 = vpop.f32.mrf.mxu3  ;;  %v1404_v54 = vpop.f32.mrf.mxu1 }
 0x2c9   : > { %v1438_v34 = vadd.f32 %v1404_v54, %v2953_v7 }
 0x2ca   : > { %v1702_v23 = vadd.f32 %v1667_v60, %v1565_v20 }
 0x2cb   : > { %v1800_v50 = vpop.f32.mrf.mxu0 }
 0x2cc   : > { %v1833_v35 = vadd.f32 %v1798_v11, %v1702_v23 }
 0x2ce   : > { %v1865_v25 = vpack.c.bf16 %v1833_v35, %v1833_v35 }
 0x2cf   : > { %v1532_v26 = vpop.f32.mrf.mxu2 }
 0x2d0   : > { %1898 = vst.msk [vmem:[%s2964_s27 + $0x78] sm:$0xf] %vm1867_vm4, %v1865_v25  ;;  %v1566_v36 = vadd.f32 %v1532_v26, %v1438_v34  ;;  %v1669_v9 = vpop.f32.mrf.mxu3 }
 0x2d2   : > { %v1703_v52 = vadd.f32 %v1669_v9, %v1566_v36 }
 0x2d4   : > { %v1834_v21 = vadd.f32 %v1800_v50, %v1703_v52 }
 0x2d6   : > { %v1866_v42 = vpack.c.bf16 %v1834_v21, %v1834_v21 }
 0x2d8   : > { %1899 = vst.msk [vmem:[%s2964_s27 + $0x7c] sm:$0xf] %vm1867_vm4, %v1866_v42 }
 0x2d9 PF: > { %s14_s15 = sadd.s32 1, %s2256_s15  }
 0x2da   : > { %p11_p6 = scmp.ge.s32.totalorder %s14_s15, 10  }
 0x2dc   :  { %13 = sbr.rel (!%p11_p6) target bundleno = 1 (0x1), region = 77 }

// kernel: csnn_forward.12
= control target key start
LH: loop header
LB: loop body
LE: loop exit
PB: predicated region body
PF: predicated region fallthrough
CT: control target
= control target key end

     0   :  { %s340_s1 = inlined_call_operand.vmem [shape: bf16[256,128], index: 1, kind: input, shape index: {}]   ;;  %s341_s0 = inlined_call_operand.vmem [shape: bf16[8,256], index: 0, kind: input, shape index: {}]   ;;  %s342_s2 = inlined_call_operand.vmem [shape: bf16[8,128], index: 2, kind: output, shape index: {}]  }
   0x1   :  { %v262_v0 = vld [vmem:[%s340_s1 + $0x38] sm:$0xff]  ;;  %v261_v2 = vld [vmem:[%s340_s1 + $0x30] sm:$0xff]  ;;  %v260_v4 = vld [vmem:[%s340_s1 + $0x28] sm:$0xff] }
   0x2   :  { %v270_v1 = vld [vmem:[%s340_s1 + $0x78] sm:$0xff]  ;;  %153 = vmatpush.bf16.msra.mxu0 %v262_v0  ;;  %v269_v3 = vld [vmem:[%s340_s1 + $0x70] sm:$0xff]  ;;  %v268_v5 = vld [vmem:[%s340_s1 + $0x68] sm:$0xff] }
   0x3   :  { %166 = vmatpush.bf16.msra.mxu1 %v270_v1  ;;  %v259_v6 = vld [vmem:[%s340_s1 + $0x20] sm:$0xff]  ;;  %v258_v8 = vld [vmem:[%s340_s1 + $0x18] sm:$0xff]  ;;  %v257_v10 = vld [vmem:[%s340_s1 + $0x10] sm:$0xff] }
   0x4   :  { %v267_v7 = vld [vmem:[%s340_s1 + $0x60] sm:$0xff]  ;;  %v266_v9 = vld [vmem:[%s340_s1 + $0x58] sm:$0xff]  ;;  %v265_v11 = vld [vmem:[%s340_s1 + $0x50] sm:$0xff] }
   0x5   :  { %v256_v12 = vld [vmem:[%s340_s1 + $0x8] sm:$0xff]  ;;  %v17_v14 = vld [vmem:[%s341_s0] sm:$0xff] }
   0x6   :  { %154 = vmatpush.bf16.msra.mxu0 %v261_v2  ;;  %v264_v13 = vld [vmem:[%s340_s1 + $0x48] sm:$0xff]  ;;  %v51_v15 = vunpack.c.l.b16 %v17_v14  ;;  %v52_v16 = vunpack.c.h.b16 %v17_v14  ;;  %v255_v17 = vld [vmem:[%s340_s1] sm:$0xff] }
   0x7   :  { %167 = vmatpush.bf16.msra.mxu1 %v269_v3  ;;  %v263_v18 = vld [vmem:[%s340_s1 + $0x40] sm:$0xff] }
   0x8   :  { %v53_v19 = vpack.c.b16 %v51_v15, %v51_v15  ;;  %v54_v20 = vpack.c.b16 %v52_v16, %v52_v16 }
   0xa   :  { %155 = vmatpush.bf16.msra.mxu0 %v260_v4 }
   0xb   :  { %168 = vmatpush.bf16.msra.mxu1 %v268_v5 }
   0xe   :  { %156 = vmatpush.bf16.msra.mxu0 %v259_v6 }
   0xf   :  { %169 = vmatpush.bf16.msra.mxu1 %v267_v7 }
  0x12   :  { %157 = vmatpush.bf16.msra.mxu0 %v258_v8 }
  0x13   :  { %170 = vmatpush.bf16.msra.mxu1 %v266_v9 }
  0x16   :  { %158 = vmatpush.bf16.msra.mxu0 %v257_v10 }
  0x17   :  { %171 = vmatpush.bf16.msra.mxu1 %v265_v11 }
  0x1a   :  { %159 = vmatpush.bf16.msra.mxu0 %v256_v12 }
  0x1b   :  { %172 = vmatpush.bf16.msra.mxu1 %v264_v13 }
  0x1e   :  { %160 = vmatpush.bf16.msra.mxu0 %v255_v17 }
  0x1f   :  { %173 = vmatpush.bf16.msra.mxu1 %v263_v18 }
  0x21   :  { %161 = vmatmul.bf16.vlgmr.msra.gmra.mxu0 %v53_v19 }
  0x22   :  { %174 = vmatmul.bf16.vlgmr.msra.gmra.mxu1 %v54_v20 }
  0x9e   :  { %v162_v21 = vpop.f32.mrf.mxu0 }
  0x9f   :  { %v175_v22 = vpop.f32.mrf.mxu1 }
  0xa0   :  { %v176_v23 = vadd.f32 %v175_v22, %v162_v21 }
  0xa2   :  { %v185_v24 = vpack.c.bf16 %v176_v23, %v176_v23 }
  0xa4   :  { %186 = vst [vmem:[%s342_s2] sm:$0xf] %v185_v24 }
  0xa6   :  { %v164_v25 = vpop.f32.mrf.mxu0 }
  0xa7   :  { %v177_v26 = vpop.f32.mrf.mxu1 }

// kernel: csnn_forward.13
= control target key start
LH: loop header
LB: loop body
LE: loop exit
PB: predicated region body
PF: predicated region fallthrough
CT: control target
= control target key end

     0   :  { %s306_s6 = smov 0   ;;  %s308_s7 = smov 0   ;;  %s336_s0 = inlined_call_operand.vmem [shape: bf16[4,8,128], index: 0, kind: input, shape index: {}]   ;;  %s337_s1 = inlined_call_operand.vmem [shape: bf16[4,8,128], index: 1, kind: output, shape index: {}]  }
   0x1   :  { %s310_s8 = smov 0  }
   0x2 LB: > { %s20_s9 = sadd.s32 1, %s288_s7  ;;  %p237_p0 = scmp.ge.s32.totalorder %s292_s8, 1  ;;  %s292_s8 = sphi %s310_s8, %s11_s8   ;;  %s288_s7 = sphi %s308_s7, %s339_s7   ;;  %s284_s6 = sphi %s306_s6, %s338_s6  }
   0x3   : > { %p21_p1 = scmp.ge.s32.totalorder %s20_s9, 4  ;;  %p105_p2 = scmp.lt.s32.totalorder %s292_s8, 5 }
   0x5   : > { %s341_s9 = smov (%p21_p1, %s20_s9), 0  ;;  %p106_p3 = pnand %p237_p0, %p105_p2 }
   0x6   : > { %p129_p4 = scmp.lt.s32.totalorder (!%p106_p3), %s284_s6, 3  ;;  %p240_p5 = scmp.ne.s32.totalorder (!%p106_p3), %s284_s6, 0 }
   0x7   : > { %109 = sbr.rel (%p106_p3) target bundleno = 34 (0x22), region = 24 }
   0xc   : > { %s130_s10 = scalar_select %p129_p4, %s284_s6, 3 }
   0xd   : > { %146 = sbr.rel (%p240_p5) target bundleno = 20 (0x14), region = 28 }
   0xe   : > { %s238_s11 = sshll.u32 %s130_s10, 2 }
   0xf   : > { %s135_s14 = scalar_lea.vmem %s336_s0, %s238_s11  ;;  %s142_s17 = scalar_lea.vmem %s337_s1, %s238_s11 }
  0x12   : > { %v294_v0 = vmov 0.0  }
  0x13   : > { %147 = vst [vmem:[#allocation2] sm:$0xff] %v294_v0 }
  0x14 PF: > { %v149_v2 = vld [vmem:[%s135_s14] sm:$0xf]  ;;  %v295_v6 = vmov 0.0  }
  0x15   : > { %v150_v3 = vunpack.c.l.bf16 %v149_v2 }
  0x1a   : > { %v148_v1 = vld [vmem:[#allocation2] sm:$0xff] }
  0x1b   : > { %v151_v4 = vadd.f32 %v150_v3, %v148_v1 }
  0x1d   : > { %vm152_vm0 = vcmp.ge.f32.partialorder %v151_v4, 1.0 }
  0x1e   : > { %v153_v5 = vsel %vm152_vm0, 0.0, %v151_v4  ;;  %v241_v7 = vsel %vm152_vm0, 1.0, %v295_v6 }
  0x1f   : > { %154 = vst [vmem:[#allocation2] sm:$0xff] %v153_v5  ;;  %v157_v8 = vpack.c.bf16 %v241_v7, %v241_v7 }
  0x21   : > { %158 = vst [vmem:[%s142_s17] sm:$0xf] %v157_v8 }
  0x22 PF: > { %s11_s8 = sadd.s32 1, %s292_s8   ;;  %s338_s6 = smov %s288_s7 }
  0x23   : > { %p8_p6 = scmp.ge.s32.totalorder %s11_s8, 6   ;;  %s339_s7 = smov %s341_s9 }
  0x25   :  { %10 = sbr.rel (!%p8_p6) target bundleno = 2 (0x2), region = 58 }

// kernel: csnn_forward.14
= control target key start
LH: loop header
LB: loop body
LE: loop exit
PB: predicated region body
PF: predicated region fallthrough
CT: control target
= control target key end

     0   :  { %s192_s1 = inlined_call_operand.vmem [shape: bf16[128,128], index: 1, kind: input, shape index: {}]   ;;  %s193_s0 = inlined_call_operand.vmem [shape: bf16[8,128], index: 0, kind: input, shape index: {}]   ;;  %s194_s2 = inlined_call_operand.vmem [shape: bf16[8,128], index: 2, kind: output, shape index: {}]  }
   0x1   :  { %v146_v0 = vld [vmem:[%s192_s1 + $0x38] sm:$0xff]  ;;  %v145_v1 = vld [vmem:[%s192_s1 + $0x30] sm:$0xff]  ;;  %v144_v2 = vld [vmem:[%s192_s1 + $0x28] sm:$0xff] }
   0x2   :  { %82 = vmatpush.bf16.msra.mxu0 %v146_v0  ;;  %v143_v3 = vld [vmem:[%s192_s1 + $0x20] sm:$0xff]  ;;  %v142_v4 = vld [vmem:[%s192_s1 + $0x18] sm:$0xff]  ;;  %v141_v5 = vld [vmem:[%s192_s1 + $0x10] sm:$0xff] }
   0x3   :  { %v140_v6 = vld [vmem:[%s192_s1 + $0x8] sm:$0xff]  ;;  %v139_v7 = vld [vmem:[%s192_s1] sm:$0xff] }
   0x4   :  { %v17_v8 = vld [vmem:[%s193_s0] sm:$0xf] }
   0x6   :  { %83 = vmatpush.bf16.msra.mxu0 %v145_v1 }
   0xa   :  { %84 = vmatpush.bf16.msra.mxu0 %v144_v2 }
   0xe   :  { %85 = vmatpush.bf16.msra.mxu0 %v143_v3 }
  0x12   :  { %86 = vmatpush.bf16.msra.mxu0 %v142_v4 }
  0x16   :  { %87 = vmatpush.bf16.msra.mxu0 %v141_v5 }
  0x1a   :  { %88 = vmatpush.bf16.msra.mxu0 %v140_v6 }
  0x1e   :  { %89 = vmatpush.bf16.msra.mxu0 %v139_v7 }
  0x21   :  { %90 = vmatmul.bf16.vlgmr.msra.gmra.mxu0 %v17_v8 }
  0x9e   :  { %v91_v9 = vpop.f32.mrf.mxu0 }
  0x9f   :  { %v101_v10 = vpack.c.bf16 %v91_v9, %v91_v9 }
  0xa1   :  { %102 = vst [vmem:[%s194_s2] sm:$0xf] %v101_v10 }
  0xa6   :  { %v93_v11 = vpop.f32.mrf.mxu0 }

// kernel: csnn_forward.15
= control target key start
LH: loop header
LB: loop body
LE: loop exit
PB: predicated region body
PF: predicated region fallthrough
CT: control target
= control target key end

     0   :  { %s288_s6 = smov 0   ;;  %s290_s7 = smov 0   ;;  %s327_s0 = inlined_call_operand.vmem [shape: bf16[4,8,128], index: 0, kind: input, shape index: {}]   ;;  %s328_s1 = inlined_call_operand.vmem [shape: f32[8,128], index: 1, kind: output, shape index: {}]  }
   0x1   :  { %s292_s8 = smov 0  }
   0x2 LB: > { %s20_s9 = sadd.s32 1, %s270_s7  ;;  %p219_p0 = scmp.ge.s32.totalorder %s274_s8, 1  ;;  %s274_s8 = sphi %s292_s8, %s11_s8   ;;  %s270_s7 = sphi %s290_s7, %s330_s7   ;;  %s266_s6 = sphi %s288_s6, %s329_s6  }
   0x3   : > { %p21_p1 = scmp.ge.s32.totalorder %s20_s9, 4  ;;  %p103_p2 = scmp.lt.s32.totalorder %s274_s8, 5 }
   0x5   : > { %s332_s9 = smov (%p21_p1, %s20_s9), 0  ;;  %p104_p3 = pnand %p219_p0, %p103_p2 }
   0x6   : > { %p124_p4 = scmp.lt.s32.totalorder (!%p104_p3), %s266_s6, 3  ;;  %p221_p5 = scmp.ne.s32.totalorder (!%p104_p3), %s266_s6, 0 }
   0x7   : > { %107 = sbr.rel (%p104_p3) target bundleno = 36 (0x24), region = 24 }
   0xc   : > { %s125_s10 = scalar_select %p124_p4, %s266_s6, 3 }
   0xd   : > { %138 = sbr.rel (%p221_p5) target bundleno = 21 (0x15), region = 28 }
   0xe   : > { %s220_s11 = sshll.u32 %s125_s10, 2 }
   0xf   : > { %s130_s14 = scalar_lea.vmem %s327_s0, %s220_s11 }
  0x12   : > { %v276_v0 = vmov 0.0  }
  0x13   : > { %139 = vst [vmem:[#allocation2] sm:$0xff] %v276_v0 }
  0x14   : > { %140 = vst [vmem:[%s328_s1] sm:$0xff] %v276_v0 }
  0x15 PF: > { %v142_v2 = vld [vmem:[%s130_s14] sm:$0xf]  ;;  %v277_v6 = vmov 0.0  }
  0x16   : > { %v143_v3 = vunpack.c.l.bf16 %v142_v2 }
  0x1a   : > { %v141_v1 = vld [vmem:[#allocation2] sm:$0xff] }
  0x1b   : > { %v144_v4 = vadd.f32 %v143_v3, %v141_v1  ;;  %v148_v8 = vld [vmem:[%s328_s1] sm:$0xff] }
  0x1d   : > { %vm145_vm0 = vcmp.ge.f32.partialorder %v144_v4, 1.0 }
  0x1e   : > { %v146_v5 = vsel %vm145_vm0, 0.0, %v144_v4  ;;  %v222_v7 = vsel %vm145_vm0, 1.0, %v277_v6 }
  0x1f   : > { %147 = vst [vmem:[#allocation2] sm:$0xff] %v146_v5  ;;  %v151_v9 = vmul.f32 0.25, %v222_v7 }
  0x21   : > { %v152_v10 = vadd.f32 %v151_v9, %v148_v8 }
  0x23   : > { %153 = vst [vmem:[%s328_s1] sm:$0xff] %v152_v10 }
  0x24 PF: > { %s11_s8 = sadd.s32 1, %s274_s8   ;;  %s329_s6 = smov %s270_s7 }
  0x25   : > { %p8_p6 = scmp.ge.s32.totalorder %s11_s8, 6   ;;  %s330_s7 = smov %s332_s9 }
  0x27   :  { %10 = sbr.rel (!%p8_p6) target bundleno = 2 (0x2), region = 58 }

</bundles_post_ra>
